<compile_context>
chip_gen: v7x
topology: tpu7x:2x2x1
jax: 0.10.0
libtpu: 0.0.40
codegen_flags: <defaults>
</compile_context>

<pallas_src>
import jax
import jax.numpy as jnp
import numpy as np
from jax import lax
from jax.experimental import pallas as pl
from jax.experimental.pallas import tpu as pltpu


# ---------------------------------------------------------------------------
# Static (weight-independent) selection tensors used to build the Toeplitz
# conv matrices on the host.  0/1 valued, tiny.
# ---------------------------------------------------------------------------
# conv1: T1[ki, wi, ow*6+co] = w1[ki, kj, co] with kj = wi - ow (valid 5x5 conv)
_SEL1 = np.zeros((5, 32, 28), np.float32)          # [kj, wi, ow]
for _kj in range(5):
    for _ow in range(28):
        _SEL1[_kj, _ow + _kj, _ow] = 1.0

# conv2 with pool1's W-average folded in:
# T2[ki, wi*6+ci, j*16+co] = 0.5 * w2[ki, kj, ci, co]  where  wi // 2 == j + kj
_SEL2 = np.zeros((5, 28, 10), np.float32)          # [kj, wi, j]
for _kj in range(5):
    for _j in range(10):
        for _wi in range(28):
            if _wi // 2 == _j + _kj:
                _SEL2[_kj, _wi, _j] = 1.0


# ---------------------------------------------------------------------------
# The fused LeNet-5 kernel (single invocation, no grid, everything in VMEM)
# ---------------------------------------------------------------------------
def _lenet5_kernel(x_ref, t1_ref, t2_ref, w3_ref, w4_ref, w5_ref, bias_ref,
                   out_ref, h2_scr):
    B = x_ref.shape[0]
    f32 = jnp.float32

    # Packed biases (row k of a (5, 168) array); conv biases pre-tiled on host.
    b1 = bias_ref[0:1, :]          # (1, 168)  conv1 bias tiled over W
    b2 = bias_ref[1:2, 0:160]      # (1, 160)  conv2 bias tiled over W
    b3 = bias_ref[2:3, 0:120]
    b4 = bias_ref[3:4, 0:84]
    b5 = bias_ref[4:5, 0:10]

    # H-half of pool1 as a tiny 0.5-valued pooling matrix, built in-register
    # (the W-half of pool1 is folded into t2; pool2 is folded into w3).
    r = lax.broadcasted_iota(jnp.int32, (14, 28), 0)
    c = lax.broadcasted_iota(jnp.int32, (14, 28), 1)
    hpool = jnp.where((c == 2 * r) | (c == 2 * r + 1),
                      jnp.float32(0.5), jnp.float32(0.0))

    # --- per-image feature extractor (B is tiny & static -> unrolled) -------
    for b in range(B):
        # conv1 (1 -> 6, 5x5): H-taps = 5 shifted-row slices, W-taps + channel
        # fan-out folded into the Toeplitz matrices t1[ki] (32, 168).  MXU.
        acc1 = jnp.zeros((28, 168), f32)
        for ki in range(5):
            acc1 = acc1 + jnp.dot(x_ref[b, ki:ki + 28, :], t1_ref[ki],
                                  preferred_element_type=f32)
        h1 = jnp.tanh(acc1 + b1)                       # (28, 28*6) merged NHWC

        # pool1 over H (2x2 avg, stride 2 -> rows) as one small matmul.
        hp = jnp.dot(hpool, h1, preferred_element_type=f32)   # (14, 168)

        # conv2 (6 -> 16, 5x5) with pool1's W-average folded into t2[ki].
        acc2 = jnp.zeros((10, 160), f32)
        for ki in range(5):
            acc2 = acc2 + jnp.dot(hp[ki:ki + 10, :], t2_ref[ki],
                                  preferred_element_type=f32)
        h2_scr[b] = jnp.tanh(acc2 + b2)                # (10, 10*16) merged NHWC

    # --- conv3 (16 -> 120, 5x5 over the 5x5 map) == FC; pool2 folded into w3.
    acc3 = jnp.zeros((B, 120), f32)
    for p in range(10):
        acc3 = acc3 + jnp.dot(h2_scr[:, p, :], w3_ref[p],
                              preferred_element_type=f32)
    h3 = jnp.tanh(acc3 + b3)                           # (B, 120)

    # --- classifier ---------------------------------------------------------
    h4 = jnp.tanh(jnp.dot(h3, w4_ref[...], preferred_element_type=f32) + b4)
    logits = jnp.dot(h4, w5_ref[...], preferred_element_type=f32) + b5  # (B,10)

    # numerically-stable softmax
    m = jnp.max(logits, axis=-1, keepdims=True)
    e = jnp.exp(logits - m)
    out_ref[...] = (e / jnp.sum(e, axis=-1, keepdims=True)).astype(out_ref.dtype)


# ---------------------------------------------------------------------------
# Host-side parameter preparation (pure XLA; one-time per weight set — kept
# inside the jitted forward here for a drop-in interface).
# ---------------------------------------------------------------------------
def _prepare(p):
    f32 = jnp.float32
    hi = jax.lax.Precision.HIGHEST

    w1 = jnp.transpose(p["w1"].astype(f32), (2, 3, 1, 0))[:, :, 0, :]  # (5,5,6)
    w2 = jnp.transpose(p["w2"].astype(f32), (2, 3, 1, 0))              # (5,5,6,16)
    w3 = jnp.transpose(p["w3"].astype(f32), (2, 3, 1, 0))              # (5,5,16,120)

    # conv1 Toeplitz: (5, 32, 28*6)
    t1 = jnp.einsum("jwo,kjc->kwoc", _SEL1, w1, precision=hi).reshape(5, 32, 168)
    # conv2 Toeplitz with pool1's W-average folded in: (5, 28*6, 10*16)
    t2 = (0.5 * jnp.einsum("qwj,kqio->kwijo", _SEL2, w2, precision=hi)
          ).reshape(5, 168, 160)
    # conv3 as FC over the unpooled (10,10,16) map (pool2 folded in): (10,160,120)
    w3f = (0.25 * jnp.repeat(jnp.repeat(w3, 2, axis=0), 2, axis=1)
           ).reshape(10, 160, 120)

    w4 = p["w4"].astype(f32).T                                          # (120, 84)
    w5 = p["w5"].astype(f32).T                                          # (84, 10)

    bias = jnp.zeros((5, 168), f32)
    bias = bias.at[0, :168].set(jnp.tile(p["b1"].astype(f32), 28))
    bias = bias.at[1, :160].set(jnp.tile(p["b2"].astype(f32), 10))
    bias = bias.at[2, :120].set(p["b3"].astype(f32))
    bias = bias.at[3, :84].set(p["b4"].astype(f32))
    bias = bias.at[4, :10].set(p["b5"].astype(f32))
    return t1, t2, w3f, w4, w5, bias


@jax.jit
def lenet5_forward(x, params):
    """x: (B, 1, 32, 32) NCHW f32; params in PyTorch layout."""
    t1, t2, w3f, w4, w5, bias = _prepare(params)
    xs = x.astype(jnp.float32)[:, 0, :, :]              # (B, 32, 32)
    B = xs.shape[0]
    vmem = pl.BlockSpec(memory_space=pltpu.MemorySpace.VMEM)
    return pl.pallas_call(
        _lenet5_kernel,
        out_shape=jax.ShapeDtypeStruct((B, 10), jnp.float32),
        in_specs=[vmem] * 7,
        out_specs=vmem,
        scratch_shapes=[pltpu.VMEM((B, 10, 160), jnp.float32)],   # conv2 activations
    )(xs, t1, t2, w3f, w4, w5, bias)


# ---------------------------------------------------------------------------
# Pure-XLA reference (same math, PyTorch semantics) for correctness checking
# ---------------------------------------------------------------------------
@jax.jit
def lenet5_reference(x, p):
    hp = jax.lax.Precision.HIGHEST

    def conv(v, w, b):
        y = jax.lax.conv_general_dilated(
            v, w, window_strides=(1, 1), padding="VALID",
            dimension_numbers=("NCHW", "OIHW", "NCHW"), precision=hp)
        return jnp.tanh(y + b[None, :, None, None])

    def pool(v):
        return 0.25 * (v[:, :, 0::2, 0::2] + v[:, :, 1::2, 0::2]
                       + v[:, :, 0::2, 1::2] + v[:, :, 1::2, 1::2])

    y = pool(conv(x, p["w1"], p["b1"]))
    y = pool(conv(y, p["w2"], p["b2"]))
    y = conv(y, p["w3"], p["b3"])
    y = y.reshape(y.shape[0], -1)
    y = jnp.tanh(jnp.dot(y, p["w4"].T, precision=hp) + p["b4"])
    y = jnp.dot(y, p["w5"].T, precision=hp) + p["b5"]
    return jax.nn.softmax(y, axis=-1)


def init_params(key):
    """Deterministic init mimicking PyTorch's default U(-1/sqrt(fan_in), +)."""
    ks = jax.random.split(key, 10)

    def u(k, shape, fan_in):
        bound = 1.0 / np.sqrt(fan_in)
        return jax.random.uniform(k, shape, jnp.float32, -bound, bound)

    return {
        "w1": u(ks[0], (6, 1, 5, 5), 1 * 25),     "b1": u(ks[1], (6,), 1 * 25),
        "w2": u(ks[2], (16, 6, 5, 5), 6 * 25),    "b2": u(ks[3], (16,), 6 * 25),
        "w3": u(ks[4], (120, 16, 5, 5), 16 * 25), "b3": u(ks[5], (120,), 16 * 25),
        "w4": u(ks[6], (84, 120), 120),           "b4": u(ks[7], (84,), 120),
        "w5": u(ks[8], (10, 84), 84),             "b5": u(ks[9], (10,), 84),
    }


if __name__ == "__main__":
    key = jax.random.PRNGKey(0)
    kx, kp = jax.random.split(key)
    # LeNet-5 requires 32x32 single-channel input (so conv3 sees a 5x5 map).
    x = jax.random.normal(kx, (2, 1, 32, 32), dtype=jnp.float32)
    params = init_params(kp)

    out = jax.block_until_ready(lenet5_forward(x, params))
    assert out.shape == (2, 10), out.shape

    ref = jax.block_until_ready(lenet5_reference(x, params))
    np.testing.assert_allclose(np.asarray(out), np.asarray(ref),
                               rtol=5e-3, atol=1e-3)
    np.testing.assert_allclose(np.asarray(jnp.sum(out, axis=1)),
                               np.ones((2,), np.float32), rtol=1e-5, atol=1e-5)
    print("KERNEL_OK")
</pallas_src>

<mosaic_0001>
module attributes {stable_mosaic.version = 11 : i64} {
  func.func @_lenet5_kernel(%arg0: memref<2x32x32xf32, #tpu.memory_space<vmem>>, %arg1: memref<5x32x168xf32, #tpu.memory_space<vmem>>, %arg2: memref<5x168x160xf32, #tpu.memory_space<vmem>>, %arg3: memref<10x160x120xf32, #tpu.memory_space<vmem>>, %arg4: memref<120x84xf32, #tpu.memory_space<vmem>>, %arg5: memref<84x10xf32, #tpu.memory_space<vmem>>, %arg6: memref<5x168xf32, #tpu.memory_space<vmem>>, %arg7: memref<2x10xf32, #tpu.memory_space<vmem>>, %arg8: memref<2x10x160xf32, #tpu.memory_space<vmem>>) attributes {dimension_semantics = [], scalar_prefetch = 0 : i64, scratch_operands = 1 : i64, tpu.core_type = #tpu.core_type<tc>} {
    %c0 = arith.constant 0 : index
    %c0_0 = arith.constant 0 : index
    %0 = vector.load %arg6[%c0, %c0_0] : memref<5x168xf32, #tpu.memory_space<vmem>>, vector<1x168xf32>
    %c1 = arith.constant 1 : index
    %c0_1 = arith.constant 0 : index
    %1 = vector.load %arg6[%c1, %c0_1] : memref<5x168xf32, #tpu.memory_space<vmem>>, vector<1x160xf32>
    %c2 = arith.constant 2 : index
    %c0_2 = arith.constant 0 : index
    %2 = vector.load %arg6[%c2, %c0_2] : memref<5x168xf32, #tpu.memory_space<vmem>>, vector<1x120xf32>
    %c3 = arith.constant 3 : index
    %c0_3 = arith.constant 0 : index
    %3 = vector.load %arg6[%c3, %c0_3] : memref<5x168xf32, #tpu.memory_space<vmem>>, vector<1x84xf32>
    %c4 = arith.constant 4 : index
    %c0_4 = arith.constant 0 : index
    %4 = vector.load %arg6[%c4, %c0_4] : memref<5x168xf32, #tpu.memory_space<vmem>>, vector<1x10xf32>
    %5 = tpu.iota {dimensions = array<i32: 0>} : vector<14x28xi32>
    %6 = tpu.iota {dimensions = array<i32: 1>} : vector<14x28xi32>
    %c2_i32 = arith.constant 2 : i32
    %7 = vector.broadcast %c2_i32 : i32 to vector<14x28xi32>
    %8 = arith.muli %7, %5 : vector<14x28xi32>
    %9 = arith.cmpi eq, %6, %8 : vector<14x28xi32>
    %c2_i32_5 = arith.constant 2 : i32
    %10 = vector.broadcast %c2_i32_5 : i32 to vector<14x28xi32>
    %11 = arith.muli %10, %5 : vector<14x28xi32>
    %c1_i32 = arith.constant 1 : i32
    %12 = vector.broadcast %c1_i32 : i32 to vector<14x28xi32>
    %13 = arith.addi %11, %12 : vector<14x28xi32>
    %14 = arith.cmpi eq, %6, %13 : vector<14x28xi32>
    %15 = arith.ori %9, %14 : vector<14x28xi1>
    %cst = arith.constant 5.000000e-01 : f32
    %cst_6 = arith.constant 0.000000e+00 : f32
    %16 = vector.broadcast %cst : f32 to vector<14x28xf32>
    %17 = vector.broadcast %cst_6 : f32 to vector<14x28xf32>
    %18 = arith.select %15, %16, %17 : vector<14x28xi1>, vector<14x28xf32>
    %cst_7 = arith.constant 0.000000e+00 : f32
    %19 = vector.broadcast %cst_7 : f32 to vector<28x168xf32>
    %c0_8 = arith.constant 0 : index
    %c0_9 = arith.constant 0 : index
    %c0_10 = arith.constant 0 : index
    %20 = vector.load %arg0[%c0_8, %c0_9, %c0_10] : memref<2x32x32xf32, #tpu.memory_space<vmem>>, vector<1x28x32xf32>
    %21 = vector.shape_cast %20 : vector<1x28x32xf32> to vector<28x32xf32>
    %c0_11 = arith.constant 0 : index
    %c0_12 = arith.constant 0 : index
    %c0_13 = arith.constant 0 : index
    %22 = vector.load %arg1[%c0_11, %c0_12, %c0_13] : memref<5x32x168xf32, #tpu.memory_space<vmem>>, vector<1x32x168xf32>
    %23 = vector.shape_cast %22 : vector<1x32x168xf32> to vector<32x168xf32>
    %cst_14 = arith.constant dense<0.000000e+00> : vector<28x168xf32>
    %24 = tpu.matmul %21, %23, %cst_14 {dimension_numbers = #tpu.dot_dimension_numbers<[1], [0], [0], [1], [0, 0, 1, 1], [], []>} : vector<28x32xf32>, vector<32x168xf32>, vector<28x168xf32> -> vector<28x168xf32>
    %25 = arith.addf %19, %24 : vector<28x168xf32>
    %c0_15 = arith.constant 0 : index
    %c1_16 = arith.constant 1 : index
    %c0_17 = arith.constant 0 : index
    %26 = vector.load %arg0[%c0_15, %c1_16, %c0_17] : memref<2x32x32xf32, #tpu.memory_space<vmem>>, vector<1x28x32xf32>
    %27 = vector.shape_cast %26 : vector<1x28x32xf32> to vector<28x32xf32>
    %c1_18 = arith.constant 1 : index
    %c0_19 = arith.constant 0 : index
    %c0_20 = arith.constant 0 : index
    %28 = vector.load %arg1[%c1_18, %c0_19, %c0_20] : memref<5x32x168xf32, #tpu.memory_space<vmem>>, vector<1x32x168xf32>
    %29 = vector.shape_cast %28 : vector<1x32x168xf32> to vector<32x168xf32>
    %cst_21 = arith.constant dense<0.000000e+00> : vector<28x168xf32>
    %30 = tpu.matmul %27, %29, %cst_21 {dimension_numbers = #tpu.dot_dimension_numbers<[1], [0], [0], [1], [0, 0, 1, 1], [], []>} : vector<28x32xf32>, vector<32x168xf32>, vector<28x168xf32> -> vector<28x168xf32>
    %31 = arith.addf %25, %30 : vector<28x168xf32>
    %c0_22 = arith.constant 0 : index
    %c2_23 = arith.constant 2 : index
    %c0_24 = arith.constant 0 : index
    %32 = vector.load %arg0[%c0_22, %c2_23, %c0_24] : memref<2x32x32xf32, #tpu.memory_space<vmem>>, vector<1x28x32xf32>
    %33 = vector.shape_cast %32 : vector<1x28x32xf32> to vector<28x32xf32>
    %c2_25 = arith.constant 2 : index
    %c0_26 = arith.constant 0 : index
    %c0_27 = arith.constant 0 : index
    %34 = vector.load %arg1[%c2_25, %c0_26, %c0_27] : memref<5x32x168xf32, #tpu.memory_space<vmem>>, vector<1x32x168xf32>
    %35 = vector.shape_cast %34 : vector<1x32x168xf32> to vector<32x168xf32>
    %cst_28 = arith.constant dense<0.000000e+00> : vector<28x168xf32>
    %36 = tpu.matmul %33, %35, %cst_28 {dimension_numbers = #tpu.dot_dimension_numbers<[1], [0], [0], [1], [0, 0, 1, 1], [], []>} : vector<28x32xf32>, vector<32x168xf32>, vector<28x168xf32> -> vector<28x168xf32>
    %37 = arith.addf %31, %36 : vector<28x168xf32>
    %c0_29 = arith.constant 0 : index
    %c3_30 = arith.constant 3 : index
    %c0_31 = arith.constant 0 : index
    %38 = vector.load %arg0[%c0_29, %c3_30, %c0_31] : memref<2x32x32xf32, #tpu.memory_space<vmem>>, vector<1x28x32xf32>
    %39 = vector.shape_cast %38 : vector<1x28x32xf32> to vector<28x32xf32>
    %c3_32 = arith.constant 3 : index
    %c0_33 = arith.constant 0 : index
    %c0_34 = arith.constant 0 : index
    %40 = vector.load %arg1[%c3_32, %c0_33, %c0_34] : memref<5x32x168xf32, #tpu.memory_space<vmem>>, vector<1x32x168xf32>
    %41 = vector.shape_cast %40 : vector<1x32x168xf32> to vector<32x168xf32>
    %cst_35 = arith.constant dense<0.000000e+00> : vector<28x168xf32>
    %42 = tpu.matmul %39, %41, %cst_35 {dimension_numbers = #tpu.dot_dimension_numbers<[1], [0], [0], [1], [0, 0, 1, 1], [], []>} : vector<28x32xf32>, vector<32x168xf32>, vector<28x168xf32> -> vector<28x168xf32>
    %43 = arith.addf %37, %42 : vector<28x168xf32>
    %c0_36 = arith.constant 0 : index
    %c4_37 = arith.constant 4 : index
    %c0_38 = arith.constant 0 : index
    %44 = vector.load %arg0[%c0_36, %c4_37, %c0_38] : memref<2x32x32xf32, #tpu.memory_space<vmem>>, vector<1x28x32xf32>
    %45 = vector.shape_cast %44 : vector<1x28x32xf32> to vector<28x32xf32>
    %c4_39 = arith.constant 4 : index
    %c0_40 = arith.constant 0 : index
    %c0_41 = arith.constant 0 : index
    %46 = vector.load %arg1[%c4_39, %c0_40, %c0_41] : memref<5x32x168xf32, #tpu.memory_space<vmem>>, vector<1x32x168xf32>
    %47 = vector.shape_cast %46 : vector<1x32x168xf32> to vector<32x168xf32>
    %cst_42 = arith.constant dense<0.000000e+00> : vector<28x168xf32>
    %48 = tpu.matmul %45, %47, %cst_42 {dimension_numbers = #tpu.dot_dimension_numbers<[1], [0], [0], [1], [0, 0, 1, 1], [], []>} : vector<28x32xf32>, vector<32x168xf32>, vector<28x168xf32> -> vector<28x168xf32>
    %49 = arith.addf %43, %48 : vector<28x168xf32>
    %50 = vector.broadcast %0 : vector<1x168xf32> to vector<28x168xf32>
    %51 = arith.addf %49, %50 : vector<28x168xf32>
    %52 = math.tanh %51 : vector<28x168xf32>
    %cst_43 = arith.constant dense<0.000000e+00> : vector<14x168xf32>
    %53 = tpu.matmul %18, %52, %cst_43 {dimension_numbers = #tpu.dot_dimension_numbers<[1], [0], [0], [1], [0, 0, 1, 1], [], []>} : vector<14x28xf32>, vector<28x168xf32>, vector<14x168xf32> -> vector<14x168xf32>
    %cst_44 = arith.constant 0.000000e+00 : f32
    %54 = vector.broadcast %cst_44 : f32 to vector<10x160xf32>
    %55 = vector.extract_strided_slice %53 {offsets = [0, 0], sizes = [10, 168], strides = [1, 1]} : vector<14x168xf32> to vector<10x168xf32>
    %c0_45 = arith.constant 0 : index
    %c0_46 = arith.constant 0 : index
    %c0_47 = arith.constant 0 : index
    %56 = vector.load %arg2[%c0_45, %c0_46, %c0_47] : memref<5x168x160xf32, #tpu.memory_space<vmem>>, vector<1x168x160xf32>
    %57 = vector.shape_cast %56 : vector<1x168x160xf32> to vector<168x160xf32>
    %cst_48 = arith.constant dense<0.000000e+00> : vector<10x160xf32>
    %58 = tpu.matmul %55, %57, %cst_48 {dimension_numbers = #tpu.dot_dimension_numbers<[1], [0], [0], [1], [0, 0, 1, 1], [], []>} : vector<10x168xf32>, vector<168x160xf32>, vector<10x160xf32> -> vector<10x160xf32>
    %59 = arith.addf %54, %58 : vector<10x160xf32>
    %60 = vector.extract_strided_slice %53 {offsets = [1, 0], sizes = [10, 168], strides = [1, 1]} : vector<14x168xf32> to vector<10x168xf32>
    %c1_49 = arith.constant 1 : index
    %c0_50 = arith.constant 0 : index
    %c0_51 = arith.constant 0 : index
    %61 = vector.load %arg2[%c1_49, %c0_50, %c0_51] : memref<5x168x160xf32, #tpu.memory_space<vmem>>, vector<1x168x160xf32>
    %62 = vector.shape_cast %61 : vector<1x168x160xf32> to vector<168x160xf32>
    %cst_52 = arith.constant dense<0.000000e+00> : vector<10x160xf32>
    %63 = tpu.matmul %60, %62, %cst_52 {dimension_numbers = #tpu.dot_dimension_numbers<[1], [0], [0], [1], [0, 0, 1, 1], [], []>} : vector<10x168xf32>, vector<168x160xf32>, vector<10x160xf32> -> vector<10x160xf32>
    %64 = arith.addf %59, %63 : vector<10x160xf32>
    %65 = vector.extract_strided_slice %53 {offsets = [2, 0], sizes = [10, 168], strides = [1, 1]} : vector<14x168xf32> to vector<10x168xf32>
    %c2_53 = arith.constant 2 : index
    %c0_54 = arith.constant 0 : index
    %c0_55 = arith.constant 0 : index
    %66 = vector.load %arg2[%c2_53, %c0_54, %c0_55] : memref<5x168x160xf32, #tpu.memory_space<vmem>>, vector<1x168x160xf32>
    %67 = vector.shape_cast %66 : vector<1x168x160xf32> to vector<168x160xf32>
    %cst_56 = arith.constant dense<0.000000e+00> : vector<10x160xf32>
    %68 = tpu.matmul %65, %67, %cst_56 {dimension_numbers = #tpu.dot_dimension_numbers<[1], [0], [0], [1], [0, 0, 1, 1], [], []>} : vector<10x168xf32>, vector<168x160xf32>, vector<10x160xf32> -> vector<10x160xf32>
    %69 = arith.addf %64, %68 : vector<10x160xf32>
    %70 = vector.extract_strided_slice %53 {offsets = [3, 0], sizes = [10, 168], strides = [1, 1]} : vector<14x168xf32> to vector<10x168xf32>
    %c3_57 = arith.constant 3 : index
    %c0_58 = arith.constant 0 : index
    %c0_59 = arith.constant 0 : index
    %71 = vector.load %arg2[%c3_57, %c0_58, %c0_59] : memref<5x168x160xf32, #tpu.memory_space<vmem>>, vector<1x168x160xf32>
    %72 = vector.shape_cast %71 : vector<1x168x160xf32> to vector<168x160xf32>
    %cst_60 = arith.constant dense<0.000000e+00> : vector<10x160xf32>
    %73 = tpu.matmul %70, %72, %cst_60 {dimension_numbers = #tpu.dot_dimension_numbers<[1], [0], [0], [1], [0, 0, 1, 1], [], []>} : vector<10x168xf32>, vector<168x160xf32>, vector<10x160xf32> -> vector<10x160xf32>
    %74 = arith.addf %69, %73 : vector<10x160xf32>
    %75 = vector.extract_strided_slice %53 {offsets = [4, 0], sizes = [10, 168], strides = [1, 1]} : vector<14x168xf32> to vector<10x168xf32>
    %c4_61 = arith.constant 4 : index
    %c0_62 = arith.constant 0 : index
    %c0_63 = arith.constant 0 : index
    %76 = vector.load %arg2[%c4_61, %c0_62, %c0_63] : memref<5x168x160xf32, #tpu.memory_space<vmem>>, vector<1x168x160xf32>
    %77 = vector.shape_cast %76 : vector<1x168x160xf32> to vector<168x160xf32>
    %cst_64 = arith.constant dense<0.000000e+00> : vector<10x160xf32>
    %78 = tpu.matmul %75, %77, %cst_64 {dimension_numbers = #tpu.dot_dimension_numbers<[1], [0], [0], [1], [0, 0, 1, 1], [], []>} : vector<10x168xf32>, vector<168x160xf32>, vector<10x160xf32> -> vector<10x160xf32>
    %79 = arith.addf %74, %78 : vector<10x160xf32>
    %80 = vector.broadcast %1 : vector<1x160xf32> to vector<10x160xf32>
    %81 = arith.addf %79, %80 : vector<10x160xf32>
    %82 = math.tanh %81 : vector<10x160xf32>
    %c0_65 = arith.constant 0 : index
    %c0_66 = arith.constant 0 : index
    %c0_67 = arith.constant 0 : index
    %83 = vector.load %arg8[%c0_65, %c0_66, %c0_67] : memref<2x10x160xf32, #tpu.memory_space<vmem>>, vector<1x10x160xf32>
    %84 = vector.shape_cast %83 : vector<1x10x160xf32> to vector<10x160xf32>
    %85 = vector.shape_cast %82 : vector<10x160xf32> to vector<1x10x160xf32>
    tpu.vector_store %arg8[%c0_65, %c0_66, %c0_67], %85 {strides = array<i32>} : memref<2x10x160xf32, #tpu.memory_space<vmem>>, vector<1x10x160xf32>,
    %cst_68 = arith.constant 0.000000e+00 : f32
    %86 = vector.broadcast %cst_68 : f32 to vector<28x168xf32>
    %c1_69 = arith.constant 1 : index
    %c0_70 = arith.constant 0 : index
    %c0_71 = arith.constant 0 : index
    %87 = vector.load %arg0[%c1_69, %c0_70, %c0_71] : memref<2x32x32xf32, #tpu.memory_space<vmem>>, vector<1x28x32xf32>
    %88 = vector.shape_cast %87 : vector<1x28x32xf32> to vector<28x32xf32>
    %c0_72 = arith.constant 0 : index
    %c0_73 = arith.constant 0 : index
    %c0_74 = arith.constant 0 : index
    %89 = vector.load %arg1[%c0_72, %c0_73, %c0_74] : memref<5x32x168xf32, #tpu.memory_space<vmem>>, vector<1x32x168xf32>
    %90 = vector.shape_cast %89 : vector<1x32x168xf32> to vector<32x168xf32>
    %cst_75 = arith.constant dense<0.000000e+00> : vector<28x168xf32>
    %91 = tpu.matmul %88, %90, %cst_75 {dimension_numbers = #tpu.dot_dimension_numbers<[1], [0], [0], [1], [0, 0, 1, 1], [], []>} : vector<28x32xf32>, vector<32x168xf32>, vector<28x168xf32> -> vector<28x168xf32>
    %92 = arith.addf %86, %91 : vector<28x168xf32>
    %c1_76 = arith.constant 1 : index
    %c1_77 = arith.constant 1 : index
    %c0_78 = arith.constant 0 : index
    %93 = vector.load %arg0[%c1_76, %c1_77, %c0_78] : memref<2x32x32xf32, #tpu.memory_space<vmem>>, vector<1x28x32xf32>
    %94 = vector.shape_cast %93 : vector<1x28x32xf32> to vector<28x32xf32>
    %c1_79 = arith.constant 1 : index
    %c0_80 = arith.constant 0 : index
    %c0_81 = arith.constant 0 : index
    %95 = vector.load %arg1[%c1_79, %c0_80, %c0_81] : memref<5x32x168xf32, #tpu.memory_space<vmem>>, vector<1x32x168xf32>
    %96 = vector.shape_cast %95 : vector<1x32x168xf32> to vector<32x168xf32>
    %cst_82 = arith.constant dense<0.000000e+00> : vector<28x168xf32>
    %97 = tpu.matmul %94, %96, %cst_82 {dimension_numbers = #tpu.dot_dimension_numbers<[1], [0], [0], [1], [0, 0, 1, 1], [], []>} : vector<28x32xf32>, vector<32x168xf32>, vector<28x168xf32> -> vector<28x168xf32>
    %98 = arith.addf %92, %97 : vector<28x168xf32>
    %c1_83 = arith.constant 1 : index
    %c2_84 = arith.constant 2 : index
    %c0_85 = arith.constant 0 : index
    %99 = vector.load %arg0[%c1_83, %c2_84, %c0_85] : memref<2x32x32xf32, #tpu.memory_space<vmem>>, vector<1x28x32xf32>
    %100 = vector.shape_cast %99 : vector<1x28x32xf32> to vector<28x32xf32>
    %c2_86 = arith.constant 2 : index
    %c0_87 = arith.constant 0 : index
    %c0_88 = arith.constant 0 : index
    %101 = vector.load %arg1[%c2_86, %c0_87, %c0_88] : memref<5x32x168xf32, #tpu.memory_space<vmem>>, vector<1x32x168xf32>
    %102 = vector.shape_cast %101 : vector<1x32x168xf32> to vector<32x168xf32>
    %cst_89 = arith.constant dense<0.000000e+00> : vector<28x168xf32>
    %103 = tpu.matmul %100, %102, %cst_89 {dimension_numbers = #tpu.dot_dimension_numbers<[1], [0], [0], [1], [0, 0, 1, 1], [], []>} : vector<28x32xf32>, vector<32x168xf32>, vector<28x168xf32> -> vector<28x168xf32>
    %104 = arith.addf %98, %103 : vector<28x168xf32>
    %c1_90 = arith.constant 1 : index
    %c3_91 = arith.constant 3 : index
    %c0_92 = arith.constant 0 : index
    %105 = vector.load %arg0[%c1_90, %c3_91, %c0_92] : memref<2x32x32xf32, #tpu.memory_space<vmem>>, vector<1x28x32xf32>
    %106 = vector.shape_cast %105 : vector<1x28x32xf32> to vector<28x32xf32>
    %c3_93 = arith.constant 3 : index
    %c0_94 = arith.constant 0 : index
    %c0_95 = arith.constant 0 : index
    %107 = vector.load %arg1[%c3_93, %c0_94, %c0_95] : memref<5x32x168xf32, #tpu.memory_space<vmem>>, vector<1x32x168xf32>
    %108 = vector.shape_cast %107 : vector<1x32x168xf32> to vector<32x168xf32>
    %cst_96 = arith.constant dense<0.000000e+00> : vector<28x168xf32>
    %109 = tpu.matmul %106, %108, %cst_96 {dimension_numbers = #tpu.dot_dimension_numbers<[1], [0], [0], [1], [0, 0, 1, 1], [], []>} : vector<28x32xf32>, vector<32x168xf32>, vector<28x168xf32> -> vector<28x168xf32>
    %110 = arith.addf %104, %109 : vector<28x168xf32>
    %c1_97 = arith.constant 1 : index
    %c4_98 = arith.constant 4 : index
    %c0_99 = arith.constant 0 : index
    %111 = vector.load %arg0[%c1_97, %c4_98, %c0_99] : memref<2x32x32xf32, #tpu.memory_space<vmem>>, vector<1x28x32xf32>
    %112 = vector.shape_cast %111 : vector<1x28x32xf32> to vector<28x32xf32>
    %c4_100 = arith.constant 4 : index
    %c0_101 = arith.constant 0 : index
    %c0_102 = arith.constant 0 : index
    %113 = vector.load %arg1[%c4_100, %c0_101, %c0_102] : memref<5x32x168xf32, #tpu.memory_space<vmem>>, vector<1x32x168xf32>
    %114 = vector.shape_cast %113 : vector<1x32x168xf32> to vector<32x168xf32>
    %cst_103 = arith.constant dense<0.000000e+00> : vector<28x168xf32>
    %115 = tpu.matmul %112, %114, %cst_103 {dimension_numbers = #tpu.dot_dimension_numbers<[1], [0], [0], [1], [0, 0, 1, 1], [], []>} : vector<28x32xf32>, vector<32x168xf32>, vector<28x168xf32> -> vector<28x168xf32>
    %116 = arith.addf %110, %115 : vector<28x168xf32>
    %117 = vector.broadcast %0 : vector<1x168xf32> to vector<28x168xf32>
    %118 = arith.addf %116, %117 : vector<28x168xf32>
    %119 = math.tanh %118 : vector<28x168xf32>
    %cst_104 = arith.constant dense<0.000000e+00> : vector<14x168xf32>
    %120 = tpu.matmul %18, %119, %cst_104 {dimension_numbers = #tpu.dot_dimension_numbers<[1], [0], [0], [1], [0, 0, 1, 1], [], []>} : vector<14x28xf32>, vector<28x168xf32>, vector<14x168xf32> -> vector<14x168xf32>
    %cst_105 = arith.constant 0.000000e+00 : f32
    %121 = vector.broadcast %cst_105 : f32 to vector<10x160xf32>
    %122 = vector.extract_strided_slice %120 {offsets = [0, 0], sizes = [10, 168], strides = [1, 1]} : vector<14x168xf32> to vector<10x168xf32>
    %c0_106 = arith.constant 0 : index
    %c0_107 = arith.constant 0 : index
    %c0_108 = arith.constant 0 : index
    %123 = vector.load %arg2[%c0_106, %c0_107, %c0_108] : memref<5x168x160xf32, #tpu.memory_space<vmem>>, vector<1x168x160xf32>
    %124 = vector.shape_cast %123 : vector<1x168x160xf32> to vector<168x160xf32>
    %cst_109 = arith.constant dense<0.000000e+00> : vector<10x160xf32>
    %125 = tpu.matmul %122, %124, %cst_109 {dimension_numbers = #tpu.dot_dimension_numbers<[1], [0], [0], [1], [0, 0, 1, 1], [], []>} : vector<10x168xf32>, vector<168x160xf32>, vector<10x160xf32> -> vector<10x160xf32>
    %126 = arith.addf %121, %125 : vector<10x160xf32>
    %127 = vector.extract_strided_slice %120 {offsets = [1, 0], sizes = [10, 168], strides = [1, 1]} : vector<14x168xf32> to vector<10x168xf32>
    %c1_110 = arith.constant 1 : index
    %c0_111 = arith.constant 0 : index
    %c0_112 = arith.constant 0 : index
    %128 = vector.load %arg2[%c1_110, %c0_111, %c0_112] : memref<5x168x160xf32, #tpu.memory_space<vmem>>, vector<1x168x160xf32>
    %129 = vector.shape_cast %128 : vector<1x168x160xf32> to vector<168x160xf32>
    %cst_113 = arith.constant dense<0.000000e+00> : vector<10x160xf32>
    %130 = tpu.matmul %127, %129, %cst_113 {dimension_numbers = #tpu.dot_dimension_numbers<[1], [0], [0], [1], [0, 0, 1, 1], [], []>} : vector<10x168xf32>, vector<168x160xf32>, vector<10x160xf32> -> vector<10x160xf32>
    %131 = arith.addf %126, %130 : vector<10x160xf32>
    %132 = vector.extract_strided_slice %120 {offsets = [2, 0], sizes = [10, 168], strides = [1, 1]} : vector<14x168xf32> to vector<10x168xf32>
    %c2_114 = arith.constant 2 : index
    %c0_115 = arith.constant 0 : index
    %c0_116 = arith.constant 0 : index
    %133 = vector.load %arg2[%c2_114, %c0_115, %c0_116] : memref<5x168x160xf32, #tpu.memory_space<vmem>>, vector<1x168x160xf32>
    %134 = vector.shape_cast %133 : vector<1x168x160xf32> to vector<168x160xf32>
    %cst_117 = arith.constant dense<0.000000e+00> : vector<10x160xf32>
    %135 = tpu.matmul %132, %134, %cst_117 {dimension_numbers = #tpu.dot_dimension_numbers<[1], [0], [0], [1], [0, 0, 1, 1], [], []>} : vector<10x168xf32>, vector<168x160xf32>, vector<10x160xf32> -> vector<10x160xf32>
    %136 = arith.addf %131, %135 : vector<10x160xf32>
    %137 = vector.extract_strided_slice %120 {offsets = [3, 0], sizes = [10, 168], strides = [1, 1]} : vector<14x168xf32> to vector<10x168xf32>
    %c3_118 = arith.constant 3 : index
    %c0_119 = arith.constant 0 : index
    %c0_120 = arith.constant 0 : index
    %138 = vector.load %arg2[%c3_118, %c0_119, %c0_120] : memref<5x168x160xf32, #tpu.memory_space<vmem>>, vector<1x168x160xf32>
    %139 = vector.shape_cast %138 : vector<1x168x160xf32> to vector<168x160xf32>
    %cst_121 = arith.constant dense<0.000000e+00> : vector<10x160xf32>
    %140 = tpu.matmul %137, %139, %cst_121 {dimension_numbers = #tpu.dot_dimension_numbers<[1], [0], [0], [1], [0, 0, 1, 1], [], []>} : vector<10x168xf32>, vector<168x160xf32>, vector<10x160xf32> -> vector<10x160xf32>
    %141 = arith.addf %136, %140 : vector<10x160xf32>
    %142 = vector.extract_strided_slice %120 {offsets = [4, 0], sizes = [10, 168], strides = [1, 1]} : vector<14x168xf32> to vector<10x168xf32>
    %c4_122 = arith.constant 4 : index
    %c0_123 = arith.constant 0 : index
    %c0_124 = arith.constant 0 : index
    %143 = vector.load %arg2[%c4_122, %c0_123, %c0_124] : memref<5x168x160xf32, #tpu.memory_space<vmem>>, vector<1x168x160xf32>
    %144 = vector.shape_cast %143 : vector<1x168x160xf32> to vector<168x160xf32>
    %cst_125 = arith.constant dense<0.000000e+00> : vector<10x160xf32>
    %145 = tpu.matmul %142, %144, %cst_125 {dimension_numbers = #tpu.dot_dimension_numbers<[1], [0], [0], [1], [0, 0, 1, 1], [], []>} : vector<10x168xf32>, vector<168x160xf32>, vector<10x160xf32> -> vector<10x160xf32>
    %146 = arith.addf %141, %145 : vector<10x160xf32>
    %147 = vector.broadcast %1 : vector<1x160xf32> to vector<10x160xf32>
    %148 = arith.addf %146, %147 : vector<10x160xf32>
    %149 = math.tanh %148 : vector<10x160xf32>
    %c1_126 = arith.constant 1 : index
    %c0_127 = arith.constant 0 : index
    %c0_128 = arith.constant 0 : index
    %150 = vector.load %arg8[%c1_126, %c0_127, %c0_128] : memref<2x10x160xf32, #tpu.memory_space<vmem>>, vector<1x10x160xf32>
    %151 = vector.shape_cast %150 : vector<1x10x160xf32> to vector<10x160xf32>
    %152 = vector.shape_cast %149 : vector<10x160xf32> to vector<1x10x160xf32>
    tpu.vector_store %arg8[%c1_126, %c0_127, %c0_128], %152 {strides = array<i32>} : memref<2x10x160xf32, #tpu.memory_space<vmem>>, vector<1x10x160xf32>,
    %cst_129 = arith.constant 0.000000e+00 : f32
    %153 = vector.broadcast %cst_129 : f32 to vector<2x120xf32>
    %c0_130 = arith.constant 0 : index
    %c0_131 = arith.constant 0 : index
    %c0_132 = arith.constant 0 : index
    %154 = vector.load %arg8[%c0_130, %c0_131, %c0_132] : memref<2x10x160xf32, #tpu.memory_space<vmem>>, vector<2x1x160xf32>
    %155 = vector.shape_cast %154 : vector<2x1x160xf32> to vector<2x160xf32>
    %c0_133 = arith.constant 0 : index
    %c0_134 = arith.constant 0 : index
    %c0_135 = arith.constant 0 : index
    %156 = vector.load %arg3[%c0_133, %c0_134, %c0_135] : memref<10x160x120xf32, #tpu.memory_space<vmem>>, vector<1x160x120xf32>
    %157 = vector.shape_cast %156 : vector<1x160x120xf32> to vector<160x120xf32>
    %cst_136 = arith.constant dense<0.000000e+00> : vector<2x120xf32>
    %158 = tpu.matmul %155, %157, %cst_136 {dimension_numbers = #tpu.dot_dimension_numbers<[1], [0], [0], [1], [0, 0, 1, 1], [], []>} : vector<2x160xf32>, vector<160x120xf32>, vector<2x120xf32> -> vector<2x120xf32>
    %159 = arith.addf %153, %158 : vector<2x120xf32>
    %c0_137 = arith.constant 0 : index
    %c1_138 = arith.constant 1 : index
    %c0_139 = arith.constant 0 : index
    %160 = vector.load %arg8[%c0_137, %c1_138, %c0_139] : memref<2x10x160xf32, #tpu.memory_space<vmem>>, vector<2x1x160xf32>
    %161 = vector.shape_cast %160 : vector<2x1x160xf32> to vector<2x160xf32>
    %c1_140 = arith.constant 1 : index
    %c0_141 = arith.constant 0 : index
    %c0_142 = arith.constant 0 : index
    %162 = vector.load %arg3[%c1_140, %c0_141, %c0_142] : memref<10x160x120xf32, #tpu.memory_space<vmem>>, vector<1x160x120xf32>
    %163 = vector.shape_cast %162 : vector<1x160x120xf32> to vector<160x120xf32>
    %cst_143 = arith.constant dense<0.000000e+00> : vector<2x120xf32>
    %164 = tpu.matmul %161, %163, %cst_143 {dimension_numbers = #tpu.dot_dimension_numbers<[1], [0], [0], [1], [0, 0, 1, 1], [], []>} : vector<2x160xf32>, vector<160x120xf32>, vector<2x120xf32> -> vector<2x120xf32>
    %165 = arith.addf %159, %164 : vector<2x120xf32>
    %c0_144 = arith.constant 0 : index
    %c2_145 = arith.constant 2 : index
    %c0_146 = arith.constant 0 : index
    %166 = vector.load %arg8[%c0_144, %c2_145, %c0_146] : memref<2x10x160xf32, #tpu.memory_space<vmem>>, vector<2x1x160xf32>
    %167 = vector.shape_cast %166 : vector<2x1x160xf32> to vector<2x160xf32>
    %c2_147 = arith.constant 2 : index
    %c0_148 = arith.constant 0 : index
    %c0_149 = arith.constant 0 : index
    %168 = vector.load %arg3[%c2_147, %c0_148, %c0_149] : memref<10x160x120xf32, #tpu.memory_space<vmem>>, vector<1x160x120xf32>
    %169 = vector.shape_cast %168 : vector<1x160x120xf32> to vector<160x120xf32>
    %cst_150 = arith.constant dense<0.000000e+00> : vector<2x120xf32>
    %170 = tpu.matmul %167, %169, %cst_150 {dimension_numbers = #tpu.dot_dimension_numbers<[1], [0], [0], [1], [0, 0, 1, 1], [], []>} : vector<2x160xf32>, vector<160x120xf32>, vector<2x120xf32> -> vector<2x120xf32>
    %171 = arith.addf %165, %170 : vector<2x120xf32>
    %c0_151 = arith.constant 0 : index
    %c3_152 = arith.constant 3 : index
    %c0_153 = arith.constant 0 : index
    %172 = vector.load %arg8[%c0_151, %c3_152, %c0_153] : memref<2x10x160xf32, #tpu.memory_space<vmem>>, vector<2x1x160xf32>
    %173 = vector.shape_cast %172 : vector<2x1x160xf32> to vector<2x160xf32>
    %c3_154 = arith.constant 3 : index
    %c0_155 = arith.constant 0 : index
    %c0_156 = arith.constant 0 : index
    %174 = vector.load %arg3[%c3_154, %c0_155, %c0_156] : memref<10x160x120xf32, #tpu.memory_space<vmem>>, vector<1x160x120xf32>
    %175 = vector.shape_cast %174 : vector<1x160x120xf32> to vector<160x120xf32>
    %cst_157 = arith.constant dense<0.000000e+00> : vector<2x120xf32>
    %176 = tpu.matmul %173, %175, %cst_157 {dimension_numbers = #tpu.dot_dimension_numbers<[1], [0], [0], [1], [0, 0, 1, 1], [], []>} : vector<2x160xf32>, vector<160x120xf32>, vector<2x120xf32> -> vector<2x120xf32>
    %177 = arith.addf %171, %176 : vector<2x120xf32>
    %c0_158 = arith.constant 0 : index
    %c4_159 = arith.constant 4 : index
    %c0_160 = arith.constant 0 : index
    %178 = vector.load %arg8[%c0_158, %c4_159, %c0_160] : memref<2x10x160xf32, #tpu.memory_space<vmem>>, vector<2x1x160xf32>
    %179 = vector.shape_cast %178 : vector<2x1x160xf32> to vector<2x160xf32>
    %c4_161 = arith.constant 4 : index
    %c0_162 = arith.constant 0 : index
    %c0_163 = arith.constant 0 : index
    %180 = vector.load %arg3[%c4_161, %c0_162, %c0_163] : memref<10x160x120xf32, #tpu.memory_space<vmem>>, vector<1x160x120xf32>
    %181 = vector.shape_cast %180 : vector<1x160x120xf32> to vector<160x120xf32>
    %cst_164 = arith.constant dense<0.000000e+00> : vector<2x120xf32>
    %182 = tpu.matmul %179, %181, %cst_164 {dimension_numbers = #tpu.dot_dimension_numbers<[1], [0], [0], [1], [0, 0, 1, 1], [], []>} : vector<2x160xf32>, vector<160x120xf32>, vector<2x120xf32> -> vector<2x120xf32>
    %183 = arith.addf %177, %182 : vector<2x120xf32>
    %c0_165 = arith.constant 0 : index
    %c5 = arith.constant 5 : index
    %c0_166 = arith.constant 0 : index
    %184 = vector.load %arg8[%c0_165, %c5, %c0_166] : memref<2x10x160xf32, #tpu.memory_space<vmem>>, vector<2x1x160xf32>
    %185 = vector.shape_cast %184 : vector<2x1x160xf32> to vector<2x160xf32>
    %c5_167 = arith.constant 5 : index
    %c0_168 = arith.constant 0 : index
    %c0_169 = arith.constant 0 : index
    %186 = vector.load %arg3[%c5_167, %c0_168, %c0_169] : memref<10x160x120xf32, #tpu.memory_space<vmem>>, vector<1x160x120xf32>
    %187 = vector.shape_cast %186 : vector<1x160x120xf32> to vector<160x120xf32>
    %cst_170 = arith.constant dense<0.000000e+00> : vector<2x120xf32>
    %188 = tpu.matmul %185, %187, %cst_170 {dimension_numbers = #tpu.dot_dimension_numbers<[1], [0], [0], [1], [0, 0, 1, 1], [], []>} : vector<2x160xf32>, vector<160x120xf32>, vector<2x120xf32> -> vector<2x120xf32>
    %189 = arith.addf %183, %188 : vector<2x120xf32>
    %c0_171 = arith.constant 0 : index
    %c6 = arith.constant 6 : index
    %c0_172 = arith.constant 0 : index
    %190 = vector.load %arg8[%c0_171, %c6, %c0_172] : memref<2x10x160xf32, #tpu.memory_space<vmem>>, vector<2x1x160xf32>
    %191 = vector.shape_cast %190 : vector<2x1x160xf32> to vector<2x160xf32>
    %c6_173 = arith.constant 6 : index
    %c0_174 = arith.constant 0 : index
    %c0_175 = arith.constant 0 : index
    %192 = vector.load %arg3[%c6_173, %c0_174, %c0_175] : memref<10x160x120xf32, #tpu.memory_space<vmem>>, vector<1x160x120xf32>
    %193 = vector.shape_cast %192 : vector<1x160x120xf32> to vector<160x120xf32>
    %cst_176 = arith.constant dense<0.000000e+00> : vector<2x120xf32>
    %194 = tpu.matmul %191, %193, %cst_176 {dimension_numbers = #tpu.dot_dimension_numbers<[1], [0], [0], [1], [0, 0, 1, 1], [], []>} : vector<2x160xf32>, vector<160x120xf32>, vector<2x120xf32> -> vector<2x120xf32>
    %195 = arith.addf %189, %194 : vector<2x120xf32>
    %c0_177 = arith.constant 0 : index
    %c7 = arith.constant 7 : index
    %c0_178 = arith.constant 0 : index
    %196 = vector.load %arg8[%c0_177, %c7, %c0_178] : memref<2x10x160xf32, #tpu.memory_space<vmem>>, vector<2x1x160xf32>
    %197 = vector.shape_cast %196 : vector<2x1x160xf32> to vector<2x160xf32>
    %c7_179 = arith.constant 7 : index
    %c0_180 = arith.constant 0 : index
    %c0_181 = arith.constant 0 : index
    %198 = vector.load %arg3[%c7_179, %c0_180, %c0_181] : memref<10x160x120xf32, #tpu.memory_space<vmem>>, vector<1x160x120xf32>
    %199 = vector.shape_cast %198 : vector<1x160x120xf32> to vector<160x120xf32>
    %cst_182 = arith.constant dense<0.000000e+00> : vector<2x120xf32>
    %200 = tpu.matmul %197, %199, %cst_182 {dimension_numbers = #tpu.dot_dimension_numbers<[1], [0], [0], [1], [0, 0, 1, 1], [], []>} : vector<2x160xf32>, vector<160x120xf32>, vector<2x120xf32> -> vector<2x120xf32>
    %201 = arith.addf %195, %200 : vector<2x120xf32>
    %c0_183 = arith.constant 0 : index
    %c8 = arith.constant 8 : index
    %c0_184 = arith.constant 0 : index
    %202 = vector.load %arg8[%c0_183, %c8, %c0_184] : memref<2x10x160xf32, #tpu.memory_space<vmem>>, vector<2x1x160xf32>
    %203 = vector.shape_cast %202 : vector<2x1x160xf32> to vector<2x160xf32>
    %c8_185 = arith.constant 8 : index
    %c0_186 = arith.constant 0 : index
    %c0_187 = arith.constant 0 : index
    %204 = vector.load %arg3[%c8_185, %c0_186, %c0_187] : memref<10x160x120xf32, #tpu.memory_space<vmem>>, vector<1x160x120xf32>
    %205 = vector.shape_cast %204 : vector<1x160x120xf32> to vector<160x120xf32>
    %cst_188 = arith.constant dense<0.000000e+00> : vector<2x120xf32>
    %206 = tpu.matmul %203, %205, %cst_188 {dimension_numbers = #tpu.dot_dimension_numbers<[1], [0], [0], [1], [0, 0, 1, 1], [], []>} : vector<2x160xf32>, vector<160x120xf32>, vector<2x120xf32> -> vector<2x120xf32>
    %207 = arith.addf %201, %206 : vector<2x120xf32>
    %c0_189 = arith.constant 0 : index
    %c9 = arith.constant 9 : index
    %c0_190 = arith.constant 0 : index
    %208 = vector.load %arg8[%c0_189, %c9, %c0_190] : memref<2x10x160xf32, #tpu.memory_space<vmem>>, vector<2x1x160xf32>
    %209 = vector.shape_cast %208 : vector<2x1x160xf32> to vector<2x160xf32>
    %c9_191 = arith.constant 9 : index
    %c0_192 = arith.constant 0 : index
    %c0_193 = arith.constant 0 : index
    %210 = vector.load %arg3[%c9_191, %c0_192, %c0_193] : memref<10x160x120xf32, #tpu.memory_space<vmem>>, vector<1x160x120xf32>
    %211 = vector.shape_cast %210 : vector<1x160x120xf32> to vector<160x120xf32>
    %cst_194 = arith.constant dense<0.000000e+00> : vector<2x120xf32>
    %212 = tpu.matmul %209, %211, %cst_194 {dimension_numbers = #tpu.dot_dimension_numbers<[1], [0], [0], [1], [0, 0, 1, 1], [], []>} : vector<2x160xf32>, vector<160x120xf32>, vector<2x120xf32> -> vector<2x120xf32>
    %213 = arith.addf %207, %212 : vector<2x120xf32>
    %214 = vector.broadcast %2 : vector<1x120xf32> to vector<2x120xf32>
    %215 = arith.addf %213, %214 : vector<2x120xf32>
    %216 = math.tanh %215 : vector<2x120xf32>
    %c0_195 = arith.constant 0 : index
    %c0_196 = arith.constant 0 : index
    %217 = vector.load %arg4[%c0_195, %c0_196] : memref<120x84xf32, #tpu.memory_space<vmem>>, vector<120x84xf32>
    %cst_197 = arith.constant dense<0.000000e+00> : vector<2x84xf32>
    %218 = tpu.matmul %216, %217, %cst_197 {dimension_numbers = #tpu.dot_dimension_numbers<[1], [0], [0], [1], [0, 0, 1, 1], [], []>} : vector<2x120xf32>, vector<120x84xf32>, vector<2x84xf32> -> vector<2x84xf32>
    %219 = vector.broadcast %3 : vector<1x84xf32> to vector<2x84xf32>
    %220 = arith.addf %218, %219 : vector<2x84xf32>
    %221 = math.tanh %220 : vector<2x84xf32>
    %c0_198 = arith.constant 0 : index
    %c0_199 = arith.constant 0 : index
    %222 = vector.load %arg5[%c0_198, %c0_199] : memref<84x10xf32, #tpu.memory_space<vmem>>, vector<84x10xf32>
    %cst_200 = arith.constant dense<0.000000e+00> : vector<2x10xf32>
    %223 = tpu.matmul %221, %222, %cst_200 {dimension_numbers = #tpu.dot_dimension_numbers<[1], [0], [0], [1], [0, 0, 1, 1], [], []>} : vector<2x84xf32>, vector<84x10xf32>, vector<2x10xf32> -> vector<2x10xf32>
    %224 = vector.broadcast %4 : vector<1x10xf32> to vector<2x10xf32>
    %225 = arith.addf %223, %224 : vector<2x10xf32>
    %cst_201 = arith.constant dense<0xFF800000> : vector<2xf32>
    %226 = vector.multi_reduction <maximumf>, %225, %cst_201 [1] : vector<2x10xf32> to vector<2xf32>
    %227 = vector.shape_cast %226 : vector<2xf32> to vector<2x1xf32>
    %228 = vector.broadcast %227 : vector<2x1xf32> to vector<2x10xf32>
    %229 = arith.subf %225, %228 : vector<2x10xf32>
    %230 = math.exp %229 : vector<2x10xf32>
    %cst_202 = arith.constant dense<0.000000e+00> : vector<2xf32>
    %231 = vector.multi_reduction <add>, %230, %cst_202 [1] : vector<2x10xf32> to vector<2xf32>
    %232 = vector.shape_cast %231 : vector<2xf32> to vector<2x1xf32>
    %233 = vector.broadcast %232 : vector<2x1xf32> to vector<2x10xf32>
    %234 = arith.divf %230, %233 : vector<2x10xf32>
    %c0_203 = arith.constant 0 : index
    %c0_204 = arith.constant 0 : index
    %235 = vector.load %arg7[%c0_203, %c0_204] : memref<2x10xf32, #tpu.memory_space<vmem>>, vector<2x10xf32>
    tpu.vector_store %arg7[%c0_203, %c0_204], %234 {strides = array<i32>} : memref<2x10xf32, #tpu.memory_space<vmem>>, vector<2x10xf32>,
    return
  }
}

</mosaic_0001>

<bundles_post_ra>
// kernel: tile.13
= control target key start
LH: loop header
LB: loop body
LE: loop exit
PB: predicated region body
PF: predicated region fallthrough
CT: control target
= control target key end

     0   :  { %s40_s0 = inlined_call_operand.vmem [shape: f32[6], index: 0, kind: input, shape index: {}]   ;;  %s41_s1 = inlined_call_operand.vmem [shape: f32[28,6], index: 1, kind: output, shape index: {}]  }
   0x1   :  { %v4_v0 = vld [vmem:[%s40_s0] ss:$0 sm:$0xff] }
   0x2   :  { %5 = vst [vmem:[%s41_s1] sm:$0xff] %v4_v0  ;;  %12 = vst [vmem:[%s41_s1 + $0x8] sm:$0xff] %v4_v0 }
   0x3   :  { %13 = vst [vmem:[%s41_s1 + $0x10] sm:$0xff] %v4_v0  ;;  %14 = vst [vmem:[%s41_s1 + $0x18] sm:$0xff] %v4_v0 }

// kernel: tile.18
= control target key start
LH: loop header
LB: loop body
LE: loop exit
PB: predicated region body
PF: predicated region fallthrough
CT: control target
= control target key end

     0   :  { %s28_s0 = inlined_call_operand.vmem [shape: f32[16], index: 0, kind: input, shape index: {}]   ;;  %s29_s1 = inlined_call_operand.vmem [shape: f32[10,16], index: 1, kind: output, shape index: {}]  }
   0x1   :  { %v4_v0 = vld [vmem:[%s28_s0] ss:$0 sm:$0xff] }
   0x2   :  { %5 = vst [vmem:[%s29_s1] sm:$0xff] %v4_v0  ;;  %8 = vst [vmem:[%s29_s1 + $0x8] sm:$0xff] %v4_v0 }

// kernel: lenet5_forward.1
= control target key start
LH: loop header
LB: loop body
LE: loop exit
PB: predicated region body
PF: predicated region fallthrough
CT: control target
= control target key end

     0   :  { %v8701_v7 = vmov 0.0   ;;  %vm75_vm0 = vcmask 261120   ;;  %s8693_s0 = inlined_call_operand.vmem [shape: f32[2,32,32], index: 0, kind: input, shape index: {}]   ;;  %s8694_s1 = inlined_call_operand.vmem [shape: f32[5,32,168], index: 1, kind: input, shape index: {}]   ;;  %s8695_s2 = inlined_call_operand.vmem [shape: f32[5,168,160], index: 2, kind: input, shape index: {}]   ;;  %s8696_s3 = inlined_call_operand.vmem [shape: f32[10,160,120], index: 3, kind: input, shape index: {}]   ;;  %s8697_s4 = inlined_call_operand.vmem [shape: f32[120,84], index: 4, kind: input, shape index: {}]   ;;  %s8698_s5 = inlined_call_operand.vmem [shape: f32[84,10], index: 5, kind: input, shape index: {}]   ;;  %s8699_s6 = inlined_call_operand.vmem [shape: f32[5,168], index: 6, kind: input, shape index: {}]   ;;  %s8700_s7 = inlined_call_operand.hbm [shape: f32[2,10], index: 7, kind: output, shape index: {}]  }
   0x1   :  { %v4267_v0 = vld [vmem:[%s8694_s1 + $0x48] sm:$0xff]  ;;  %v4269_v1 = vld [vmem:[%s8694_s1 + $0x58] sm:$0xff]  ;;  %v4266_v2 = vld [vmem:[%s8694_s1 + $0x40] sm:$0xff]  ;;  %152 = vmatprep.mubr.f32.mxu0 %v8701_v7  ;;  %749 = vmatprep.mubr.f32.mxu1 %v8701_v7 }
   0x2   :  { %v6106_v3 = vpack.c.bf16 %v4269_v1, %v4267_v0  ;;  %v4268_v4 = vld [vmem:[%s8694_s1 + $0x50] sm:$0xff]  ;;  %v4271_v5 = vld [vmem:[%s8694_s1 + $0x68] sm:$0xff]  ;;  %v4273_v6 = vld [vmem:[%s8694_s1 + $0x78] sm:$0xff] }
   0x3   :  { %v6119_v8 = vpack.c.bf16 %v4268_v4, %v4266_v2  ;;  %v6121_v9 = vpack.c.bf16 %v4273_v6, %v4271_v5  ;;  %v4270_v10 = vld [vmem:[%s8694_s1 + $0x60] sm:$0xff]  ;;  %v4272_v11 = vld [vmem:[%s8694_s1 + $0x70] sm:$0xff]  ;;  %v55_v12 = vld [vmem:[%s8694_s1 + $0x8] sm:$0xff] }
   0x4   :  { %5034 = vmatprep.subr.bf16.mxu0 %v6106_v3  ;;  %v57_v13 = vld [vmem:[%s8694_s1 + $0x18] sm:$0xff]  ;;  %v6137_v14 = vpack.c.bf16 %v4272_v11, %v4270_v10  ;;  %v54_v16 = vld [vmem:[%s8694_s1] sm:$0xff]  ;;  %v56_v17 = vld [vmem:[%s8694_s1 + $0x10] sm:$0xff] }
   0x5   :  { %5036 = vmatpush1.bf16.msra.mxu0 %v6119_v8  ;;  %v6140_v15 = vpack.c.bf16 %v57_v13, %v55_v12  ;;  %v59_v18 = vld [vmem:[%s8694_s1 + $0x28] sm:$0xff]  ;;  %v61_v19 = vld [vmem:[%s8694_s1 + $0x38] sm:$0xff]  ;;  %v6158_v21 = vpack.c.bf16 %v56_v17, %v54_v16  ;;  %v58_v23 = vld [vmem:[%s8694_s1 + $0x20] sm:$0xff] }
   0x6   :  { %5038 = vmatprep.subr.bf16.mxu0 %v6121_v9  ;;  %v62_v20 = vld [vmem:[%s8693_s0 + $0x1] sm:$0xff]  ;;  %v6161_v22 = vpack.c.bf16 %v61_v19, %v59_v18  ;;  %v60_v24 = vld [vmem:[%s8694_s1 + $0x30] sm:$0xff]  ;;  %v4285_v26 = vld [vmem:[%s8694_s1 + $0x98] sm:$0xff] }
   0x7   :  { %v4283_v25 = vld [vmem:[%s8694_s1 + $0x88] sm:$0xff]  ;;  %v6181_v28 = vpack.c.bf16 %v60_v24, %v58_v23  ;;  %v64_v30 = vld [vmem:[%s8693_s0 + $0x11] sm:$0xff]  ;;  %v65_v31 = vld [vmem:[%s8693_s0 + $0x19] sm:$0xf] }
   0x8   :  { %v63_v27 = vld [vmem:[%s8693_s0 + $0x9] sm:$0xff]  ;;  %v6184_v29 = vpack.c.bf16 %v4285_v26, %v4283_v25  ;;  %v4282_v32 = vld [vmem:[%s8694_s1 + $0x80] sm:$0xff]  ;;  %v4289_v35 = vld [vmem:[%s8694_s1 + $0xb8] sm:$0xff] }
   0x9   :  { %5040 = vmatpush1.bf16.msra.mxu0 %v6137_v14  ;;  %v4284_v33 = vld [vmem:[%s8694_s1 + $0x90] sm:$0xff]  ;;  %v4287_v34 = vld [vmem:[%s8694_s1 + $0xa8] sm:$0xff]  ;;  %v50_v36 = vld [vmem:[%s8693_s0] sm:$0xff] }
   0xa   :  { %5042 = vmatprep.subr.bf16.mxu0 %v6140_v15  ;;  %v6215_v37 = vpack.c.bf16 %v4284_v33, %v4282_v32  ;;  %v6217_v38 = vpack.c.bf16 %v4289_v35, %v4287_v34  ;;  %v4286_v39 = vld [vmem:[%s8694_s1 + $0xa0] sm:$0xff]  ;;  %v4288_v40 = vld [vmem:[%s8694_s1 + $0xb0] sm:$0xff] }
   0xc   :  { %4274 = vmatmul.mubr.msk.f32.vlgmr.msra.gmra.mrb[0].mxu0 %vm75_vm0, %v62_v20 }
   0xd   :  { %158 = vmatprep.mubr.f32.mxu0 %v8701_v7  ;;  %5044 = vmatpush1.bf16.msra.mxu0 %v6158_v21 }
   0xe   :  { %5046 = vmatprep.subr.bf16.mxu0 %v6161_v22 }
  0x10   :  { %4275 = vmatmul.mubr.msk.f32.gmra.mrb[2].mxu0 %vm75_vm0, %v63_v27 }
  0x11   :  { %164 = vmatprep.mubr.f32.mxu0 %v8701_v7  ;;  %5048 = vmatpush1.bf16.msra.mxu0 %v6181_v28 }
  0x12   :  { %5050 = vmatprep.subr.bf16.mxu0 %v6184_v29 }
  0x14   :  { %4276 = vmatmul.mubr.msk.f32.gmra.mrb[4].mxu0 %vm75_vm0, %v64_v30 }
  0x15   :  { %170 = vmatprep.mubr.f32.mxu0 %v8701_v7 }
  0x18   :  { %4277 = vmatmul.mubr.msk.f32.gmra.mrb[6].mxu0 %vm75_vm0, %v65_v31 }
  0x19   :  { %253 = vmatprep.mubr.f32.mxu0 %v8701_v7 }
  0x1a   :  { %12 = vsyncpa [#allocation4], 0  ;;  %v4295_v41 = vld [vmem:[%s8694_s1 + $0xc8] sm:$0xff]  ;;  %v4297_v42 = vld [vmem:[%s8694_s1 + $0xd8] sm:$0xff]  ;;  %v6237_v44 = vpack.c.bf16 %v4288_v40, %v4286_v39  ;;  %vm678_vm1 = vcmask 1043456   ;;  %vm6052_vm4 = vmmov 1  }
  0x1b   :  { %v51_v43 = vld [vmem:[%s8693_s0 + $0x8] sm:$0xff]  ;;  %v6240_v45 = vpack.c.bf16 %v4297_v42, %v4295_v41  ;;  %v52_v46 = vld [vmem:[%s8693_s0 + $0x10] sm:$0xff]  ;;  %v53_v47 = vld [vmem:[%s8693_s0 + $0x18] sm:$0xf]  ;;  %vm671_vm9 = vcmask 228352   ;;  %vm851_vm11 = vcmask 1046528  }
  0x1c   :  { %4278 = vmatmul.mubr.msk.f32.vlgmr.msra.gmra.mrb[0].mxu0 %vm75_vm0, %v50_v36  ;;  %v4294_v48 = vld [vmem:[%s8694_s1 + $0xc0] sm:$0xff]  ;;  %v4296_v49 = vld [vmem:[%s8694_s1 + $0xd0] sm:$0xff]  ;;  %v4299_v50 = vld [vmem:[%s8694_s1 + $0xe8] sm:$0xff]  ;;  %vm860_vm12 = vcmask 326656   ;;  %vm1066_vm13 = vcmask 1045504   ;;  %vm1203_vm14 = vcmask 1044480  }
  0x1d   :  { %259 = vmatprep.mubr.f32.mxu0 %v8701_v7  ;;  %5052 = vmatpush1.bf16.msra.mxu0 %v6215_v37  ;;  %v4301_v51 = vld [vmem:[%s8694_s1 + $0xf8] sm:$0xff]  ;;  %v278_v52 = vld [vmem:[%s8693_s0 + $0x2] sm:$0xff]  ;;  %v6271_v53 = vpack.c.bf16 %v4296_v49, %v4294_v48  ;;  %v4300_v56 = vld [vmem:[%s8694_s1 + $0xf0] sm:$0xff]  ;;  %vm1455_vm15 = vcmask 254976  }
  0x1e   :  { %5054 = vmatprep.subr.bf16.mxu0 %v6217_v38  ;;  %v6273_v54 = vpack.c.bf16 %v4301_v51, %v4299_v50  ;;  %v4298_v55 = vld [vmem:[%s8694_s1 + $0xe0] sm:$0xff]  ;;  %v4307_v57 = vld [vmem:[%s8694_s1 + $0x108] sm:$0xff]  ;;  %v4309_v58 = vld [vmem:[%s8694_s1 + $0x118] sm:$0xff] }
  0x1f   :  { %v279_v59 = vld [vmem:[%s8693_s0 + $0xa] sm:$0xff]  ;;  %v6293_v60 = vpack.c.bf16 %v4300_v56, %v4298_v55  ;;  %v6296_v61 = vpack.c.bf16 %v4309_v58, %v4307_v57  ;;  %v280_v62 = vld [vmem:[%s8693_s0 + $0x12] sm:$0xff]  ;;  %v281_v63 = vld [vmem:[%s8693_s0 + $0x1a] sm:$0xf] }
  0x20   :  { %4279 = vmatmul.mubr.msk.f32.gmra.mrb[2].mxu0 %vm75_vm0, %v51_v43  ;;  %v4306_v0 = vld [vmem:[%s8694_s1 + $0x100] sm:$0xff]  ;;  %v4308_v1 = vld [vmem:[%s8694_s1 + $0x110] sm:$0xff]  ;;  %v4311_v2 = vld [vmem:[%s8694_s1 + $0x128] sm:$0xff] }
  0x21   :  { %265 = vmatprep.mubr.f32.mxu0 %v8701_v7  ;;  %5056 = vmatpush1.bf16.msra.mxu0 %v6237_v44  ;;  %v4313_v4 = vld [vmem:[%s8694_s1 + $0x138] sm:$0xff]  ;;  %v400_v5 = vld [vmem:[%s8693_s0 + $0x3] sm:$0xff]  ;;  %v6327_v6 = vpack.c.bf16 %v4308_v1, %v4306_v0  ;;  %v4312_v12 = vld [vmem:[%s8694_s1 + $0x130] sm:$0xff] }
  0x22   :  { %5058 = vmatprep.subr.bf16.mxu0 %v6240_v45  ;;  %v6329_v10 = vpack.c.bf16 %v4313_v4, %v4311_v2  ;;  %v4310_v11 = vld [vmem:[%s8694_s1 + $0x120] sm:$0xff]  ;;  %v401_v13 = vld [vmem:[%s8693_s0 + $0xb] sm:$0xff]  ;;  %v402_v17 = vld [vmem:[%s8693_s0 + $0x13] sm:$0xff] }
  0x23   :  { %v6343_v16 = vpack.c.bf16 %v4312_v12, %v4310_v11  ;;  %v403_v18 = vld [vmem:[%s8693_s0 + $0x1b] sm:$0xf]  ;;  %v522_v19 = vld [vmem:[%s8693_s0 + $0x4] sm:$0xff]  ;;  %v4502_v24 = vld [vmem:[%s8693_s0 + $0x30] sm:$0xff] }
  0x24   :  { %4280 = vmatmul.mubr.msk.f32.gmra.mrb[4].mxu0 %vm75_vm0, %v52_v46  ;;  %v524_v20 = vld [vmem:[%s8693_s0 + $0x14] sm:$0xff]  ;;  %v4501_v23 = vld [vmem:[%s8693_s0 + $0x28] sm:$0xff]  ;;  %vm6531_vm5 = vmpackc.low %vm678_vm1, %vm6052_vm4  ;;  %vm4238_vm4 = vcmask 74752  }
  0x25   :  { %271 = vmatprep.mubr.f32.mxu0 %v8701_v7  ;;  %v4503_v25 = vld [vmem:[%s8693_s0 + $0x38] sm:$0xf]  ;;  %v4524_v26 = vld [vmem:[%s8693_s0 + $0x22] sm:$0xff]  ;;  %v4525_v27 = vld [vmem:[%s8693_s0 + $0x2a] sm:$0xff] }
  0x26   :  { %v4540_v30 = vld [vmem:[%s8693_s0 + $0x23] sm:$0xff]  ;;  %v4541_v31 = vld [vmem:[%s8693_s0 + $0x2b] sm:$0xff]  ;;  %v4542_v32 = vld [vmem:[%s8693_s0 + $0x33] sm:$0xff] }
  0x27   :  { %v4543_v33 = vld [vmem:[%s8693_s0 + $0x3b] sm:$0xf]  ;;  %v4556_v34 = vld [vmem:[%s8693_s0 + $0x24] sm:$0xff]  ;;  %v4557_v35 = vld [vmem:[%s8693_s0 + $0x2c] sm:$0xff] }
  0x28   :  { %4281 = vmatmul.mubr.msk.f32.gmra.mrb[6].mxu0 %vm75_vm0, %v53_v47  ;;  %v4558_v36 = vld [vmem:[%s8693_s0 + $0x34] sm:$0xff]  ;;  %v27_v41 = vld [vmem:[%s8699_s6] ss:$8 sm:$0x3] }
  0x29   :  { %367 = vmatprep.mubr.f32.mxu0 %v8701_v7 }
  0x2c   :  { %4290 = vmatmul.mubr.msk.f32.vlgmr.msra.gmra.mrb[0].mxu0 %vm75_vm0, %v278_v52 }
  0x2d   :  { %373 = vmatprep.mubr.f32.mxu0 %v8701_v7  ;;  %5060 = vmatpush1.bf16.msra.mxu0 %v6271_v53 }
  0x2e   :  { %5062 = vmatprep.subr.bf16.mxu0 %v6273_v54 }
  0x30   :  { %4291 = vmatmul.mubr.msk.f32.gmra.mrb[2].mxu0 %vm75_vm0, %v279_v59 }
  0x31   :  { %379 = vmatprep.mubr.f32.mxu0 %v8701_v7  ;;  %5064 = vmatpush1.bf16.msra.mxu0 %v6293_v60 }
  0x32   :  { %5066 = vmatprep.subr.bf16.mxu0 %v6296_v61 }
  0x34   :  { %4292 = vmatmul.mubr.msk.f32.gmra.mrb[4].mxu0 %vm75_vm0, %v280_v62 }
  0x35   :  { %385 = vmatprep.mubr.f32.mxu0 %v8701_v7 }
  0x38   :  { %4293 = vmatmul.mubr.msk.f32.gmra.mrb[6].mxu0 %vm75_vm0, %v281_v63 }
  0x39   :  { %489 = vmatprep.mubr.f32.mxu0 %v8701_v7 }
  0x3c   :  { %4302 = vmatmul.mubr.msk.f32.vlgmr.msra.gmra.mrb[0].mxu0 %vm75_vm0, %v400_v5 }
  0x3d   :  { %495 = vmatprep.mubr.f32.mxu0 %v8701_v7  ;;  %5068 = vmatpush1.bf16.msra.mxu0 %v6327_v6 }
  0x3e   :  { %5070 = vmatprep.subr.bf16.mxu0 %v6329_v10 }
  0x40   :  { %4303 = vmatmul.mubr.msk.f32.gmra.mrb[2].mxu0 %vm75_vm0, %v401_v13 }
  0x41   :  { %501 = vmatprep.mubr.f32.mxu0 %v8701_v7  ;;  %5072 = vmatpush1.bf16.msra.mxu0 %v6343_v16 }
  0x42   :  { %5284 = vmatprep.subr.bf16.mxu0 %v6106_v3  ;;  %v523_v3 = vld [vmem:[%s8693_s0 + $0xc] sm:$0xff] }
  0x44   :  { %4304 = vmatmul.mubr.msk.f32.gmra.mrb[4].mxu0 %vm75_vm0, %v402_v17  ;;  %v4323_v17 = vld [vmem:[%s8695_s2 + $0x158] sm:$0xff] }
  0x45   :  { %507 = vmatprep.mubr.f32.mxu0 %v8701_v7 }
  0x48   :  { %4305 = vmatmul.mubr.msk.f32.gmra.mrb[6].mxu0 %vm75_vm0, %v403_v18  ;;  %v4325_v18 = vld [vmem:[%s8695_s2 + $0x168] sm:$0xff] }
  0x49   :  { %611 = vmatprep.mubr.f32.mxu0 %v8701_v7 }
  0x4c   :  { %4314 = vmatmul.mubr.msk.f32.vlgmr.msra.gmra.mrb[0].mxu0 %vm75_vm0, %v522_v19 }
  0x4d   :  { %617 = vmatprep.mubr.f32.mxu0 %v8701_v7  ;;  %5286 = vmatpush1.bf16.msra.mxu0 %v6119_v8  ;;  %v525_v8 = vld [vmem:[%s8693_s0 + $0x1c] sm:$0xf] }
  0x4e   :  { %5288 = vmatprep.subr.bf16.mxu0 %v6121_v9  ;;  %v4504_v9 = vld [vmem:[%s8693_s0 + $0x21] sm:$0xff] }
  0x50   :  { %4315 = vmatmul.mubr.msk.f32.gmra.mrb[2].mxu0 %vm75_vm0, %v523_v3 }
  0x51   :  { %623 = vmatprep.mubr.f32.mxu0 %v8701_v7  ;;  %5290 = vmatpush1.bf16.msra.mxu0 %v6137_v14  ;;  %v4505_v14 = vld [vmem:[%s8693_s0 + $0x29] sm:$0xff] }
  0x52   :  { %5292 = vmatprep.subr.bf16.mxu0 %v6140_v15  ;;  %v4506_v15 = vld [vmem:[%s8693_s0 + $0x31] sm:$0xff] }
  0x54   :  { %4316 = vmatmul.mubr.msk.f32.gmra.mrb[4].mxu0 %vm75_vm0, %v524_v20  ;;  %v4361_v20 = vld [vmem:[%s8695_s2 + $0x288] sm:$0xff] }
  0x55   :  { %629 = vmatprep.mubr.f32.mxu0 %v8701_v7 }
  0x58   :  { %4317 = vmatmul.mubr.msk.f32.gmra.mrb[6].mxu0 %vm75_vm0, %v525_v8 }
  0x59   :  { %1558 = vmatprep.mubr.f32.mxu0 %v8701_v7 }
  0x5c   :  { %4516 = vmatmul.mubr.msk.f32.vlgmr.msra.gmra.mrb[8].mxu0 %vm75_vm0, %v4504_v9 }
  0x5d   :  { %1564 = vmatprep.mubr.f32.mxu0 %v8701_v7  ;;  %5294 = vmatpush1.bf16.msra.mxu0 %v6158_v21  ;;  %v4507_v21 = vld [vmem:[%s8693_s0 + $0x39] sm:$0xf] }
  0x5e   :  { %5296 = vmatprep.subr.bf16.mxu0 %v6161_v22  ;;  %v4500_v22 = vld [vmem:[%s8693_s0 + $0x20] sm:$0xff] }
  0x60   :  { %4517 = vmatmul.mubr.msk.f32.gmra.mrb[10].mxu0 %vm75_vm0, %v4505_v14  ;;  %v6535_v14 = vpack.c.bf16 %v4325_v18, %v4323_v17  ;;  %v4354_v17 = vld [vmem:[%s8695_s2 + $0x250] sm:$0xff]  ;;  %v4356_v18 = vld [vmem:[%s8695_s2 + $0x260] sm:$0xff] }
  0x61   :  { %1570 = vmatprep.mubr.f32.mxu0 %v8701_v7  ;;  %5298 = vmatpush1.bf16.msra.mxu0 %v6181_v28  ;;  %v4526_v28 = vld [vmem:[%s8693_s0 + $0x32] sm:$0xff] }
  0x62   :  { %5300 = vmatprep.subr.bf16.mxu0 %v6184_v29  ;;  %v4527_v29 = vld [vmem:[%s8693_s0 + $0x3a] sm:$0xf] }
  0x64   :  { %4518 = vmatmul.mubr.msk.f32.gmra.mrb[12].mxu0 %vm75_vm0, %v4506_v15  ;;  %v4322_v15 = vld [vmem:[%s8695_s2 + $0x150] sm:$0xff] }
  0x65   :  { %1576 = vmatprep.mubr.f32.mxu0 %v8701_v7 }
  0x68   :  { %4519 = vmatmul.mubr.msk.f32.gmra.mrb[14].mxu0 %vm75_vm0, %v4507_v21  ;;  %v4324_v21 = vld [vmem:[%s8695_s2 + $0x160] sm:$0xff] }
  0x69   :  { %1659 = vmatprep.mubr.f32.mxu0 %v8701_v7 }
  0x6c   :  { %4520 = vmatmul.mubr.msk.f32.vlgmr.msra.gmra.mrb[8].mxu0 %vm75_vm0, %v4500_v22  ;;  %v4327_v22 = vld [vmem:[%s8695_s2 + $0x178] sm:$0xff] }
  0x6d   :  { %1665 = vmatprep.mubr.f32.mxu0 %v8701_v7  ;;  %5302 = vmatpush1.bf16.msra.mxu0 %v6215_v37  ;;  %v4559_v37 = vld [vmem:[%s8693_s0 + $0x3c] sm:$0xf] }
  0x6e   :  { %5304 = vmatprep.subr.bf16.mxu0 %v6217_v38  ;;  %v33_v38 = vlaneseq }
  0x70   :  { %4521 = vmatmul.mubr.msk.f32.gmra.mrb[10].mxu0 %vm75_vm0, %v4501_v23  ;;  %v6499_v39 = vshrl.u32 %v33_v38, 7  ;;  %v4329_v23 = vld [vmem:[%s8695_s2 + $0x188] sm:$0xff] }
  0x71   :  { %1671 = vmatprep.mubr.f32.mxu0 %v8701_v7  ;;  %5306 = vmatpush1.bf16.msra.mxu0 %v6237_v44 }
  0x72   :  { %5308 = vmatprep.subr.bf16.mxu0 %v6240_v45  ;;  %8721 = vst [vmem:[#allocation6_spill] sm:$0xff] %v6499_v39  ;;  %v8704_v40 = vsub.s32 0, %v6499_v39  ;;  %v8703_v42 = vsub.s32 1, %v6499_v39  ;;  %v38_v63 = vmul.u32 2, %v6499_v39  ;;  %v35_v0 = vadd.s32 8, %v6499_v39 }
  0x74   :  { %4522 = vmatmul.mubr.msk.f32.gmra.mrb[12].mxu0 %vm75_vm0, %v4502_v24  ;;  %v6508_v43 = vrot.slane %v27_v41, %v8704_v40  ;;  %v6512_v44 = vrot.slane %v27_v41, %v8703_v42  ;;  %v39_v11 = vmul.u32 2, %v35_v0  ;;  %v4348_v0 = vld [vmem:[%s8695_s2 + $0x220] sm:$0xff] }
  0x75   :  { %1677 = vmatprep.mubr.f32.mxu0 %v8701_v7 }
  0x78   :  { %4523 = vmatmul.mubr.msk.f32.gmra.mrb[14].mxu0 %vm75_vm0, %v4503_v25  ;;  %v6556_v25 = vpack.c.bf16 %v4324_v21, %v4322_v15 }
  0x79   :  { %1772 = vmatprep.mubr.f32.mxu0 %v8701_v7 }
  0x7c   :  { %4536 = vmatmul.mubr.msk.f32.vlgmr.msra.gmra.mrb[8].mxu0 %vm75_vm0, %v4524_v26  ;;  %v6559_v26 = vpack.c.bf16 %v4329_v23, %v4327_v22 }
  0x7d   :  { %1778 = vmatprep.mubr.f32.mxu0 %v8701_v7  ;;  %5310 = vmatpush1.bf16.msra.mxu0 %v6271_v53 }
  0x7e   :  { %5312 = vmatprep.subr.bf16.mxu0 %v6273_v54 }
  0x80   :  { %4537 = vmatmul.mubr.msk.f32.gmra.mrb[10].mxu0 %vm75_vm0, %v4525_v27  ;;  %v4326_v27 = vld [vmem:[%s8695_s2 + $0x170] sm:$0xff] }
  0x81   :  { %1784 = vmatprep.mubr.f32.mxu0 %v8701_v7  ;;  %5314 = vmatpush1.bf16.msra.mxu0 %v6293_v60 }
  0x82   :  { %5316 = vmatprep.subr.bf16.mxu0 %v6296_v61 }
  0x84   :  { %4538 = vmatmul.mubr.msk.f32.gmra.mrb[12].mxu0 %vm75_vm0, %v4526_v28  ;;  %v4328_v28 = vld [vmem:[%s8695_s2 + $0x180] sm:$0xff] }
  0x85   :  { %1790 = vmatprep.mubr.f32.mxu0 %v8701_v7 }
  0x88   :  { %4539 = vmatmul.mubr.msk.f32.gmra.mrb[14].mxu0 %vm75_vm0, %v4527_v29  ;;  %v4331_v29 = vld [vmem:[%s8695_s2 + $0x198] sm:$0xff] }
  0x89   :  { %1893 = vmatprep.mubr.f32.mxu0 %v8701_v7 }
  0x8c   :  { %4552 = vmatmul.mubr.msk.f32.vlgmr.msra.gmra.mrb[8].mxu0 %vm75_vm0, %v4540_v30  ;;  %v4333_v30 = vld [vmem:[%s8695_s2 + $0x1a8] sm:$0xff] }
  0x8d   :  { %1899 = vmatprep.mubr.f32.mxu0 %v8701_v7  ;;  %5318 = vmatpush1.bf16.msra.mxu0 %v6327_v6  ;;  %v37_v6 = vand.u32 127, %v33_v38 }
  0x8e   :  { %5320 = vmatprep.subr.bf16.mxu0 %v6329_v10  ;;  %v42_v10 = vadd.s32 1, %v38_v63 }
  0x8f   :  { %vm40_vm2 = vcmp.eq.s32.totalorder %v37_v6, %v38_v63  ;;  %vm41_vm7 = vcmp.eq.s32.totalorder %v37_v6, %v39_v11  ;;  %v4346_v63 = vld [vmem:[%s8695_s2 + $0x210] sm:$0xff] }
  0x90   :  { %4553 = vmatmul.mubr.msk.f32.gmra.mrb[10].mxu0 %vm75_vm0, %v4541_v31  ;;  %vm44_vm3 = vcmp.eq.s32.totalorder %v37_v6, %v42_v10  ;;  %v4352_v10 = vld [vmem:[%s8695_s2 + $0x240] sm:$0xff] }
  0x91   :  { %1905 = vmatprep.mubr.f32.mxu0 %v8701_v7  ;;  %5322 = vmatpush1.bf16.msra.mxu0 %v6343_v16  ;;  %v43_v16 = vadd.s32 1, %v39_v11  ;;  %vm46_vm6 = vmor %vm40_vm2, %vm44_vm3  ;;  %v4355_v11 = vld [vmem:[%s8695_s2 + $0x258] sm:$0xff]  ;;  %vm4075_vm2 = vcmask 982016   ;;  %vm4161_vm3 = vcmask 687104  }
  0x92   :  { %v6554_v24 = vsel %vm46_vm6, 0.5, %v8701_v7 }
  0x93   :  { %vm45_vm8 = vcmp.eq.s32.totalorder %v37_v6, %v43_v16  ;;  %v4350_v6 = vld [vmem:[%s8695_s2 + $0x230] sm:$0xff] }
  0x94   :  { %4554 = vmatmul.mubr.msk.f32.gmra.mrb[12].mxu0 %vm75_vm0, %v4542_v32  ;;  %vm47_vm10 = vmor %vm41_vm7, %vm45_vm8  ;;  %v6580_v32 = vpack.c.bf16 %v4328_v28, %v4326_v27 }
  0x95   :  { %1911 = vmatprep.mubr.f32.mxu0 %v8701_v7  ;;  %v6577_v31 = vsel %vm47_vm10, 0.5, %v8701_v7 }
  0x98   :  { %4555 = vmatmul.mubr.msk.f32.gmra.mrb[14].mxu0 %vm75_vm0, %v4543_v33  ;;  %v6583_v33 = vpack.c.bf16 %v4333_v30, %v4331_v29 }
  0x99   :  { %2014 = vmatprep.mubr.f32.mxu0 %v8701_v7 }
  0x9c   :  { %4568 = vmatmul.mubr.msk.f32.vlgmr.msra.gmra.mrb[8].mxu0 %vm75_vm0, %v4556_v34  ;;  %v4330_v34 = vld [vmem:[%s8695_s2 + $0x190] sm:$0xff] }
  0x9d   :  { %2020 = vmatprep.mubr.f32.mxu0 %v8701_v7 }
  0xa0   :  { %4569 = vmatmul.mubr.msk.f32.gmra.mrb[10].mxu0 %vm75_vm0, %v4557_v35  ;;  %v4332_v35 = vld [vmem:[%s8695_s2 + $0x1a0] sm:$0xff] }
  0xa1   :  { %2026 = vmatprep.mubr.f32.mxu0 %v8701_v7  ;;  %v6600_v38 = vpack.c.bf16 %v4332_v35, %v4330_v34 }
  0xa4   :  { %4570 = vmatmul.mubr.msk.f32.gmra.mrb[12].mxu0 %vm75_vm0, %v4558_v36  ;;  %v4335_v36 = vld [vmem:[%s8695_s2 + $0x1b8] sm:$0xff] }
  0xa5   :  { %2032 = vmatprep.mubr.f32.mxu0 %v8701_v7 }
  0xa8   :  { %4571 = vmatmul.mubr.msk.f32.gmra.mrb[14].mxu0 %vm75_vm0, %v4559_v37  ;;  %v4337_v37 = vld [vmem:[%s8695_s2 + $0x1c8] sm:$0xff] }
  0xa9   :  { %2133 = vmatprep.mubr.f32.mxu0 %v8701_v7  ;;  %v6603_v41 = vpack.c.bf16 %v4337_v37, %v4335_v36 }
 0x11f   :  { %v613_v45 = vpop.f32.mrb[0].mxu0 }
 0x120   :  { %v655_v46 = vadd.f32 %v6508_v43, %v613_v45  ;;  %v615_v47 = vpop.f32.mrb[1].mxu0  ;;  %v4334_v45 = vld [vmem:[%s8695_s2 + $0x1b0] sm:$0xff] }
 0x121   :  { %v656_v48 = vadd.f32 %v6512_v44, %v615_v47  ;;  %v4339_v47 = vld [vmem:[%s8695_s2 + $0x1d8] sm:$0xff] }
 0x122   :  { %5971 = vtanh.f32 %v655_v46  ;;  %v4336_v46 = vld [vmem:[%s8695_s2 + $0x1c0] sm:$0xff] }
 0x123   :  { %v619_v49 = vpop.f32.mrb[2].mxu0  ;;  %5973 = vtanh.f32 %v656_v48  ;;  %v4341_v48 = vld [vmem:[%s8695_s2 + $0x1e8] sm:$0xff] }
 0x124   :  { %v657_v50 = vadd.f32 %v6508_v43, %v619_v49  ;;  %v621_v51 = vpop.f32.mrb[3].mxu0  ;;  %v6618_v49 = vpack.c.bf16 %v4336_v46, %v4334_v45 }
 0x125   :  { %v658_v52 = vadd.f32 %v6512_v44, %v621_v51  ;;  %v4338_v51 = vld [vmem:[%s8695_s2 + $0x1d0] sm:$0xff] }
 0x126   :  { %5975 = vtanh.f32 %v657_v50  ;;  %v6621_v50 = vpack.c.bf16 %v4341_v48, %v4339_v47 }
 0x127   :  { %5977 = vtanh.f32 %v658_v52  ;;  %v625_v53 = vpop.f32.mrb[4].mxu0  ;;  %v4340_v52 = vld [vmem:[%s8695_s2 + $0x1e0] sm:$0xff] }
 0x128   :  { %v659_v54 = vadd.f32 %v6508_v43, %v625_v53  ;;  %v627_v55 = vpop.f32.mrb[5].mxu0  ;;  %v4343_v53 = vld [vmem:[%s8695_s2 + $0x1f8] sm:$0xff] }
 0x129   :  { %v660_v56 = vadd.f32 %v6512_v44, %v627_v55  ;;  %v6636_v55 = vpack.c.bf16 %v4340_v52, %v4338_v51 }
 0x12a   :  { %5979 = vtanh.f32 %v659_v54  ;;  %v4345_v54 = vld [vmem:[%s8695_s2 + $0x208] sm:$0xff] }
 0x12b   :  { %v631_v57 = vpop.f32.mrb[6].mxu0  ;;  %5981 = vtanh.f32 %v660_v56  ;;  %v6639_v56 = vpack.c.bf16 %v4345_v54, %v4343_v53 }
 0x12c   :  { %v661_v58 = vadd.f32 %v6508_v43, %v631_v57  ;;  %v633_v59 = vpop.f32.mrb[7].mxu0  ;;  %v5972_v61 = vpop.eup %5971  ;;  %v4342_v57 = vld [vmem:[%s8695_s2 + $0x1f0] sm:$0xff] }
 0x12d   :  { %v662_v60 = vadd.f32 %v6512_v44, %v633_v59  ;;  %v5974_v62 = vpop.eup %5973  ;;  %v4347_v59 = vld [vmem:[%s8695_s2 + $0x218] sm:$0xff] }
 0x12e   :  { %5983 = vtanh.f32 %v661_v58  ;;  %v4344_v58 = vld [vmem:[%s8695_s2 + $0x200] sm:$0xff] }
 0x12f   :  { %5985 = vtanh.f32 %v662_v60  ;;  %v4349_v60 = vld [vmem:[%s8695_s2 + $0x228] sm:$0xff] }
 0x130   :  { %v5976_v1 = vpop.eup %5975 }
 0x131   :  { %v5978_v2 = vpop.eup %5977  ;;  %v5075_v4 = vpack.c.bf16 %v5976_v1, %v5972_v61  ;;  %v6654_v61 = vpack.c.bf16 %v4344_v58, %v4342_v57  ;;  %v4351_v1 = vld [vmem:[%s8695_s2 + $0x238] sm:$0xff] }
 0x132   :  { %v5073_v5 = vpack.c.bf16 %v5978_v2, %v5974_v62  ;;  %v6657_v62 = vpack.c.bf16 %v4349_v60, %v4347_v59  ;;  %v4353_v2 = vld [vmem:[%s8695_s2 + $0x248] sm:$0xff] }
 0x134   :  { %5074 = vmatprep.subr.bf16.mxu1 %v5073_v5  ;;  %v5980_v12 = vpop.eup %5979  ;;  %v6675_v5 = vpack.c.bf16 %v4353_v2, %v4351_v1 }
 0x135   :  { %5076 = vmatpush1.bf16.msra.mxu1 %v5075_v4  ;;  %v5982_v13 = vpop.eup %5981  ;;  %v6672_v4 = vpack.c.bf16 %v4348_v0, %v4346_v63  ;;  %v4362_v63 = vld [vmem:[%s8695_s2 + $0x290] sm:$0xff]  ;;  %v763_v0 = vld [vmem:[%s8695_s2 + $0x8] sm:$0xff] }
 0x138   :  { %v5984_v19 = vpop.eup %5983 }
 0x139   :  { %v5986_v3 = vpop.eup %5985  ;;  %v5080_v8 = vpack.c.bf16 %v5984_v19, %v5980_v12  ;;  %v4357_v12 = vld [vmem:[%s8695_s2 + $0x268] sm:$0xff]  ;;  %v6702_v19 = vpack.c.bf16 %v4356_v18, %v4354_v17 }
 0x13a   :  { %v5077_v9 = vpack.c.bf16 %v5986_v3, %v5982_v13  ;;  %v6690_v13 = vpack.c.bf16 %v4352_v10, %v4350_v6  ;;  %v6693_v16 = vpack.c.bf16 %v4357_v12, %v4355_v11 }
 0x13c   :  { %5079 = vmatprep.subr.msk.bf16.mxu1 %vm6531_vm5, %v5077_v9 }
 0x13d   :  { %5082 = vmatpush1.bf16.msk.msra.mxu1 %vm6531_vm5, %v5080_v8 }
 0x13e   :  { %5084 = vmatprep.subr.bf16.mxu1 %v6535_v14 }
 0x140   :  { %4320 = vmatmul.mubr.msk.f32.vlgmr.msra.gmra.mrb[0].mxu1 %vm671_vm9, %v6554_v24 }
 0x141   :  { %755 = vmatprep.mubr.f32.mxu1 %v8701_v7  ;;  %5086 = vmatpush1.bf16.msra.mxu1 %v6556_v25 }
 0x142   :  { %5088 = vmatprep.subr.bf16.mxu1 %v6559_v26 }
 0x144   :  { %4321 = vmatmul.mubr.msk.f32.gmra.mrb[2].mxu1 %vm671_vm9, %v6577_v31 }
 0x145   :  { %5090 = vmatpush1.bf16.msra.mxu1 %v6580_v32 }
 0x146   :  { %5092 = vmatprep.subr.bf16.mxu1 %v6583_v33 }
 0x149   :  { %5094 = vmatpush1.bf16.msra.mxu1 %v6600_v38 }
 0x14a   :  { %5096 = vmatprep.subr.bf16.mxu1 %v6603_v41 }
 0x14d   :  { %5098 = vmatpush1.bf16.msra.mxu1 %v6618_v49 }
 0x14e   :  { %5100 = vmatprep.subr.bf16.mxu1 %v6621_v50 }
 0x151   :  { %5102 = vmatpush1.bf16.msra.mxu1 %v6636_v55 }
 0x152   :  { %5104 = vmatprep.subr.bf16.mxu1 %v6639_v56 }
 0x155   :  { %5106 = vmatpush1.bf16.msra.mxu1 %v6654_v61 }
 0x156   :  { %5108 = vmatprep.subr.bf16.mxu1 %v6657_v62 }
 0x159   :  { %5110 = vmatpush1.bf16.msra.mxu1 %v6672_v4 }
 0x15a   :  { %5112 = vmatprep.subr.bf16.mxu1 %v6675_v5 }
 0x15d   :  { %5114 = vmatpush1.bf16.msra.mxu1 %v6690_v13 }
 0x15e   :  { %5116 = vmatprep.subr.bf16.mxu1 %v6693_v16 }
 0x161   :  { %5118 = vmatpush1.bf16.msra.mxu1 %v6702_v19 }
 0x16f   :  { %v2016_v3 = vpop.f32.mrb[8].mxu0 }
 0x170   :  { %v2047_v8 = vadd.f32 %v2016_v3, %v6508_v43  ;;  %v2018_v9 = vpop.f32.mrb[9].mxu0 }
 0x171   :  { %v2048_v15 = vadd.f32 %v2018_v9, %v6512_v44 }
 0x172   :  { %5987 = vtanh.f32 %v2047_v8 }
 0x173   :  { %v2022_v21 = vpop.f32.mrb[10].mxu0  ;;  %5989 = vtanh.f32 %v2048_v15 }
 0x174   :  { %v2049_v22 = vadd.f32 %v2022_v21, %v6508_v43  ;;  %v2024_v23 = vpop.f32.mrb[11].mxu0 }
 0x175   :  { %v2050_v27 = vadd.f32 %v2024_v23, %v6512_v44 }
 0x176   :  { %5991 = vtanh.f32 %v2049_v22 }
 0x177   :  { %5993 = vtanh.f32 %v2050_v27  ;;  %v2028_v28 = vpop.f32.mrb[12].mxu0 }
 0x178   :  { %v2051_v29 = vadd.f32 %v2028_v28, %v6508_v43  ;;  %v2030_v30 = vpop.f32.mrb[13].mxu0 }
 0x179   :  { %v2052_v34 = vadd.f32 %v2030_v30, %v6512_v44  ;;  %v766_v30 = vld [vmem:[%s8695_s2 + $0x20] sm:$0xff] }
 0x17a   :  { %5995 = vtanh.f32 %v2051_v29 }
 0x17b   :  { %v2034_v35 = vpop.f32.mrb[14].mxu0  ;;  %5997 = vtanh.f32 %v2052_v34  ;;  %v768_v34 = vld [vmem:[%s8695_s2 + $0x30] sm:$0xff] }
 0x17c   :  { %v2053_v36 = vadd.f32 %v2034_v35, %v6508_v43  ;;  %v2036_v37 = vpop.f32.mrb[15].mxu0  ;;  %v5988_v46 = vpop.eup %5987 }
 0x17d   :  { %v2054_v45 = vadd.f32 %v2036_v37, %v6512_v44  ;;  %v5990_v47 = vpop.eup %5989  ;;  %v4359_v44 = vld [vmem:[%s8695_s2 + $0x278] sm:$0xff] }
 0x17e   :  { %5999 = vtanh.f32 %v2053_v36 }
 0x17f   :  { %6001 = vtanh.f32 %v2054_v45  ;;  %v771_v45 = vld [vmem:[%s8695_s2 + $0x48] sm:$0xff] }
 0x180   :  { %v5992_v48 = vpop.eup %5991 }
 0x181   :  { %v5994_v51 = vpop.eup %5993  ;;  %v5325_v52 = vpack.c.bf16 %v5992_v48, %v5988_v46  ;;  %v773_v46 = vld [vmem:[%s8695_s2 + $0x58] sm:$0xff] }
 0x182   :  { %v5323_v53 = vpack.c.bf16 %v5994_v51, %v5990_v47  ;;  %v6845_v47 = vpack.c.bf16 %v768_v34, %v766_v30  ;;  %v6849_v48 = vpack.c.bf16 %v773_v46, %v771_v45  ;;  %v770_v51 = vld [vmem:[%s8695_s2 + $0x40] sm:$0xff]  ;;  %v796_v30 = vld [vmem:[%s8695_s2 + $0x110] sm:$0xff]  ;;  %v799_v34 = vld [vmem:[%s8695_s2 + $0x128] sm:$0xff] }
 0x183   :  { %v801_v45 = vld [vmem:[%s8695_s2 + $0x138] sm:$0xff] }
 0x184   :  { %5324 = vmatprep.subr.bf16.mxu0 %v5323_v53  ;;  %v5996_v54 = vpop.eup %5995  ;;  %v775_v53 = vld [vmem:[%s8695_s2 + $0x68] sm:$0xff] }
 0x185   :  { %5326 = vmatpush1.bf16.msra.mxu0 %v5325_v52  ;;  %v5998_v57 = vpop.eup %5997  ;;  %v772_v52 = vld [vmem:[%s8695_s2 + $0x50] sm:$0xff] }
 0x188   :  { %v6000_v58 = vpop.eup %5999 }
 0x189   :  { %v6002_v59 = vpop.eup %6001  ;;  %v5330_v60 = vpack.c.bf16 %v6000_v58, %v5996_v54  ;;  %v777_v54 = vld [vmem:[%s8695_s2 + $0x78] sm:$0xff] }
 0x18a   :  { %v5327_v43 = vpack.c.bf16 %v6002_v59, %v5998_v57  ;;  %v6864_v57 = vpack.c.bf16 %v772_v52, %v770_v51  ;;  %v6868_v58 = vpack.c.bf16 %v777_v54, %v775_v53  ;;  %v774_v59 = vld [vmem:[%s8695_s2 + $0x60] sm:$0xff]  ;;  %v6976_v51 = vpack.c.bf16 %v801_v45, %v799_v34  ;;  %v800_v53 = vld [vmem:[%s8695_s2 + $0x130] sm:$0xff] }
 0x18b   :  { %v798_v52 = vld [vmem:[%s8695_s2 + $0x120] sm:$0xff]  ;;  %v4382_v45 = vld [vmem:[%s8695_s2 + $0x310] sm:$0xff] }
 0x18c   :  { %5329 = vmatprep.subr.msk.bf16.mxu0 %vm6531_vm5, %v5327_v43  ;;  %v779_v43 = vld [vmem:[%s8695_s2 + $0x88] sm:$0xff]  ;;  %v6985_v54 = vpack.c.bf16 %v800_v53, %v798_v52  ;;  %v4380_v34 = vld [vmem:[%s8695_s2 + $0x300] sm:$0xff] }
 0x18d   :  { %5332 = vmatpush1.bf16.msk.msra.mxu0 %vm6531_vm5, %v5330_v60  ;;  %v776_v60 = vld [vmem:[%s8695_s2 + $0x70] sm:$0xff]  ;;  %v4385_v52 = vld [vmem:[%s8695_s2 + $0x328] sm:$0xff]  ;;  %v7081_v53 = vpack.c.bf16 %v4382_v45, %v4380_v34 }
 0x18e   :  { %5334 = vmatprep.subr.bf16.mxu0 %v6535_v14  ;;  %v5119_v14 = vpack.c.bf16 %v4361_v20, %v4359_v44  ;;  %v781_v44 = vld [vmem:[%s8695_s2 + $0x98] sm:$0xff]  ;;  %v6883_v20 = vpack.c.bf16 %v776_v60, %v774_v59  ;;  %v6991_v59 = vld [vmem:[%s8695_s2 + $0x148] sm:$0xff]  ;;  %v4394_v34 = vld [vmem:[%s8695_s2 + $0x370] sm:$0xff] }
 0x18f   :  { %v4369_v60 = vld [vmem:[%s8695_s2 + $0x2a8] sm:$0xff] }
 0x190   :  { %4574 = vmatmul.mubr.msk.f32.vlgmr.msra.gmra.mrb[16].mxu0 %vm671_vm9, %v6554_v24  ;;  %v4358_v24 = vld [vmem:[%s8695_s2 + $0x270] sm:$0xff]  ;;  %5120 = vmatprep.subr.bf16.mxu1 %v5119_v14  ;;  %v4397_v45 = vld [vmem:[%s8695_s2 + $0x388] sm:$0xff] }
 0x191   :  { %2139 = vmatprep.mubr.f32.mxu0 %v8701_v7  ;;  %5336 = vmatpush1.bf16.msra.mxu0 %v6556_v25  ;;  %v4360_v25 = vld [vmem:[%s8695_s2 + $0x280] sm:$0xff] }
 0x192   :  { %5338 = vmatprep.subr.bf16.mxu0 %v6559_v26  ;;  %v5121_v26 = vpack.c.bf16 %v4360_v25, %v4358_v24  ;;  %v778_v24 = vld [vmem:[%s8695_s2 + $0x80] sm:$0xff]  ;;  %v780_v25 = vld [vmem:[%s8695_s2 + $0x90] sm:$0xff] }
 0x194   :  { %4575 = vmatmul.mubr.msk.f32.gmra.mrb[18].mxu0 %vm671_vm9, %v6577_v31  ;;  %5122 = vmatpush1.bf16.msra.mxu1 %v5121_v26  ;;  %v4363_v31 = vld [vmem:[%s8695_s2 + $0x298] sm:$0xff] }
 0x195   :  { %5340 = vmatpush1.bf16.msra.mxu0 %v6580_v32  ;;  %905 = vmatprep.subr.mxu1 %v4363_v31  ;;  %v765_v32 = vld [vmem:[%s8695_s2 + $0x18] sm:$0xff] }
 0x196   :  { %5342 = vmatprep.subr.bf16.mxu0 %v6583_v33  ;;  %v5123_v33 = vpack.c.bf16 %v765_v32, %v763_v0  ;;  %v782_v32 = vld [vmem:[%s8695_s2 + $0xa0] sm:$0xff] }
 0x198   :  { %906 = vmatpush1.msra.mxu1 %v4362_v63 }
 0x199   :  { %5344 = vmatpush1.bf16.msra.mxu0 %v6600_v38  ;;  %5124 = vmatprep.subr.bf16.mxu1 %v5123_v33  ;;  %v762_v38 = vld [vmem:[%s8695_s2] sm:$0xff] }
 0x19a   :  { %5346 = vmatprep.subr.bf16.mxu0 %v6603_v41  ;;  %v764_v41 = vld [vmem:[%s8695_s2 + $0x10] sm:$0xff] }
 0x19d   :  { %5348 = vmatpush1.bf16.msra.mxu0 %v6618_v49  ;;  %v767_v49 = vld [vmem:[%s8695_s2 + $0x28] sm:$0xff] }
 0x19e   :  { %5350 = vmatprep.subr.bf16.mxu0 %v6621_v50  ;;  %v769_v50 = vld [vmem:[%s8695_s2 + $0x38] sm:$0xff] }
 0x1a1   :  { %5352 = vmatpush1.bf16.msra.mxu0 %v6636_v55 }
 0x1a2   :  { %5354 = vmatprep.subr.bf16.mxu0 %v6639_v56 }
 0x1a5   :  { %5356 = vmatpush1.bf16.msra.mxu0 %v6654_v61  ;;  %v6779_v61 = vpack.c.bf16 %v764_v41, %v762_v38  ;;  %v787_v38 = vld [vmem:[%s8695_s2 + $0xc8] sm:$0xff]  ;;  %v789_v41 = vld [vmem:[%s8695_s2 + $0xd8] sm:$0xff] }
 0x1a6   :  { %5358 = vmatprep.subr.bf16.mxu0 %v6657_v62  ;;  %v6781_v62 = vpack.c.bf16 %v769_v50, %v767_v49  ;;  %v6922_v50 = vpack.c.bf16 %v789_v41, %v787_v38  ;;  %v4372_v41 = vld [vmem:[%s8695_s2 + $0x2c0] sm:$0xff] }
 0x1a9   :  { %5360 = vmatpush1.bf16.msra.mxu0 %v6672_v4 }
 0x1aa   :  { %5362 = vmatprep.subr.bf16.mxu0 %v6675_v5 }
 0x1ad   :  { %5364 = vmatpush1.bf16.msra.mxu0 %v6690_v13 }
 0x1ae   :  { %5366 = vmatprep.subr.bf16.mxu0 %v6693_v16 }
 0x1b1   :  { %5368 = vmatpush1.bf16.msra.mxu0 %v6702_v19 }
 0x1b2   :  { %5370 = vmatprep.subr.bf16.mxu0 %v5119_v14  ;;  %v6886_v14 = vpack.c.bf16 %v781_v44, %v779_v43  ;;  %v4371_v43 = vld [vmem:[%s8695_s2 + $0x2b8] sm:$0xff]  ;;  %v4368_v44 = vld [vmem:[%s8695_s2 + $0x2a0] sm:$0xff] }
 0x1b5   :  { %5372 = vmatpush1.bf16.msra.mxu0 %v5121_v26  ;;  %v783_v26 = vld [vmem:[%s8695_s2 + $0xa8] sm:$0xff] }
 0x1b6   :  { %2286 = vmatprep.subr.mxu0 %v4363_v31  ;;  %v785_v31 = vld [vmem:[%s8695_s2 + $0xb8] sm:$0xff] }
 0x1b7   :  { %v6904_v0 = vpack.c.bf16 %v785_v31, %v783_v26  ;;  %v4375_v26 = vld [vmem:[%s8695_s2 + $0x2d8] sm:$0xff]  ;;  %v7016_v31 = vld [vmem:[%s8695_s2 + $0x140] sm:$0xff] }
 0x1b9   :  { %2287 = vmatpush1.msra.mxu0 %v4362_v63  ;;  %v6901_v63 = vpack.c.bf16 %v780_v25, %v778_v24  ;;  %v4370_v24 = vld [vmem:[%s8695_s2 + $0x2b0] sm:$0xff]  ;;  %v4373_v25 = vld [vmem:[%s8695_s2 + $0x2c8] sm:$0xff] }
 0x1ba   :  { %5374 = vmatprep.subr.bf16.mxu0 %v5123_v33  ;;  %v784_v33 = vld [vmem:[%s8695_s2 + $0xb0] sm:$0xff]  ;;  %v7022_v38 = vpack.c.bf16 %v4375_v26, %v4373_v25  ;;  %v4391_v25 = vld [vmem:[%s8695_s2 + $0x358] sm:$0xff] }
 0x1bb   :  { %v6919_v49 = vpack.c.bf16 %v784_v33, %v782_v32  ;;  %v7018_v32 = vpack.c.bf16 %v4371_v43, %v4369_v60  ;;  %v7020_v33 = vpack.c.bf16 %v4370_v24, %v4368_v44  ;;  %v4384_v43 = vld [vmem:[%s8695_s2 + $0x320] sm:$0xff]  ;;  %v4386_v44 = vld [vmem:[%s8695_s2 + $0x330] sm:$0xff]  ;;  %v4389_v24 = vld [vmem:[%s8695_s2 + $0x348] sm:$0xff] }
 0x1bc   :  { %v7099_v26 = vpack.c.bf16 %v4386_v44, %v4384_v43  ;;  %v4396_v44 = vld [vmem:[%s8695_s2 + $0x380] sm:$0xff] }
 0x213   :  { %v6777_v55 = vpop.f32.mrb[0].mxu1 }
 0x214   :  { %v753_v56 = vpop.f32.mrb[1].mxu1  ;;  %v852_v1 = vrot.slane %v6777_v55, 1  ;;  %v1067_v2 = vrot.slane %v6777_v55, 2  ;;  %v1204_v4 = vrot.slane %v6777_v55, 3  ;;  %v1340_v5 = vrot.slane %v6777_v55, 4 }
 0x215   :  { %v855_v10 = vrot.slane %v753_v56, 1  ;;  %v1070_v11 = vrot.slane %v753_v56, 2  ;;  %v1207_v12 = vrot.slane %v753_v56, 3  ;;  %v1343_v13 = vrot.slane %v753_v56, 4 }
 0x217   :  { %v6787_v6 = vpop.f32.mrb[2].mxu1 }
 0x218   :  { %v853_v16 = vrot.slane %v6787_v6, 1  ;;  %v8709_v17 = vrot.slane %v6787_v6, 2  ;;  %v8707_v18 = vrot.slane %v6787_v6, 3  ;;  %v8705_v19 = vrot.slane %v6787_v6, 4  ;;  %v6793_v3 = vpop.f32.mrb[3].mxu1 }
 0x219   :  { %v856_v8 = vrot.slane %v6793_v3, 1  ;;  %v8710_v9 = vrot.slane %v6793_v3, 2  ;;  %v8708_v15 = vrot.slane %v6793_v3, 3  ;;  %v8706_v21 = vrot.slane %v6793_v3, 4 }
 0x21a   :  { %v854_v22 = vsel %vm851_vm11, %v852_v1, %v853_v16  ;;  %v6803_v23 = vsel %vm1066_vm13, %v1067_v2, %v8709_v17  ;;  %v6808_v27 = vsel %vm1203_vm14, %v1204_v4, %v8707_v18  ;;  %v6813_v28 = vsel %vm678_vm1, %v1340_v5, %v8705_v19  ;;  %v788_v1 = vld [vmem:[%s8695_s2 + $0xd0] sm:$0xff]  ;;  %v791_v2 = vld [vmem:[%s8695_s2 + $0xe8] sm:$0xff]  ;;  %v793_v4 = vld [vmem:[%s8695_s2 + $0xf8] sm:$0xff] }
 0x21b   :  { %8724 = vst [vmem:[#allocation7_spill] sm:$0xff] %v6813_v28  ;;  %v857_v29 = vsel %vm851_vm11, %v855_v10, %v856_v8  ;;  %v6825_v35 = vsel %vm1066_vm13, %v1070_v11, %v8710_v9  ;;  %v6830_v36 = vsel %vm1203_vm14, %v1207_v12, %v8708_v15  ;;  %v6835_v37 = vsel %vm678_vm1, %v1343_v13, %v8706_v21  ;;  %v790_v11 = vld [vmem:[%s8695_s2 + $0xe0] sm:$0xff]  ;;  %v792_v12 = vld [vmem:[%s8695_s2 + $0xf0] sm:$0xff]  ;;  %v795_v13 = vld [vmem:[%s8695_s2 + $0x108] sm:$0xff] }
 0x21c   :  { %4364 = vmatprep.mubr.msk.f32.mxu1 %vm860_vm12, %v857_v29  ;;  %v6940_v10 = vpack.c.bf16 %v793_v4, %v791_v2  ;;  %v794_v29 = vld [vmem:[%s8695_s2 + $0x100] sm:$0xff]  ;;  %v4379_v2 = vld [vmem:[%s8695_s2 + $0x2f8] sm:$0xff] }
 0x21d   :  { %930 = vmatmul.mubr.f32.vlgmr.msra.gmra.mrb[4].mxu1 %v854_v22  ;;  %v6973_v46 = vpack.c.bf16 %v796_v30, %v794_v29  ;;  %v4413_v9 = vld [vmem:[%s8695_s2 + $0x3f8] sm:$0xff] }
 0x21e   :  { %5126 = vmatpush1.bf16.msra.mxu1 %v6779_v61  ;;  %4365 = vmatprep.mubr.msk.f32.mxu1 %vm860_vm12, %v856_v8  ;;  %v6955_v8 = vpack.c.bf16 %v792_v12, %v790_v11  ;;  %v4376_v12 = vld [vmem:[%s8695_s2 + $0x2e0] sm:$0xff] }
 0x21f   :  { %5128 = vmatprep.subr.bf16.mxu1 %v6781_v62 }
 0x221   :  { %936 = vmatmul.mubr.f32.gmra.mrb[6].mxu1 %v853_v16  ;;  %v797_v16 = vld [vmem:[%s8695_s2 + $0x118] sm:$0xff] }
 0x222   :  { %5130 = vmatpush1.bf16.msra.mxu1 %v6845_v47  ;;  %4366 = vmatprep.mubr.msk.f32.mxu1 %vm860_vm12, %v753_v56  ;;  %v786_v56 = vld [vmem:[%s8695_s2 + $0xc0] sm:$0xff]  ;;  %v6958_v22 = vpack.c.bf16 %v797_v16, %v795_v13  ;;  %v4378_v13 = vld [vmem:[%s8695_s2 + $0x2f0] sm:$0xff]  ;;  %v4383_v16 = vld [vmem:[%s8695_s2 + $0x318] sm:$0xff] }
 0x223   :  { %5132 = vmatprep.subr.bf16.mxu1 %v6849_v48  ;;  %v6937_v5 = vpack.c.bf16 %v788_v1, %v786_v56  ;;  %v4374_v56 = vld [vmem:[%s8695_s2 + $0x2d0] sm:$0xff]  ;;  %v4377_v1 = vld [vmem:[%s8695_s2 + $0x2e8] sm:$0xff]  ;;  %v7061_v29 = vpack.c.bf16 %v4378_v13, %v4376_v12  ;;  %v4395_v12 = vld [vmem:[%s8695_s2 + $0x378] sm:$0xff] }
 0x224   :  { %v7040_v4 = vpack.c.bf16 %v4374_v56, %v4372_v41  ;;  %v7045_v11 = vpack.c.bf16 %v4379_v2, %v4377_v1  ;;  %v7102_v41 = vpack.c.bf16 %v4391_v25, %v4389_v24  ;;  %v4388_v56 = vld [vmem:[%s8695_s2 + $0x340] sm:$0xff]  ;;  %v4390_v1 = vld [vmem:[%s8695_s2 + $0x350] sm:$0xff]  ;;  %v4393_v2 = vld [vmem:[%s8695_s2 + $0x368] sm:$0xff] }
 0x225   :  { %v7117_v13 = vpack.c.bf16 %v4390_v1, %v4388_v56  ;;  %v4398_v24 = vld [vmem:[%s8695_s2 + $0x390] sm:$0xff]  ;;  %v4401_v25 = vld [vmem:[%s8695_s2 + $0x3a8] sm:$0xff]  ;;  %v4403_v56 = vld [vmem:[%s8695_s2 + $0x3b8] sm:$0xff] }
 0x226   :  { %5134 = vmatpush1.bf16.msra.mxu1 %v6864_v57  ;;  %v7153_v1 = vpack.c.bf16 %v4398_v24, %v4396_v44  ;;  %v4406_v44 = vld [vmem:[%s8695_s2 + $0x3d0] sm:$0xff] }
 0x227   :  { %5136 = vmatprep.subr.bf16.mxu1 %v6868_v58  ;;  %8725 = vst [vmem:[#allocation8_spill] sm:$0xff] %v7117_v13 }
 0x228   :  { %8729 = vst [vmem:[#allocation12_spill] sm:$0xff] %v7153_v1 }
 0x22a   :  { %5138 = vmatpush1.bf16.msra.mxu1 %v6883_v20 }
 0x22b   :  { %5140 = vmatprep.subr.bf16.mxu1 %v6886_v14 }
 0x22e   :  { %5142 = vmatpush1.bf16.msra.mxu1 %v6901_v63 }
 0x22f   :  { %5144 = vmatprep.subr.bf16.mxu1 %v6904_v0 }
 0x232   :  { %5146 = vmatpush1.bf16.msra.mxu1 %v6919_v49 }
 0x233   :  { %5148 = vmatprep.subr.bf16.mxu1 %v6922_v50 }
 0x236   :  { %5150 = vmatpush1.bf16.msra.mxu1 %v6937_v5 }
 0x237   :  { %5152 = vmatprep.subr.bf16.mxu1 %v6940_v10 }
 0x23a   :  { %5154 = vmatpush1.bf16.msra.mxu1 %v6955_v8 }
 0x23b   :  { %5156 = vmatprep.subr.bf16.mxu1 %v6958_v22 }
 0x23e   :  { %5158 = vmatpush1.bf16.msra.mxu1 %v6973_v46 }
 0x23f   :  { %5160 = vmatprep.subr.bf16.mxu1 %v6976_v51 }
 0x242   :  { %5162 = vmatpush1.bf16.msra.mxu1 %v6985_v54 }
 0x243   :  { %986 = vmatprep.subr.mxu1 %v6991_v59 }
 0x246   :  { %987 = vmatpush1.msra.mxu1 %v7016_v31 }
 0x247   :  { %5164 = vmatprep.subr.bf16.mxu1 %v7018_v32  ;;  %1011 = vmatmul.mubr.f32.vlgmr.msra.gmra.mrb[4].mxu1 %v6777_v55  ;;  %v4381_v55 = vld [vmem:[%s8695_s2 + $0x308] sm:$0xff] }
 0x248   :  { %5166 = vmatpush1.bf16.msra.mxu1 %v7020_v33  ;;  %4367 = vmatprep.mubr.msk.f32.mxu1 %vm860_vm12, %v6793_v3  ;;  %v7066_v30 = vpack.c.bf16 %v4383_v16, %v4381_v55  ;;  %v7120_v55 = vpack.c.bf16 %v4395_v12, %v4393_v2  ;;  %v4392_v16 = vld [vmem:[%s8695_s2 + $0x360] sm:$0xff]  ;;  %v7156_v2 = vpack.c.bf16 %v4403_v56, %v4401_v25 }
 0x249   :  { %5168 = vmatprep.subr.bf16.mxu1 %v7022_v38  ;;  %v4400_v12 = vld [vmem:[%s8695_s2 + $0x3a0] sm:$0xff] }
 0x24a   :  { %8726 = vst [vmem:[#allocation9_spill] sm:$0xff] %v7120_v55  ;;  %8730 = vst [vmem:[#allocation13_spill] sm:$0xff] %v7156_v2 }
 0x24b   :  { %1017 = vmatmul.mubr.f32.gmra.mrb[6].mxu1 %v6787_v6 }
 0x24c   :  { %5170 = vmatpush1.bf16.msra.mxu1 %v7040_v4  ;;  %4410 = vmatprep.mubr.msk.f32.mxu1 %vm860_vm12, %v6825_v35  ;;  %v4387_v35 = vld [vmem:[%s8695_s2 + $0x338] sm:$0xff] }
 0x24d   :  { %5172 = vmatprep.subr.bf16.mxu1 %v7045_v11  ;;  %v7084_v60 = vpack.c.bf16 %v4387_v35, %v4385_v52  ;;  %v4399_v52 = vld [vmem:[%s8695_s2 + $0x398] sm:$0xff]  ;;  %v7135_v35 = vpack.c.bf16 %v4394_v34, %v4392_v16  ;;  %v4402_v16 = vld [vmem:[%s8695_s2 + $0x3b0] sm:$0xff]  ;;  %v4405_v34 = vld [vmem:[%s8695_s2 + $0x3c8] sm:$0xff] }
 0x24e   :  { %v7138_v43 = vpack.c.bf16 %v4399_v52, %v4397_v45  ;;  %v4407_v45 = vld [vmem:[%s8695_s2 + $0x3d8] sm:$0xff]  ;;  %v4404_v52 = vld [vmem:[%s8695_s2 + $0x3c0] sm:$0xff]  ;;  %v7181_v56 = vpack.c.bf16 %v4402_v16, %v4400_v12 }
 0x24f   :  { %8727 = vst [vmem:[#allocation10_spill] sm:$0xff] %v7135_v35  ;;  %v7184_v7 = vpack.c.bf16 %v4407_v45, %v4405_v34  ;;  %v7186_v42 = vpack.c.bf16 %v4406_v44, %v4404_v52  ;;  %v7214_v44 = vld [vmem:[%s8695_s2 + $0x3e8] sm:$0xff] }
 0x250   :  { %5174 = vmatpush1.bf16.msra.mxu1 %v7061_v29  ;;  %8728 = vst [vmem:[#allocation11_spill] sm:$0xff] %v7138_v43  ;;  %8731 = vst [vmem:[#allocation14_spill] sm:$0xff] %v7181_v56  ;;  %v4415_v52 = vld [vmem:[%s8695_s2 + $0x408] sm:$0xff] }
 0x251   :  { %5176 = vmatprep.subr.bf16.mxu1 %v7066_v30  ;;  %8732 = vst [vmem:[#allocation15_spill] sm:$0xff] %v7184_v7 }
 0x254   :  { %5178 = vmatpush1.bf16.msra.mxu1 %v7081_v53 }
 0x255   :  { %5180 = vmatprep.subr.bf16.mxu1 %v7084_v60 }
 0x258   :  { %5182 = vmatpush1.bf16.msra.mxu1 %v7099_v26 }
 0x259   :  { %5184 = vmatprep.subr.bf16.mxu1 %v7102_v41 }
 0x25c   :  { %5186 = vmatpush1.bf16.msra.mxu1 %v7117_v13  ;;  %v4412_v13 = vld [vmem:[%s8695_s2 + $0x3f0] sm:$0xff] }
 0x25d   :  { %5188 = vmatprep.subr.bf16.mxu1 %v7120_v55 }
 0x260   :  { %5190 = vmatpush1.bf16.msra.mxu1 %v7135_v35 }
 0x261   :  { %5192 = vmatprep.subr.bf16.mxu1 %v7138_v43 }
 0x263   :  { %v7176_v24 = vpop.f32.mrb[16].mxu0 }
 0x264   :  { %5194 = vmatpush1.bf16.msra.mxu1 %v7153_v1  ;;  %v7179_v25 = vpop.f32.mrb[17].mxu0  ;;  %v2234_v40 = vrot.slane %v7176_v24, 1  ;;  %v2446_v19 = vrot.slane %v7176_v24, 2  ;;  %v2581_v21 = vrot.slane %v7176_v24, 3  ;;  %v2716_v18 = vrot.slane %v7176_v24, 4 }
 0x265   :  { %5196 = vmatprep.subr.bf16.mxu1 %v7156_v2  ;;  %v2237_v17 = vrot.slane %v7179_v25, 1  ;;  %v2449_v12 = vrot.slane %v7179_v25, 2  ;;  %v2584_v16 = vrot.slane %v7179_v25, 3  ;;  %v2719_v34 = vrot.slane %v7179_v25, 4 }
 0x267   :  { %v7192_v15 = vpop.f32.mrb[18].mxu0 }
 0x268   :  { %5198 = vmatpush1.bf16.msra.mxu1 %v7181_v56  ;;  %v2235_v45 = vrot.slane %v7192_v15, 1  ;;  %v7203_v39 = vpop.f32.mrb[19].mxu0  ;;  %v8733_v2 = vrot.slane %v7192_v15, 2 }
 0x269   :  { %5200 = vmatprep.subr.bf16.mxu1 %v7184_v7  ;;  %v2238_v28 = vrot.slane %v7203_v39, 1  ;;  %v8735_v7 = vrot.slane %v7192_v15, 4 }
 0x26a   :  { %v2236_v43 = vsel %vm851_vm11, %v2234_v40, %v2235_v45  ;;  %v7225_v1 = vsel %vm1066_vm13, %v2446_v19, %v8733_v2  ;;  %v8734_v40 = vrot.slane %v7192_v15, 3  ;;  %v4414_v19 = vld [vmem:[%s8695_s2 + $0x400] sm:$0xff]  ;;  %v8737_v2 = vrot.slane %v7203_v39, 2 }
 0x26b   :  { %v7235_v35 = vsel %vm678_vm1, %v2716_v18, %v8735_v7  ;;  %v2239_v55 = vsel %vm851_vm11, %v2237_v17, %v2238_v28  ;;  %v8739_v17 = vrot.slane %v7203_v39, 4 }
 0x26c   :  { %v7230_v56 = vsel %vm1203_vm14, %v2581_v21, %v8734_v40  ;;  %8736 = vst [vmem:[#allocation16_spill] sm:$0xff] %v7235_v35  ;;  %v7247_v21 = vsel %vm1066_vm13, %v2449_v12, %v8737_v2  ;;  %v8738_v40 = vrot.slane %v7203_v39, 3  ;;  %5202 = vmatpush1.bf16.msra.mxu1 %v7186_v42  ;;  %4618 = vmatprep.mubr.msk.f32.mxu0 %vm860_vm12, %v2239_v55  ;;  %v4417_v35 = vld [vmem:[%s8695_s2 + $0x418] sm:$0xff]  ;;  %v4419_v12 = vld [vmem:[%s8695_s2 + $0x428] sm:$0xff] }
 0x26d   :  { %v7257_v18 = vsel %vm678_vm1, %v2719_v34, %v8739_v17  ;;  %2311 = vmatmul.mubr.f32.vlgmr.msra.gmra.mrb[20].mxu0 %v2236_v43  ;;  %1119 = vmatprep.subr.mxu1 %v7214_v44  ;;  %v7273_v34 = vpack.c.bf16 %v4415_v52, %v4413_v9  ;;  %v7277_v55 = vpack.c.bf16 %v4414_v19, %v4412_v13  ;;  %v4416_v43 = vld [vmem:[%s8695_s2 + $0x410] sm:$0xff]  ;;  %v8740_v9 = vrot.slane %v6793_v3, 2  ;;  %v4427_v52 = vld [vmem:[%s8695_s2 + $0x468] sm:$0xff] }
 0x26e   :  { %v7252_v7 = vsel %vm1203_vm14, %v2584_v16, %v8738_v40  ;;  %v7271_v16 = vld [vmem:[%s8695_s2 + $0x3e0] sm:$0xff]  ;;  %5376 = vmatpush1.bf16.msra.mxu0 %v6779_v61  ;;  %4619 = vmatprep.mubr.msk.f32.mxu0 %vm860_vm12, %v2238_v28  ;;  %v7280_v2 = vpack.c.bf16 %v4419_v12, %v4417_v35  ;;  %v4421_v61 = vld [vmem:[%s8695_s2 + $0x438] sm:$0xff]  ;;  %v4420_v35 = vld [vmem:[%s8695_s2 + $0x430] sm:$0xff]  ;;  %v8741_v19 = vrot.slane %v6787_v6, 2 }
 0x26f   :  { %5378 = vmatprep.subr.bf16.mxu0 %v6781_v62  ;;  %v4418_v40 = vld [vmem:[%s8695_s2 + $0x420] sm:$0xff]  ;;  %v4423_v62 = vld [vmem:[%s8695_s2 + $0x448] sm:$0xff]  ;;  %v4424_v17 = vld [vmem:[%s8695_s2 + $0x450] sm:$0xff] }
 0x270   :  { %1120 = vmatpush1.msra.mxu1 %v7271_v16  ;;  %v7301_v28 = vpack.c.bf16 %v4418_v40, %v4416_v43  ;;  %v7304_v13 = vpack.c.bf16 %v4423_v62, %v4421_v61  ;;  %v4426_v12 = vld [vmem:[%s8695_s2 + $0x460] sm:$0xff]  ;;  %v4435_v62 = vld [vmem:[%s8695_s2 + $0x4a8] sm:$0xff] }
 0x271   :  { %1144 = vmatmul.mubr.f32.vlgmr.msra.gmra.mrb[4].mxu1 %v6803_v23  ;;  %5204 = vmatprep.subr.bf16.mxu1 %v7273_v34  ;;  %v4422_v23 = vld [vmem:[%s8695_s2 + $0x440] sm:$0xff]  ;;  %v7347_v43 = vpack.c.bf16 %v4426_v12, %v4424_v17  ;;  %v4443_v12 = vld [vmem:[%s8695_s2 + $0x4e8] sm:$0xff] }
 0x272   :  { %4411 = vmatprep.mubr.msk.f32.mxu1 %vm860_vm12, %v8740_v9  ;;  %5206 = vmatpush1.bf16.msra.mxu1 %v7277_v55  ;;  %v4430_v61 = vld [vmem:[%s8695_s2 + $0x480] sm:$0xff] }
 0x273   :  { %2317 = vmatmul.mubr.f32.gmra.mrb[22].mxu0 %v2235_v45  ;;  %5208 = vmatprep.subr.bf16.mxu1 %v7280_v2  ;;  %v4425_v45 = vld [vmem:[%s8695_s2 + $0x458] sm:$0xff]  ;;  %v4438_v17 = vld [vmem:[%s8695_s2 + $0x4c0] sm:$0xff] }
 0x274   :  { %5380 = vmatpush1.bf16.msra.mxu0 %v6845_v47  ;;  %4620 = vmatprep.mubr.msk.f32.mxu0 %vm860_vm12, %v7179_v25  ;;  %v7327_v47 = vpack.c.bf16 %v4422_v23, %v4420_v35  ;;  %v7330_v25 = vpack.c.bf16 %v4427_v52, %v4425_v45  ;;  %v4434_v23 = vld [vmem:[%s8695_s2 + $0x4a0] sm:$0xff]  ;;  %v4439_v45 = vld [vmem:[%s8695_s2 + $0x4c8] sm:$0xff] }
 0x275   :  { %1150 = vmatmul.mubr.f32.gmra.mrb[6].mxu1 %v8741_v19  ;;  %5382 = vmatprep.subr.bf16.mxu0 %v6849_v48  ;;  %v4431_v48 = vld [vmem:[%s8695_s2 + $0x488] sm:$0xff] }
 0x276   :  { %5210 = vmatpush1.bf16.msra.mxu1 %v7301_v28  ;;  %4454 = vmatprep.mubr.msk.f32.mxu1 %vm860_vm12, %v6830_v36  ;;  %v4429_v36 = vld [vmem:[%s8695_s2 + $0x478] sm:$0xff] }
 0x277   :  { %5212 = vmatprep.subr.bf16.mxu1 %v7304_v13  ;;  %v7350_v40 = vpack.c.bf16 %v4431_v48, %v4429_v36 }
 0x278   :  { %5384 = vmatpush1.bf16.msra.mxu0 %v6864_v57  ;;  %v4428_v57 = vld [vmem:[%s8695_s2 + $0x470] sm:$0xff] }
 0x279   :  { %5386 = vmatprep.subr.bf16.mxu0 %v6868_v58  ;;  %v4433_v58 = vld [vmem:[%s8695_s2 + $0x498] sm:$0xff]  ;;  %v7367_v9 = vpack.c.bf16 %v4430_v61, %v4428_v57  ;;  %v4442_v57 = vld [vmem:[%s8695_s2 + $0x4e0] sm:$0xff]  ;;  %v4447_v61 = vld [vmem:[%s8695_s2 + $0x508] sm:$0xff] }
 0x27a   :  { %5214 = vmatpush1.bf16.msra.mxu1 %v7327_v47  ;;  %v7370_v35 = vpack.c.bf16 %v4435_v62, %v4433_v58 }
 0x27b   :  { %5216 = vmatprep.subr.bf16.mxu1 %v7330_v25 }
 0x27c   :  { %5388 = vmatpush1.bf16.msra.mxu0 %v6883_v20  ;;  %v4432_v20 = vld [vmem:[%s8695_s2 + $0x490] sm:$0xff] }
 0x27d   :  { %5390 = vmatprep.subr.bf16.mxu0 %v6886_v14  ;;  %v4437_v14 = vld [vmem:[%s8695_s2 + $0x4b8] sm:$0xff]  ;;  %v7387_v52 = vpack.c.bf16 %v4434_v23, %v4432_v20  ;;  %v4446_v20 = vld [vmem:[%s8695_s2 + $0x500] sm:$0xff]  ;;  %v4451_v23 = vld [vmem:[%s8695_s2 + $0x528] sm:$0xff] }
 0x27e   :  { %5218 = vmatpush1.bf16.msra.mxu1 %v7347_v43  ;;  %v7390_v19 = vpack.c.bf16 %v4439_v45, %v4437_v14 }
 0x27f   :  { %5220 = vmatprep.subr.bf16.mxu1 %v7350_v40 }
 0x280   :  { %5392 = vmatpush1.bf16.msra.mxu0 %v6901_v63  ;;  %v4436_v63 = vld [vmem:[%s8695_s2 + $0x4b0] sm:$0xff] }
 0x281   :  { %5394 = vmatprep.subr.bf16.mxu0 %v6904_v0  ;;  %v4441_v0 = vld [vmem:[%s8695_s2 + $0x4d8] sm:$0xff]  ;;  %v7407_v36 = vpack.c.bf16 %v4438_v17, %v4436_v63  ;;  %v4450_v63 = vld [vmem:[%s8695_s2 + $0x520] sm:$0xff] }
 0x282   :  { %5222 = vmatpush1.bf16.msra.mxu1 %v7367_v9  ;;  %v7410_v48 = vpack.c.bf16 %v4443_v12, %v4441_v0  ;;  %v7468_v17 = vld [vmem:[%s8695_s2 + $0x538] sm:$0xff]  ;;  %v7489_v0 = vld [vmem:[%s8695_s2 + $0x530] sm:$0xff] }
 0x283   :  { %5224 = vmatprep.subr.bf16.mxu1 %v7370_v35 }
 0x284   :  { %5396 = vmatpush1.bf16.msra.mxu0 %v6919_v49  ;;  %v4440_v49 = vld [vmem:[%s8695_s2 + $0x4d0] sm:$0xff] }
 0x285   :  { %5398 = vmatprep.subr.bf16.mxu0 %v6922_v50  ;;  %v4445_v50 = vld [vmem:[%s8695_s2 + $0x4f8] sm:$0xff]  ;;  %v7427_v58 = vpack.c.bf16 %v4442_v57, %v4440_v49  ;;  %v4461_v49 = vld [vmem:[%s8695_s2 + $0x568] sm:$0xff] }
 0x286   :  { %5226 = vmatpush1.bf16.msra.mxu1 %v7387_v52  ;;  %v7430_v62 = vpack.c.bf16 %v4447_v61, %v4445_v50  ;;  %v4463_v57 = vld [vmem:[%s8695_s2 + $0x578] sm:$0xff]  ;;  %v4460_v61 = vld [vmem:[%s8695_s2 + $0x560] sm:$0xff] }
 0x287   :  { %5228 = vmatprep.subr.bf16.mxu1 %v7390_v19  ;;  %v7508_v50 = vpack.c.bf16 %v4463_v57, %v4461_v49  ;;  %v4479_v49 = vld [vmem:[%s8695_s2 + $0x5f8] sm:$0xff] }
 0x288   :  { %5400 = vmatpush1.bf16.msra.mxu0 %v6937_v5  ;;  %v4444_v5 = vld [vmem:[%s8695_s2 + $0x4f0] sm:$0xff] }
 0x289   :  { %5402 = vmatprep.subr.bf16.mxu0 %v6940_v10  ;;  %v4449_v10 = vld [vmem:[%s8695_s2 + $0x518] sm:$0xff]  ;;  %v7447_v14 = vpack.c.bf16 %v4446_v20, %v4444_v5  ;;  %v4464_v20 = vld [vmem:[%s8695_s2 + $0x580] sm:$0xff] }
 0x28a   :  { %5230 = vmatpush1.bf16.msra.mxu1 %v7407_v36  ;;  %v7450_v45 = vpack.c.bf16 %v4451_v23, %v4449_v10  ;;  %v4466_v10 = vld [vmem:[%s8695_s2 + $0x590] sm:$0xff]  ;;  %v8743_v23 = vrot.slane %v6787_v6, 3 }
 0x28b   :  { %5232 = vmatprep.subr.bf16.mxu1 %v7410_v48 }
 0x28c   :  { %5404 = vmatpush1.bf16.msra.mxu0 %v6955_v8  ;;  %v4448_v8 = vld [vmem:[%s8695_s2 + $0x510] sm:$0xff] }
 0x28d   :  { %5406 = vmatprep.subr.bf16.mxu0 %v6958_v22  ;;  %v7461_v22 = vpack.c.bf16 %v4450_v63, %v4448_v8  ;;  %v7556_v8 = vpack.c.bf16 %v4466_v10, %v4464_v20  ;;  %v4468_v63 = vld [vmem:[%s8695_s2 + $0x5a0] sm:$0xff] }
 0x28e   :  { %5234 = vmatpush1.bf16.msra.mxu1 %v7427_v58  ;;  %v4480_v10 = vld [vmem:[%s8695_s2 + $0x600] sm:$0xff] }
 0x28f   :  { %5236 = vmatprep.subr.bf16.mxu1 %v7430_v62 }
 0x290   :  { %5408 = vmatpush1.bf16.msra.mxu0 %v6973_v46  ;;  %v4457_v46 = vld [vmem:[%s8695_s2 + $0x548] sm:$0xff] }
 0x291   :  { %5410 = vmatprep.subr.bf16.mxu0 %v6976_v51  ;;  %v4459_v51 = vld [vmem:[%s8695_s2 + $0x558] sm:$0xff] }
 0x292   :  { %5238 = vmatpush1.bf16.msra.mxu1 %v7447_v14  ;;  %v7491_v12 = vpack.c.bf16 %v4459_v51, %v4457_v46  ;;  %v4475_v46 = vld [vmem:[%s8695_s2 + $0x5d8] sm:$0xff] }
 0x293   :  { %5240 = vmatprep.subr.bf16.mxu1 %v7450_v45 }
 0x294   :  { %5412 = vmatpush1.bf16.msra.mxu0 %v6985_v54  ;;  %v4456_v54 = vld [vmem:[%s8695_s2 + $0x540] sm:$0xff] }
 0x295   :  { %2367 = vmatprep.subr.mxu0 %v6991_v59  ;;  %v4458_v59 = vld [vmem:[%s8695_s2 + $0x550] sm:$0xff] }
 0x296   :  { %5242 = vmatpush1.bf16.msra.mxu1 %v7461_v22 }
 0x297   :  { %1256 = vmatprep.subr.mxu1 %v7468_v17 }
 0x298   :  { %2368 = vmatpush1.msra.mxu0 %v7016_v31  ;;  %v7504_v31 = vpack.c.bf16 %v4458_v59, %v4456_v54  ;;  %v4472_v54 = vld [vmem:[%s8695_s2 + $0x5c0] sm:$0xff]  ;;  %v4474_v59 = vld [vmem:[%s8695_s2 + $0x5d0] sm:$0xff] }
 0x299   :  { %2392 = vmatmul.mubr.f32.vlgmr.msra.gmra.mrb[20].mxu0 %v7176_v24  ;;  %5414 = vmatprep.subr.bf16.mxu0 %v7018_v32  ;;  %v4462_v32 = vld [vmem:[%s8695_s2 + $0x570] sm:$0xff]  ;;  %v8742_v24 = vrot.slane %v6793_v3, 3 }
 0x29a   :  { %4621 = vmatprep.mubr.msk.f32.mxu0 %vm860_vm12, %v7203_v39  ;;  %5416 = vmatpush1.bf16.msra.mxu0 %v7020_v33  ;;  %v4465_v33 = vld [vmem:[%s8695_s2 + $0x588] sm:$0xff] }
 0x29b   :  { %1257 = vmatpush1.msra.mxu1 %v7489_v0  ;;  %5418 = vmatprep.subr.bf16.mxu0 %v7022_v38  ;;  %v4467_v38 = vld [vmem:[%s8695_s2 + $0x598] sm:$0xff] }
 0x29c   :  { %1281 = vmatmul.mubr.f32.vlgmr.msra.gmra.mrb[4].mxu1 %v6808_v27  ;;  %5244 = vmatprep.subr.bf16.mxu1 %v7491_v12  ;;  %v7530_v27 = vpack.c.bf16 %v4462_v32, %v4460_v61  ;;  %v7535_v5 = vpack.c.bf16 %v4467_v38, %v4465_v33  ;;  %v4476_v61 = vld [vmem:[%s8695_s2 + $0x5e0] sm:$0xff]  ;;  %v4478_v32 = vld [vmem:[%s8695_s2 + $0x5f0] sm:$0xff]  ;;  %v4483_v33 = vld [vmem:[%s8695_s2 + $0x618] sm:$0xff] }
 0x29d   :  { %2398 = vmatmul.mubr.f32.gmra.mrb[22].mxu0 %v7192_v15  ;;  %4455 = vmatprep.mubr.msk.f32.mxu1 %vm860_vm12, %v8742_v24  ;;  %v7616_v38 = vpack.c.bf16 %v4478_v32, %v4476_v61  ;;  %v8745_v24 = vld [vmem:[#allocation9_spill] sm:$0xff]  ;;  %v8748_v61 = vld [vmem:[#allocation12_spill] sm:$0xff] }
 0x29e   :  { %5246 = vmatpush1.bf16.msra.mxu1 %v7504_v31  ;;  %5420 = vmatpush1.bf16.msra.mxu0 %v7040_v4  ;;  %v4469_v4 = vld [vmem:[%s8695_s2 + $0x5a8] sm:$0xff] }
 0x29f   :  { %4664 = vmatprep.mubr.msk.f32.mxu0 %vm860_vm12, %v7247_v21  ;;  %5248 = vmatprep.subr.bf16.mxu1 %v7508_v50  ;;  %v4471_v21 = vld [vmem:[%s8695_s2 + $0x5b8] sm:$0xff] }
 0x2a0   :  { %1287 = vmatmul.mubr.f32.gmra.mrb[6].mxu1 %v8743_v23  ;;  %5422 = vmatprep.subr.bf16.mxu0 %v7045_v11  ;;  %v7560_v11 = vpack.c.bf16 %v4471_v21, %v4469_v4  ;;  %v4482_v23 = vld [vmem:[%s8695_s2 + $0x610] sm:$0xff]  ;;  %v4485_v4 = vld [vmem:[%s8695_s2 + $0x628] sm:$0xff]  ;;  %v4487_v21 = vld [vmem:[%s8695_s2 + $0x638] sm:$0xff] }
 0x2a1   :  { %4498 = vmatprep.mubr.msk.f32.mxu1 %vm860_vm12, %v6835_v37  ;;  %v4470_v37 = vld [vmem:[%s8695_s2 + $0x5b0] sm:$0xff] }
 0x2a2   :  { %5250 = vmatpush1.bf16.msra.mxu1 %v7530_v27  ;;  %5424 = vmatpush1.bf16.msra.mxu0 %v7061_v29  ;;  %v4473_v29 = vld [vmem:[%s8695_s2 + $0x5c8] sm:$0xff] }
 0x2a3   :  { %5252 = vmatprep.subr.bf16.mxu1 %v7535_v5  ;;  %5426 = vmatprep.subr.bf16.mxu0 %v7066_v30  ;;  %v7576_v30 = vpack.c.bf16 %v4470_v37, %v4468_v63  ;;  %v7580_v51 = vpack.c.bf16 %v4475_v46, %v4473_v29  ;;  %v8746_v63 = vld [vmem:[#allocation10_spill] sm:$0xff]  ;;  %v7636_v37 = vpack.c.bf16 %v4482_v23, %v4480_v10  ;;  %v8747_v29 = vld [vmem:[#allocation11_spill] sm:$0xff]  ;;  %v4495_v23 = vld [vmem:[%s8695_s2 + $0x678] sm:$0xff] }
 0x2a4   :  { %v7640_v46 = vpack.c.bf16 %v4487_v21, %v4485_v4  ;;  %v4493_v10 = vld [vmem:[%s8695_s2 + $0x668] sm:$0xff] }
 0x2a5   :  { %v8750_v4 = vld [vmem:[#allocation14_spill] sm:$0xff] }
 0x2a6   :  { %5254 = vmatpush1.bf16.msra.mxu1 %v7556_v8  ;;  %5428 = vmatpush1.bf16.msra.mxu0 %v7081_v53  ;;  %v4477_v53 = vld [vmem:[%s8695_s2 + $0x5e8] sm:$0xff] }
 0x2a7   :  { %5256 = vmatprep.subr.bf16.mxu1 %v7560_v11  ;;  %5430 = vmatprep.subr.bf16.mxu0 %v7084_v60  ;;  %v7596_v60 = vpack.c.bf16 %v4474_v59, %v4472_v54  ;;  %v7600_v57 = vpack.c.bf16 %v4479_v49, %v4477_v53  ;;  %v4484_v54 = vld [vmem:[%s8695_s2 + $0x620] sm:$0xff]  ;;  %v4486_v59 = vld [vmem:[%s8695_s2 + $0x630] sm:$0xff]  ;;  %v4489_v53 = vld [vmem:[%s8695_s2 + $0x648] sm:$0xff] }
 0x2a8   :  { %v4491_v49 = vld [vmem:[%s8695_s2 + $0x658] sm:$0xff]  ;;  %v7656_v32 = vpack.c.bf16 %v4486_v59, %v4484_v54  ;;  %v4492_v54 = vld [vmem:[%s8695_s2 + $0x660] sm:$0xff]  ;;  %v4494_v59 = vld [vmem:[%s8695_s2 + $0x670] sm:$0xff] }
 0x2aa   :  { %5258 = vmatpush1.bf16.msra.mxu1 %v7576_v30  ;;  %5432 = vmatpush1.bf16.msra.mxu0 %v7099_v26  ;;  %v4481_v26 = vld [vmem:[%s8695_s2 + $0x608] sm:$0xff] }
 0x2ab   :  { %5260 = vmatprep.subr.bf16.mxu1 %v7580_v51  ;;  %5434 = vmatprep.subr.bf16.mxu0 %v7102_v41  ;;  %v8744_v41 = vld [vmem:[#allocation8_spill] sm:$0xff]  ;;  %v7620_v20 = vpack.c.bf16 %v4483_v33, %v4481_v26  ;;  %v8749_v26 = vld [vmem:[#allocation13_spill] sm:$0xff]  ;;  %v7660_v33 = vpack.c.bf16 %v4491_v49, %v4489_v53  ;;  %v5281_v53 = vpack.c.bf16 %v4494_v59, %v4492_v54  ;;  %v4497_v49 = vld [vmem:[%s8695_s2 + $0x688] sm:$0xff] }
 0x2ac   :  { %v4771_v54 = vld [vmem:[%s8696_s3 + $0x128] sm:$0xff] }
 0x2ae   :  { %5262 = vmatpush1.bf16.msra.mxu1 %v7596_v60  ;;  %5436 = vmatpush1.bf16.msra.mxu0 %v8744_v41  ;;  %v4488_v41 = vld [vmem:[%s8695_s2 + $0x640] sm:$0xff] }
 0x2af   :  { %5264 = vmatprep.subr.bf16.mxu1 %v7600_v57  ;;  %5438 = vmatprep.subr.bf16.mxu0 %v8745_v24  ;;  %v4490_v24 = vld [vmem:[%s8695_s2 + $0x650] sm:$0xff] }
 0x2b0   :  { %v7676_v21 = vpack.c.bf16 %v4490_v24, %v4488_v41  ;;  %v4831_v41 = vld [vmem:[%s8696_s3 + $0x2e8] sm:$0xff] }
 0x2b2   :  { %5266 = vmatpush1.bf16.msra.mxu1 %v7616_v38  ;;  %5440 = vmatpush1.bf16.msra.mxu0 %v8746_v63  ;;  %v8751_v63 = vld [vmem:[#allocation15_spill] sm:$0xff] }
 0x2b3   :  { %5268 = vmatprep.subr.bf16.mxu1 %v7620_v20  ;;  %5442 = vmatprep.subr.bf16.mxu0 %v8747_v29  ;;  %v7680_v29 = vpack.c.bf16 %v4495_v23, %v4493_v10  ;;  %v4768_v10 = vld [vmem:[%s8696_s3 + $0x110] sm:$0xff]  ;;  %v4769_v23 = vld [vmem:[%s8696_s3 + $0x118] sm:$0xff] }
 0x2b6   :  { %5270 = vmatpush1.bf16.msra.mxu1 %v7636_v37  ;;  %5444 = vmatpush1.bf16.msra.mxu0 %v8748_v61  ;;  %v8752_v61 = vrot.slane %v7203_v39, 2 }
 0x2b7   :  { %5272 = vmatprep.subr.bf16.mxu1 %v7640_v46  ;;  %5446 = vmatprep.subr.bf16.mxu0 %v8749_v26  ;;  %v4830_v26 = vld [vmem:[%s8696_s3 + $0x2e0] sm:$0xff] }
 0x2b8   :  { %v5672_v24 = vpack.c.bf16 %v4831_v41, %v4830_v26 }
 0x2ba   :  { %5274 = vmatpush1.bf16.msra.mxu1 %v7656_v32  ;;  %5448 = vmatpush1.bf16.msra.mxu0 %v8750_v4  ;;  %v4832_v4 = vld [vmem:[%s8696_s3 + $0x2f0] sm:$0xff] }
 0x2bb   :  { %5276 = vmatprep.subr.bf16.mxu1 %v7660_v33  ;;  %5450 = vmatprep.subr.bf16.mxu0 %v8751_v63  ;;  %v4833_v63 = vld [vmem:[%s8696_s3 + $0x2f8] sm:$0xff] }
 0x2bc   :  { %v5675_v59 = vpack.c.bf16 %v4833_v63, %v4832_v4 }
 0x2be   :  { %5278 = vmatpush1.bf16.msra.mxu1 %v7676_v21  ;;  %5452 = vmatpush1.bf16.msra.mxu0 %v7186_v42  ;;  %v4496_v42 = vld [vmem:[%s8695_s2 + $0x680] sm:$0xff] }
 0x2bf   :  { %5280 = vmatprep.subr.bf16.mxu1 %v7680_v29  ;;  %2498 = vmatprep.subr.mxu0 %v7214_v44  ;;  %v8753_v44 = vld [vmem:[#allocation7_spill] sm:$0xff] }
 0x2c2   :  { %5282 = vmatpush1.bf16.msra.mxu1 %v5281_v53  ;;  %2499 = vmatpush1.msra.mxu0 %v7271_v16  ;;  %v8755_v16 = vrot.slane %v6793_v3, 4  ;;  %v8758_v3 = vrot.slane %v7192_v15, 3 }
 0x2c3   :  { %2523 = vmatmul.mubr.f32.vlgmr.msra.gmra.mrb[20].mxu0 %v7225_v1  ;;  %5454 = vmatprep.subr.bf16.mxu0 %v7273_v34  ;;  %v8754_v1 = vrot.slane %v7192_v15, 2  ;;  %v8756_v34 = vrot.slane %v6787_v6, 4  ;;  %v8757_v6 = vrot.slane %v7203_v39, 3 }
 0x2c4   :  { %4665 = vmatprep.mubr.msk.f32.mxu0 %vm860_vm12, %v8752_v61  ;;  %5456 = vmatpush1.bf16.msra.mxu0 %v7277_v55  ;;  %v4754_v55 = vld [vmem:[%s8696_s3 + $0xa0] sm:$0xff] }
 0x2c5   :  { %1392 = vmatprep.subr.mxu1 %v4497_v49  ;;  %5458 = vmatprep.subr.bf16.mxu0 %v7280_v2  ;;  %v4755_v2 = vld [vmem:[%s8696_s3 + $0xa8] sm:$0xff] }
 0x2c6   :  { %1393 = vmatpush1.msra.mxu1 %v4496_v42 }
 0x2c7   :  { %1417 = vmatmul.mubr.f32.vlgmr.msra.gmra.mrb[4].mxu1 %v8753_v44  ;;  %2529 = vmatmul.mubr.f32.gmra.mrb[22].mxu0 %v8754_v1  ;;  %v4772_v44 = vld [vmem:[%s8696_s3 + $0x130] sm:$0xff]  ;;  %v4773_v1 = vld [vmem:[%s8696_s3 + $0x138] sm:$0xff] }
 0x2c8   :  { %4499 = vmatprep.mubr.msk.f32.mxu1 %vm860_vm12, %v8755_v16  ;;  %5460 = vmatpush1.bf16.msra.mxu0 %v7301_v28  ;;  %v4818_v28 = vld [vmem:[%s8696_s3 + $0x280] sm:$0xff]  ;;  %v4836_v16 = vld [vmem:[%s8696_s3 + $0x310] sm:$0xff] }
 0x2c9   :  { %4708 = vmatprep.mubr.msk.f32.mxu0 %vm860_vm12, %v7252_v7  ;;  %5462 = vmatprep.subr.bf16.mxu0 %v7304_v13  ;;  %v8760_v7 = vrot.slane %v7203_v39, 4  ;;  %v6053_v13 = vmov 0.0|0.0   ;;  %v5534_v39 = vpack.c.bf16 %v4755_v2, %v4754_v55 }
 0x2ca   :  { %5533 = vmatprep.subr.bf16.mxu1 %v6053_v13 }
 0x2cb   :  { %1423 = vmatmul.mubr.f32.gmra.mrb[6].mxu1 %v8756_v34  ;;  %v4837_v34 = vld [vmem:[%s8696_s3 + $0x318] sm:$0xff] }
 0x2cc   :  { %5464 = vmatpush1.bf16.msra.mxu0 %v7327_v47  ;;  %v4756_v47 = vld [vmem:[%s8696_s3 + $0xb0] sm:$0xff]  ;;  %5535 = vmatpush1.bf16.msra.mxu1 %v5534_v39 }
 0x2cd   :  { %5466 = vmatprep.subr.bf16.mxu0 %v7330_v25  ;;  %v4757_v25 = vld [vmem:[%s8696_s3 + $0xb8] sm:$0xff]  ;;  %5536 = vmatprep.subr.bf16.mxu1 %v6053_v13 }
 0x2d0   :  { %5468 = vmatpush1.bf16.msra.mxu0 %v7347_v43 }
 0x2d1   :  { %5470 = vmatprep.subr.bf16.mxu0 %v7350_v40  ;;  %v4820_v40 = vld [vmem:[%s8696_s3 + $0x290] sm:$0xff] }
 0x2d4   :  { %5472 = vmatpush1.bf16.msra.mxu0 %v7367_v9  ;;  %v4821_v9 = vld [vmem:[%s8696_s3 + $0x298] sm:$0xff] }
 0x2d5   :  { %5474 = vmatprep.subr.bf16.mxu0 %v7370_v35  ;;  %v5537_v35 = vpack.c.bf16 %v4757_v25, %v4756_v47 }
 0x2d7   :  { %5538 = vmatpush1.bf16.msra.mxu1 %v5537_v35 }
 0x2d8   :  { %5476 = vmatpush1.bf16.msra.mxu0 %v7387_v52  ;;  %v5657_v52 = vpack.c.bf16 %v4821_v9, %v4820_v40  ;;  %5539 = vmatprep.subr.bf16.mxu1 %v6053_v13 }
 0x2d9   :  { %5478 = vmatprep.subr.bf16.mxu0 %v7390_v19  ;;  %v4758_v19 = vld [vmem:[%s8696_s3 + $0xc0] sm:$0xff] }
 0x2dc   :  { %5480 = vmatpush1.bf16.msra.mxu0 %v7407_v36  ;;  %v4759_v36 = vld [vmem:[%s8696_s3 + $0xc8] sm:$0xff] }
 0x2dd   :  { %5482 = vmatprep.subr.bf16.mxu0 %v7410_v48  ;;  %v4822_v48 = vld [vmem:[%s8696_s3 + $0x2a0] sm:$0xff] }
 0x2e0   :  { %5484 = vmatpush1.bf16.msra.mxu0 %v7427_v58  ;;  %v5540_v58 = vpack.c.bf16 %v4759_v36, %v4758_v19 }
 0x2e1   :  { %5486 = vmatprep.subr.bf16.mxu0 %v7430_v62  ;;  %v4823_v62 = vld [vmem:[%s8696_s3 + $0x2a8] sm:$0xff] }
 0x2e2   :  { %5541 = vmatpush1.bf16.msra.mxu1 %v5540_v58 }
 0x2e3   :  { %5542 = vmatprep.subr.bf16.mxu1 %v6053_v13 }
 0x2e4   :  { %5488 = vmatpush1.bf16.msra.mxu0 %v7447_v14  ;;  %v5660_v14 = vpack.c.bf16 %v4823_v62, %v4822_v48 }
 0x2e5   :  { %5490 = vmatprep.subr.bf16.mxu0 %v7450_v45  ;;  %v4760_v45 = vld [vmem:[%s8696_s3 + $0xd0] sm:$0xff] }
 0x2e8   :  { %5492 = vmatpush1.bf16.msra.mxu0 %v7461_v22  ;;  %v4761_v22 = vld [vmem:[%s8696_s3 + $0xd8] sm:$0xff] }
 0x2e9   :  { %2633 = vmatprep.subr.mxu0 %v7468_v17  ;;  %v4824_v17 = vld [vmem:[%s8696_s3 + $0x2b0] sm:$0xff] }
 0x2ec   :  { %2634 = vmatpush1.msra.mxu0 %v7489_v0  ;;  %v5543_v0 = vpack.c.bf16 %v4761_v22, %v4760_v45 }
 0x2ed   :  { %2658 = vmatmul.mubr.f32.vlgmr.msra.gmra.mrb[20].mxu0 %v7230_v56  ;;  %5494 = vmatprep.subr.bf16.mxu0 %v7491_v12  ;;  %v8759_v56 = vld [vmem:[#allocation16_spill] sm:$0xff] }
 0x2ee   :  { %4709 = vmatprep.mubr.msk.f32.mxu0 %vm860_vm12, %v8757_v6  ;;  %5496 = vmatpush1.bf16.msra.mxu0 %v7504_v31  ;;  %v4825_v12 = vld [vmem:[%s8696_s3 + $0x2b8] sm:$0xff]  ;;  %v5561_v6 = vpack.c.bf16 %v4773_v1, %v4772_v44 }
 0x2ef   :  { %5498 = vmatprep.subr.bf16.mxu0 %v7508_v50  ;;  %v5663_v31 = vpack.c.bf16 %v4825_v12, %v4824_v17  ;;  %5544 = vmatpush1.bf16.msra.mxu1 %v5543_v0  ;;  %v4762_v50 = vld [vmem:[%s8696_s3 + $0xe0] sm:$0xff] }
 0x2f0   :  { %5545 = vmatprep.subr.bf16.mxu1 %v6053_v13 }
 0x2f1   :  { %2664 = vmatmul.mubr.f32.gmra.mrb[22].mxu0 %v8758_v3  ;;  %v5681_v3 = vpack.c.bf16 %v4837_v34, %v4836_v16 }
 0x2f2   :  { %5500 = vmatpush1.bf16.msra.mxu0 %v7530_v27  ;;  %4752 = vmatprep.mubr.msk.f32.mxu0 %vm860_vm12, %v7257_v18  ;;  %v8761_v18 = vrot.slane %v7192_v15, 4  ;;  %v4819_v15 = vld [vmem:[%s8696_s3 + $0x288] sm:$0xff] }
 0x2f3   :  { %5502 = vmatprep.subr.bf16.mxu0 %v7535_v5  ;;  %v5654_v43 = vpack.c.bf16 %v4819_v15, %v4818_v28  ;;  %v4763_v27 = vld [vmem:[%s8696_s3 + $0xe8] sm:$0xff]  ;;  %v4826_v5 = vld [vmem:[%s8696_s3 + $0x2c0] sm:$0xff] }
 0x2f6   :  { %5504 = vmatpush1.bf16.msra.mxu0 %v7556_v8  ;;  %v5546_v8 = vpack.c.bf16 %v4763_v27, %v4762_v50  ;;  %v6054_v50 = vmov 1966171168  }
 0x2f7   :  { %5506 = vmatprep.subr.bf16.mxu0 %v7560_v11  ;;  %v4827_v11 = vld [vmem:[%s8696_s3 + $0x2c8] sm:$0xff]  ;;  %v2874_v27 = vunpack.c.l.s4 %v6054_v50  ;;  %v4866_v50 = vld [vmem:[%s8696_s3 + $0x3f0] sm:$0xff] }
 0x2f8   :  { %5547 = vmatpush1.bf16.msra.mxu1 %v5546_v8 }
 0x2f9   :  { %5548 = vmatprep.subr.bf16.mxu1 %v6053_v13 }
 0x2fa   :  { %5508 = vmatpush1.bf16.msra.mxu0 %v7576_v30  ;;  %v5666_v30 = vpack.c.bf16 %v4827_v11, %v4826_v5  ;;  %v2875_v11 = vunpack.c.0.s8 %v2874_v27  ;;  %v4867_v27 = vld [vmem:[%s8696_s3 + $0x3f8] sm:$0xff] }
 0x2fb   :  { %5510 = vmatprep.subr.bf16.mxu0 %v7580_v51  ;;  %v4764_v51 = vld [vmem:[%s8696_s3 + $0xf0] sm:$0xff] }
 0x2fe   :  { %5512 = vmatpush1.bf16.msra.mxu0 %v7596_v60  ;;  %v4765_v60 = vld [vmem:[%s8696_s3 + $0xf8] sm:$0xff] }
 0x2ff   :  { %5514 = vmatprep.subr.bf16.mxu0 %v7600_v57  ;;  %v4828_v57 = vld [vmem:[%s8696_s3 + $0x2d0] sm:$0xff] }
 0x302   :  { %5516 = vmatpush1.bf16.msra.mxu0 %v7616_v38  ;;  %v5549_v38 = vpack.c.bf16 %v4765_v60, %v4764_v51 }
 0x303   :  { %5518 = vmatprep.subr.bf16.mxu0 %v7620_v20  ;;  %v4829_v20 = vld [vmem:[%s8696_s3 + $0x2d8] sm:$0xff] }
 0x304   :  { %5550 = vmatpush1.bf16.msra.mxu1 %v5549_v38 }
 0x305   :  { %5551 = vmatprep.subr.bf16.mxu1 %v6053_v13 }
 0x306   :  { %5520 = vmatpush1.bf16.msra.mxu0 %v7636_v37  ;;  %v5669_v37 = vpack.c.bf16 %v4829_v20, %v4828_v57 }
 0x307   :  { %5522 = vmatprep.subr.bf16.mxu0 %v7640_v46  ;;  %v4766_v46 = vld [vmem:[%s8696_s3 + $0x100] sm:$0xff] }
 0x30a   :  { %5524 = vmatpush1.bf16.msra.mxu0 %v7656_v32  ;;  %v4767_v32 = vld [vmem:[%s8696_s3 + $0x108] sm:$0xff] }
 0x30b   :  { %5526 = vmatprep.subr.bf16.mxu0 %v7660_v33  ;;  %v5552_v33 = vpack.c.bf16 %v4767_v32, %v4766_v46 }
 0x30d   :  { %5553 = vmatpush1.bf16.msra.mxu1 %v5552_v33  ;;  %v2825_v33 = vld [vmem:[%s8696_s3] sm:$0xff] }
 0x30e   :  { %5528 = vmatpush1.bf16.msra.mxu0 %v7676_v21  ;;  %5554 = vmatprep.subr.bf16.mxu1 %v6053_v13  ;;  %v5555_v21 = vpack.c.bf16 %v4769_v23, %v4768_v10 }
 0x30f   :  { %5530 = vmatprep.subr.bf16.mxu0 %v7680_v29  ;;  %v4770_v29 = vld [vmem:[%s8696_s3 + $0x120] sm:$0xff] }
 0x311   :  { %5556 = vmatpush1.bf16.msra.mxu1 %v5555_v21 }
 0x312   :  { %5532 = vmatpush1.bf16.msra.mxu0 %v5281_v53  ;;  %v4834_v53 = vld [vmem:[%s8696_s3 + $0x300] sm:$0xff]  ;;  %5557 = vmatprep.subr.bf16.mxu1 %v6053_v13 }
 0x313   :  { %2768 = vmatprep.subr.mxu0 %v4497_v49  ;;  %v4835_v49 = vld [vmem:[%s8696_s3 + $0x308] sm:$0xff] }
 0x314   :  { %v5678_v61 = vpack.c.bf16 %v4835_v49, %v4834_v53  ;;  %v4861_v53 = vld [vmem:[%s8696_s3 + $0x3c8] sm:$0xff] }
 0x316   :  { %2769 = vmatpush1.msra.mxu0 %v4496_v42  ;;  %v5558_v42 = vpack.c.bf16 %v4771_v54, %v4770_v29  ;;  %v2826_v54 = vld [vmem:[%s8696_s3 + $0x8] sm:$0xff] }
 0x317   :  { %2793 = vmatmul.mubr.f32.vlgmr.msra.gmra.mrb[20].mxu0 %v8759_v56  ;;  %5653 = vmatprep.subr.bf16.mxu0 %v6053_v13  ;;  %v4265_v56 = vld [vmem:[%s8699_s6 + $0x1] ss:$8 sm:$0x3]  ;;  %v5564_v34 = vpack.c.bf16 %v2826_v54, %v2825_v33  ;;  %v2840_v54 = vld [vmem:[%s8696_s3 + $0x78] sm:$0xff] }
 0x318   :  { %4753 = vmatprep.mubr.msk.f32.mxu0 %vm860_vm12, %v8760_v7  ;;  %5655 = vmatpush1.bf16.msra.mxu0 %v5654_v43  ;;  %v8762_v7 = vld [vmem:[#allocation6_spill] sm:$0xff] }
 0x319   :  { %5656 = vmatprep.subr.bf16.mxu0 %v6053_v13  ;;  %5559 = vmatpush1.bf16.msra.mxu1 %v5558_v42  ;;  %v8764_v2 = vsub.s32 1, %v8762_v7  ;;  %v7922_v57 = vsub.s32 %v2875_v11, %v8762_v7  ;;  %v2833_v11 = vld [vmem:[%s8696_s3 + $0x40] sm:$0xff] }
 0x31a   :  { %5560 = vmatprep.subr.bf16.mxu1 %v6053_v13 }
 0x31b   :  { %2799 = vmatmul.mubr.f32.gmra.mrb[22].mxu0 %v8761_v18  ;;  %v8763_v18 = vsub.s32 0, %v8762_v7  ;;  %v1441_v28 = vrot.slane %v4265_v56, %v8764_v2  ;;  %v2827_v2 = vld [vmem:[%s8696_s3 + $0x10] sm:$0xff] }
 0x31c   :  { %5658 = vmatpush1.bf16.msra.mxu0 %v5657_v52 }
 0x31d   :  { %5659 = vmatprep.subr.bf16.mxu0 %v6053_v13  ;;  %5562 = vmatpush1.bf16.msra.mxu1 %v5561_v6  ;;  %v1437_v55 = vrot.slane %v4265_v56, %v8763_v18 }
 0x31e   :  { %5563 = vmatprep.subr.bf16.mxu1 %v6053_v13 }
 0x320   :  { %5661 = vmatpush1.bf16.msra.mxu0 %v5660_v14 }
 0x321   :  { %5662 = vmatprep.subr.bf16.mxu0 %v6053_v13 }
 0x324   :  { %5664 = vmatpush1.bf16.msra.mxu0 %v5663_v31 }
 0x325   :  { %5665 = vmatprep.subr.bf16.mxu0 %v6053_v13 }
 0x328   :  { %5667 = vmatpush1.bf16.msra.mxu0 %v5666_v30 }
 0x329   :  { %5668 = vmatprep.subr.bf16.mxu0 %v6053_v13 }
 0x32c   :  { %5670 = vmatpush1.bf16.msra.mxu0 %v5669_v37 }
 0x32d   :  { %5671 = vmatprep.subr.bf16.mxu0 %v6053_v13 }
 0x330   :  { %5673 = vmatpush1.bf16.msra.mxu0 %v5672_v24 }
 0x331   :  { %5674 = vmatprep.subr.bf16.mxu0 %v6053_v13 }
 0x334   :  { %5676 = vmatpush1.bf16.msra.mxu0 %v5675_v59  ;;  %v4860_v59 = vld [vmem:[%s8696_s3 + $0x3c0] sm:$0xff] }
 0x335   :  { %5677 = vmatprep.subr.bf16.mxu0 %v6053_v13  ;;  %v5714_v6 = vpack.c.bf16 %v4861_v53, %v4860_v59  ;;  %v4874_v59 = vld [vmem:[%s8696_s3 + $0x430] sm:$0xff]  ;;  %v4875_v53 = vld [vmem:[%s8696_s3 + $0x438] sm:$0xff] }
 0x338   :  { %5679 = vmatpush1.bf16.msra.mxu0 %v5678_v61 }
 0x339   :  { %5680 = vmatprep.subr.bf16.mxu0 %v6053_v13 }
 0x33c   :  { %5682 = vmatpush1.bf16.msra.mxu0 %v5681_v3 }
 0x33d   :  { %5713 = vmatprep.subr.bf16.mxu0 %v6053_v13 }
 0x39a   :  { %v1418_v39 = vpop.f32.mrb[4].mxu1 }
 0x39b   :  { %v1444_v15 = vadd.f32 %v1437_v55, %v1418_v39  ;;  %v1420_v47 = vpop.f32.mrb[5].mxu1 }
 0x39c   :  { %v1445_v25 = vadd.f32 %v1441_v28, %v1420_v47 }
 0x39d   :  { %6003 = vtanh.f32 %v1444_v15 }
 0x39e   :  { %6005 = vtanh.f32 %v1445_v25  ;;  %v1424_v43 = vpop.f32.mrb[6].mxu1  ;;  %v2828_v25 = vld [vmem:[%s8696_s3 + $0x18] sm:$0xff] }
 0x39f   :  { %v1446_v40 = vadd.f32 %v1437_v55, %v1424_v43  ;;  %v1426_v9 = vpop.f32.mrb[7].mxu1  ;;  %v4862_v43 = vld [vmem:[%s8696_s3 + $0x3d0] sm:$0xff] }
 0x3a0   :  { %v1447_v35 = vadd.f32 %v1441_v28, %v1426_v9 }
 0x3a1   :  { %6007 = vtanh.f32 %v1446_v40  ;;  %v4863_v40 = vld [vmem:[%s8696_s3 + $0x3d8] sm:$0xff] }
 0x3a2   :  { %6009 = vtanh.f32 %v1447_v35 }
 0x3a7   :  { %v6004_v52 = vpop.eup %6003 }
 0x3a8   :  { %v6006_v19 = vpop.eup %6005  ;;  %1452 = vst [vmem:[#allocation2] sm:$0xff] %v6004_v52 }
 0x3a9   :  { %1453 = vst.msk [vmem:[#allocation2 + $0x8] sm:$0xff] %vm75_vm0, %v6006_v19 }
 0x3ab   :  { %v6008_v36 = vpop.eup %6007 }
 0x3ac   :  { %v6010_v48 = vpop.eup %6009  ;;  %1454 = vst [vmem:[#allocation2 + $0x10] sm:$0x3] %v6008_v36  ;;  %v5567_v36 = vpack.c.bf16 %v2828_v25, %v2827_v2  ;;  %v4879_v2 = vld [vmem:[%s8696_s3 + $0x458] sm:$0xff]  ;;  %v4777_v25 = vld [vmem:[%s8696_s3 + $0x148] sm:$0xff] }
 0x3ad   :  { %1456 = vst.msk [vmem:[#allocation2 + $0x18] sm:$0x3] %vm1455_vm15, %v6010_v48  ;;  %v5717_v48 = vpack.c.bf16 %v4863_v40, %v4862_v43  ;;  %v4902_v40 = vld [vmem:[%s8696_s3 + $0x500] sm:$0xff] }
 0x3b0   :  { %v2846_v51 = vld [vmem:[#allocation2 + $0x1] ss:$8 sm:$0x3]  ;;  %v3315_v60 = vld [vmem:[#allocation2 + $0x4] ss:$8 sm:$0x3] }
 0x3b1   :  { %v2822_v38 = vld [vmem:[#allocation2] ss:$8 sm:$0x3]  ;;  %v3563_v20 = vld [vmem:[#allocation2 + $0x6] ss:$8 sm:$0x3] }
 0x3b2   :  { %v3067_v4 = vld [vmem:[#allocation2 + $0x2] ss:$8 sm:$0x3] }
 0x3b4   :  { %v3811_v7 = vld [vmem:[#allocation2 + $0x10] ss:$8 sm:$0x3] }
 0x3ea   :  { %v2794_v58 = vpop.f32.mrb[20].mxu0 }
 0x3eb   :  { %v2809_v62 = vadd.f32 %v2794_v58, %v1437_v55  ;;  %v2796_v14 = vpop.f32.mrb[21].mxu0  ;;  %v2829_v58 = vld [vmem:[%s8696_s3 + $0x20] sm:$0xff] }
 0x3ec   :  { %v2810_v45 = vadd.f32 %v2796_v14, %v1441_v28  ;;  %v2830_v14 = vld [vmem:[%s8696_s3 + $0x28] sm:$0xff] }
 0x3ed   :  { %6011 = vtanh.f32 %v2809_v62 }
 0x3ee   :  { %6013 = vtanh.f32 %v2810_v45  ;;  %v2800_v22 = vpop.f32.mrb[22].mxu0  ;;  %v4864_v45 = vld [vmem:[%s8696_s3 + $0x3e0] sm:$0xff] }
 0x3ef   :  { %v2811_v17 = vadd.f32 %v2800_v22, %v1437_v55  ;;  %v2802_v0 = vpop.f32.mrb[23].mxu0  ;;  %v4865_v22 = vld [vmem:[%s8696_s3 + $0x3e8] sm:$0xff] }
 0x3f0   :  { %v2812_v12 = vadd.f32 %v2802_v0, %v1441_v28  ;;  %v5720_v0 = vpack.c.bf16 %v4865_v22, %v4864_v45  ;;  %v4778_v45 = vld [vmem:[%s8696_s3 + $0x150] sm:$0xff]  ;;  %v4779_v22 = vld [vmem:[%s8696_s3 + $0x158] sm:$0xff] }
 0x3f1   :  { %6015 = vtanh.f32 %v2811_v17  ;;  %v5570_v17 = vpack.c.bf16 %v2830_v14, %v2829_v58 }
 0x3f2   :  { %6017 = vtanh.f32 %v2812_v12  ;;  %v2831_v12 = vld [vmem:[%s8696_s3 + $0x30] sm:$0xff] }
 0x3f7   :  { %v6012_v31 = vpop.eup %6011 }
 0x3f8   :  { %v6014_v5 = vpop.eup %6013  ;;  %2818 = vst [vmem:[#allocation2 + $0x20] sm:$0xff] %v6012_v31  ;;  %v2832_v31 = vld [vmem:[%s8696_s3 + $0x38] sm:$0xff] }
 0x3f9   :  { %2819 = vst.msk [vmem:[#allocation2 + $0x28] sm:$0xff] %vm75_vm0, %v6014_v5  ;;  %v5573_v5 = vpack.c.bf16 %v2832_v31, %v2831_v12  ;;  %v5597_v12 = vpack.c.bf16 %v4779_v22, %v4778_v45 }
 0x3fb   :  { %v6016_v8 = vpop.eup %6015 }
 0x3fc   :  { %v6018_v30 = vpop.eup %6017  ;;  %2820 = vst [vmem:[#allocation2 + $0x30] sm:$0x3] %v6016_v8  ;;  %v5723_v8 = vpack.c.bf16 %v4867_v27, %v4866_v50  ;;  %v4780_v50 = vld [vmem:[%s8696_s3 + $0x160] sm:$0xff]  ;;  %v4781_v27 = vld [vmem:[%s8696_s3 + $0x168] sm:$0xff] }
 0x3fd   :  { %2821 = vst.msk [vmem:[#allocation2 + $0x38] sm:$0x3] %vm1455_vm15, %v6018_v30  ;;  %v2834_v30 = vld [vmem:[%s8696_s3 + $0x48] sm:$0xff] }
 0x400   :  { %v2848_v37 = vld [vmem:[#allocation2 + $0x21] ss:$8 sm:$0x3]  ;;  %v3317_v46 = vld [vmem:[#allocation2 + $0x24] ss:$8 sm:$0x3] }
 0x401   :  { %v2872_v32 = vcombine.low %v2846_v51, %v2848_v37  ;;  %v3341_v26 = vcombine.low %v3315_v60, %v3317_v46  ;;  %v2824_v41 = vld [vmem:[#allocation2 + $0x20] ss:$8 sm:$0x3]  ;;  %v3565_v24 = vld [vmem:[#allocation2 + $0x26] ss:$8 sm:$0x3] }
 0x402   :  { %v2970_v10 = vcombine.low %v2822_v38, %v2824_v41  ;;  %v3589_v23 = vcombine.low %v3563_v20, %v3565_v24  ;;  %v3069_v21 = vld [vmem:[#allocation2 + $0x22] ss:$8 sm:$0x3]  ;;  %v5576_v38 = vpack.c.bf16 %v2834_v30, %v2833_v11  ;;  %v2835_v37 = vld [vmem:[%s8696_s3 + $0x50] sm:$0xff]  ;;  %v2836_v46 = vld [vmem:[%s8696_s3 + $0x58] sm:$0xff]  ;;  %v5600_v11 = vpack.c.bf16 %v4781_v27, %v4780_v50 }
 0x403   :  { %v2879_v63 = vrot.slane %v2872_v32, %v7922_v57  ;;  %v3348_v29 = vrot.slane %v3341_v26, %v7922_v57  ;;  %v3093_v49 = vcombine.low %v3067_v4, %v3069_v21  ;;  %v4868_v51 = vld [vmem:[%s8696_s3 + $0x400] sm:$0xff]  ;;  %v4869_v60 = vld [vmem:[%s8696_s3 + $0x408] sm:$0xff]  ;;  %v4870_v32 = vld [vmem:[%s8696_s3 + $0x410] sm:$0xff]  ;;  %v5579_v33 = vpack.c.bf16 %v2836_v46, %v2835_v37 }
 0x404   :  { %v7939_v42 = vrot.slane %v2970_v10, %v7922_v57  ;;  %v7942_v61 = vrot.slane %v3589_v23, %v7922_v57  ;;  %v3813_v44 = vld [vmem:[#allocation2 + $0x30] ss:$8 sm:$0x3]  ;;  %v5726_v20 = vpack.c.bf16 %v4869_v60, %v4868_v51  ;;  %v2837_v24 = vld [vmem:[%s8696_s3 + $0x60] sm:$0xff]  ;;  %v2838_v10 = vld [vmem:[%s8696_s3 + $0x68] sm:$0xff] }
 0x405   :  { %v2880_v1 = vcombine.high %v2879_v63, %v2879_v63  ;;  %v3349_v16 = vcombine.high %v3348_v29, %v3348_v29  ;;  %v7954_v28 = vrot.slane %v3093_v49, %v7922_v57  ;;  %v3837_v39 = vcombine.low %v3811_v7, %v3813_v44  ;;  %v4871_v26 = vld [vmem:[%s8696_s3 + $0x418] sm:$0xff]  ;;  %v4872_v23 = vld [vmem:[%s8696_s3 + $0x420] sm:$0xff]  ;;  %v4873_v4 = vld [vmem:[%s8696_s3 + $0x428] sm:$0xff] }
 0x406   :  { %v2978_v3 = vcombine.high %v7939_v42, %v7939_v42  ;;  %v3597_v56 = vcombine.high %v7942_v61, %v7942_v61  ;;  %v2887_v15 = vrot.slane %v2879_v63, %v7922_v57  ;;  %v3356_v47 = vrot.slane %v3348_v29, %v7922_v57  ;;  %v2839_v29 = vld [vmem:[%s8696_s3 + $0x70] sm:$0xff]  ;;  %v4783_v60 = vld [vmem:[%s8696_s3 + $0x178] sm:$0xff] }
 0x407   :  { %v2894_v18 = vrot.slane %v2880_v1, %v7922_v57  ;;  %v3363_v55 = vrot.slane %v3349_v16, %v7922_v57  ;;  %v7970_v9 = vrot.slane %v3837_v39, %v7922_v57  ;;  %v3108_v35 = vrot.slane %v7954_v28, %v7922_v57  ;;  %v2841_v1 = vld [vmem:[%s8696_s3 + $0x80] sm:$0xff]  ;;  %v2842_v16 = vld [vmem:[%s8696_s3 + $0x88] sm:$0xff]  ;;  %v2843_v7 = vld [vmem:[%s8696_s3 + $0x90] sm:$0xff] }
 0x408   :  { %v2992_v52 = vrot.slane %v2978_v3, %v7922_v57  ;;  %v3611_v19 = vrot.slane %v3597_v56, %v7922_v57  ;;  %v5729_v41 = vpack.c.bf16 %v4871_v26, %v4870_v32  ;;  %v5582_v21 = vpack.c.bf16 %v2838_v10, %v2837_v24  ;;  %v4782_v51 = vld [vmem:[%s8696_s3 + $0x170] sm:$0xff]  ;;  %v4784_v32 = vld [vmem:[%s8696_s3 + $0x180] sm:$0xff]  ;;  %v4785_v26 = vld [vmem:[%s8696_s3 + $0x188] sm:$0xff] }
 0x409   :  { %4774 = vmatprep.mubr.msk.f32.mxu1 %vm75_vm0, %v2894_v18  ;;  %4838 = vmatprep.mubr.msk.f32.mxu0 %vm75_vm0, %v3363_v55  ;;  %v3852_v62 = vrot.slane %v7970_v9, %v7922_v57  ;;  %v5732_v63 = vpack.c.bf16 %v4873_v4, %v4872_v23  ;;  %v5585_v49 = vpack.c.bf16 %v2840_v54, %v2839_v29  ;;  %v2844_v18 = vld [vmem:[%s8696_s3 + $0x98] sm:$0xff]  ;;  %v4878_v55 = vld [vmem:[%s8696_s3 + $0x450] sm:$0xff] }
 0x40a   :  { %2963 = vmatmul.mubr.f32.vlgmr.msra.gmra.mrb[8].mxu1 %v2887_v15  ;;  %3432 = vmatmul.mubr.f32.vlgmr.msra.gmra.mrb[24].mxu0 %v3356_v47  ;;  %v5735_v44 = vpack.c.bf16 %v4875_v53, %v4874_v59  ;;  %v5588_v3 = vpack.c.bf16 %v2842_v16, %v2841_v1  ;;  %v5591_v39 = vpack.c.bf16 %v2844_v18, %v2843_v7  ;;  %v4776_v47 = vld [vmem:[%s8696_s3 + $0x140] sm:$0xff]  ;;  %v4786_v23 = vld [vmem:[%s8696_s3 + $0x190] sm:$0xff]  ;;  %v4787_v4 = vld [vmem:[%s8696_s3 + $0x198] sm:$0xff] }
 0x40b   :  { %5565 = vmatpush1.bf16.msra.mxu1 %v5564_v34  ;;  %5715 = vmatpush1.bf16.msra.mxu0 %v5714_v6  ;;  %v4876_v34 = vld [vmem:[%s8696_s3 + $0x440] sm:$0xff]  ;;  %v4877_v6 = vld [vmem:[%s8696_s3 + $0x448] sm:$0xff]  ;;  %v5741_v15 = vpack.c.bf16 %v4879_v2, %v4878_v55  ;;  %v3101_v43 = vcombine.high %v7954_v28, %v7954_v28  ;;  %v3604_v58 = vrot.slane %v7942_v61, %v7922_v57  ;;  %v4905_v61 = vld [vmem:[%s8696_s3 + $0x518] sm:$0xff] }
 0x40c   :  { %4775 = vmatprep.mubr.msk.f32.mxu1 %vm75_vm0, %v2992_v52  ;;  %4880 = vmatprep.mubr.msk.f32.mxu0 %vm75_vm0, %v3611_v19  ;;  %v5738_v56 = vpack.c.bf16 %v4877_v6, %v4876_v34  ;;  %v4903_v52 = vld [vmem:[%s8696_s3 + $0x508] sm:$0xff]  ;;  %v3845_v19 = vcombine.high %v7970_v9, %v7970_v9  ;;  %v5603_v37 = vpack.c.bf16 %v4783_v60, %v4782_v51  ;;  %v4788_v59 = vld [vmem:[%s8696_s3 + $0x1a0] sm:$0xff]  ;;  %v4790_v34 = vld [vmem:[%s8696_s3 + $0x1b0] sm:$0xff] }
 0x40d   :  { %5566 = vmatprep.subr.bf16.mxu1 %v6053_v13  ;;  %5716 = vmatprep.subr.bf16.mxu0 %v6053_v13  ;;  %v5774_v14 = vpack.c.bf16 %v4903_v52, %v4902_v40  ;;  %v5606_v24 = vpack.c.bf16 %v4785_v26, %v4784_v32  ;;  %v5609_v29 = vpack.c.bf16 %v4787_v4, %v4786_v23  ;;  %v4789_v53 = vld [vmem:[%s8696_s3 + $0x1a8] sm:$0xff]  ;;  %v4791_v6 = vld [vmem:[%s8696_s3 + $0x1b8] sm:$0xff]  ;;  %v4792_v2 = vld [vmem:[%s8696_s3 + $0x1c0] sm:$0xff] }
 0x40e   :  { %v5612_v1 = vpack.c.bf16 %v4789_v53, %v4788_v59  ;;  %v5615_v7 = vpack.c.bf16 %v4791_v6, %v4790_v34  ;;  %v3193_v18 = vld [vmem:[#allocation2 + $0x23] ss:$8 sm:$0x3]  ;;  %v4803_v9 = vld [vmem:[%s8696_s3 + $0x210] sm:$0xff] }
 0x40f   :  { %5568 = vmatpush1.bf16.msra.mxu1 %v5567_v36  ;;  %5718 = vmatpush1.bf16.msra.mxu0 %v5717_v48  ;;  %v5594_v36 = vpack.c.bf16 %v4777_v25, %v4776_v47  ;;  %v2985_v48 = vrot.slane %v7939_v42, %v7922_v57  ;;  %v4904_v42 = vld [vmem:[%s8696_s3 + $0x510] sm:$0xff]  ;;  %v4919_v47 = vld [vmem:[%s8696_s3 + $0x588] sm:$0xff] }
 0x410   :  { %5569 = vmatprep.subr.bf16.mxu1 %v6053_v13  ;;  %5719 = vmatprep.subr.bf16.mxu0 %v6053_v13  ;;  %v5777_v31 = vpack.c.bf16 %v4905_v61, %v4904_v42  ;;  %v3191_v25 = vld [vmem:[#allocation2 + $0x3] ss:$8 sm:$0x3]  ;;  %v4807_v60 = vld [vmem:[%s8696_s3 + $0x230] sm:$0xff] }
 0x411   :  { %v4798_v42 = vld [vmem:[%s8696_s3 + $0x1e8] sm:$0xff]  ;;  %v4811_v26 = vld [vmem:[%s8696_s3 + $0x250] sm:$0xff] }
 0x412   :  { %v4802_v28 = vld [vmem:[%s8696_s3 + $0x208] sm:$0xff]  ;;  %v4841_v6 = vld [vmem:[%s8696_s3 + $0x330] sm:$0xff] }
 0x413   :  { %5571 = vmatpush1.bf16.msra.mxu1 %v5570_v17  ;;  %5721 = vmatpush1.bf16.msra.mxu0 %v5720_v0  ;;  %v3115_v17 = vrot.slane %v3101_v43, %v7922_v57  ;;  %v3859_v0 = vrot.slane %v3845_v19, %v7922_v57  ;;  %v3217_v43 = vcombine.low %v3191_v25, %v3193_v18  ;;  %v4794_v19 = vld [vmem:[%s8696_s3 + $0x1d0] sm:$0xff]  ;;  %v4814_v23 = vld [vmem:[%s8696_s3 + $0x268] sm:$0xff]  ;;  %v4843_v18 = vld [vmem:[%s8696_s3 + $0x340] sm:$0xff] }
 0x414   :  { %5572 = vmatprep.subr.bf16.mxu1 %v6053_v13  ;;  %5722 = vmatprep.subr.bf16.mxu0 %v6053_v13  ;;  %v3439_v4 = vld [vmem:[#allocation2 + $0x5] ss:$8 sm:$0x3] }
 0x415   :  { %v4847_v25 = vld [vmem:[%s8696_s3 + $0x360] sm:$0xff] }
 0x417   :  { %5574 = vmatpush1.bf16.msra.mxu1 %v5573_v5  ;;  %5724 = vmatpush1.bf16.msra.mxu0 %v5723_v8  ;;  %v4906_v5 = vld [vmem:[%s8696_s3 + $0x520] sm:$0xff]  ;;  %v4907_v8 = vld [vmem:[%s8696_s3 + $0x528] sm:$0xff] }
 0x418   :  { %5575 = vmatprep.subr.bf16.mxu1 %v6053_v13  ;;  %5725 = vmatprep.subr.bf16.mxu0 %v6053_v13  ;;  %v5780_v30 = vpack.c.bf16 %v4907_v8, %v4906_v5  ;;  %v4801_v5 = vld [vmem:[%s8696_s3 + $0x200] sm:$0xff] }
 0x41b   :  { %5577 = vmatpush1.bf16.msra.mxu1 %v5576_v38  ;;  %5727 = vmatpush1.bf16.msra.mxu0 %v5726_v20  ;;  %v4908_v38 = vld [vmem:[%s8696_s3 + $0x530] sm:$0xff]  ;;  %v4909_v20 = vld [vmem:[%s8696_s3 + $0x538] sm:$0xff] }
 0x41c   :  { %5578 = vmatprep.subr.bf16.mxu1 %v6053_v13  ;;  %5728 = vmatprep.subr.bf16.mxu0 %v6053_v13  ;;  %v5783_v46 = vpack.c.bf16 %v4909_v20, %v4908_v38  ;;  %v4808_v38 = vld [vmem:[%s8696_s3 + $0x238] sm:$0xff] }
 0x41d   :  { %v5639_v20 = vpack.c.bf16 %v4808_v38, %v4807_v60  ;;  %v4884_v60 = vld [vmem:[%s8696_s3 + $0x478] sm:$0xff] }
 0x41f   :  { %5580 = vmatpush1.bf16.msra.mxu1 %v5579_v33  ;;  %5730 = vmatpush1.bf16.msra.mxu0 %v5729_v41  ;;  %v4910_v33 = vld [vmem:[%s8696_s3 + $0x540] sm:$0xff]  ;;  %v4911_v41 = vld [vmem:[%s8696_s3 + $0x548] sm:$0xff] }
 0x420   :  { %5581 = vmatprep.subr.bf16.mxu1 %v6053_v13  ;;  %5731 = vmatprep.subr.bf16.mxu0 %v6053_v13  ;;  %v5786_v10 = vpack.c.bf16 %v4911_v41, %v4910_v33  ;;  %v4812_v33 = vld [vmem:[%s8696_s3 + $0x258] sm:$0xff]  ;;  %v3441_v41 = vld [vmem:[#allocation2 + $0x25] ss:$8 sm:$0x3] }
 0x423   :  { %5583 = vmatpush1.bf16.msra.mxu1 %v5582_v21  ;;  %5733 = vmatpush1.bf16.msra.mxu0 %v5732_v63  ;;  %v4912_v21 = vld [vmem:[%s8696_s3 + $0x550] sm:$0xff]  ;;  %v4913_v63 = vld [vmem:[%s8696_s3 + $0x558] sm:$0xff] }
 0x424   :  { %5584 = vmatprep.subr.bf16.mxu1 %v6053_v13  ;;  %5734 = vmatprep.subr.bf16.mxu0 %v6053_v13  ;;  %v5789_v54 = vpack.c.bf16 %v4913_v63, %v4912_v21  ;;  %v3465_v21 = vcombine.low %v3439_v4, %v3441_v41  ;;  %v4891_v4 = vld [vmem:[%s8696_s3 + $0x4b0] sm:$0xff] }
 0x426   :  { %v8330_v59 = vrot.slane %v3465_v21, %v7922_v57  ;;  %v4892_v21 = vld [vmem:[%s8696_s3 + $0x4b8] sm:$0xff] }
 0x427   :  { %5586 = vmatpush1.bf16.msra.mxu1 %v5585_v49  ;;  %5736 = vmatpush1.bf16.msra.mxu0 %v5735_v44  ;;  %v4914_v49 = vld [vmem:[%s8696_s3 + $0x560] sm:$0xff]  ;;  %v4915_v44 = vld [vmem:[%s8696_s3 + $0x568] sm:$0xff] }
 0x428   :  { %5587 = vmatprep.subr.bf16.mxu1 %v6053_v13  ;;  %5737 = vmatprep.subr.bf16.mxu0 %v6053_v13  ;;  %v5792_v16 = vpack.c.bf16 %v4915_v44, %v4914_v49  ;;  %v4839_v49 = vld [vmem:[%s8696_s3 + $0x320] sm:$0xff]  ;;  %v4840_v44 = vld [vmem:[%s8696_s3 + $0x328] sm:$0xff] }
 0x42b   :  { %5589 = vmatpush1.bf16.msra.mxu1 %v5588_v3  ;;  %5739 = vmatpush1.bf16.msra.mxu0 %v5738_v56  ;;  %v4916_v3 = vld [vmem:[%s8696_s3 + $0x570] sm:$0xff]  ;;  %v4917_v56 = vld [vmem:[%s8696_s3 + $0x578] sm:$0xff] }
 0x42c   :  { %5590 = vmatprep.subr.bf16.mxu1 %v6053_v13  ;;  %5740 = vmatprep.subr.bf16.mxu0 %v6053_v13  ;;  %v5795_v55 = vpack.c.bf16 %v4917_v56, %v4916_v3  ;;  %v4842_v3 = vld [vmem:[%s8696_s3 + $0x338] sm:$0xff] }
 0x42f   :  { %5592 = vmatpush1.bf16.msra.mxu1 %v5591_v39  ;;  %5742 = vmatpush1.bf16.msra.mxu0 %v5741_v15  ;;  %v4793_v39 = vld [vmem:[%s8696_s3 + $0x1c8] sm:$0xff]  ;;  %v4918_v15 = vld [vmem:[%s8696_s3 + $0x580] sm:$0xff] }
 0x430   :  { %5593 = vmatprep.subr.bf16.mxu1 %v6053_v13  ;;  %5773 = vmatprep.subr.bf16.mxu0 %v6053_v13  ;;  %v5618_v40 = vpack.c.bf16 %v4793_v39, %v4792_v2  ;;  %v5798_v52 = vpack.c.bf16 %v4919_v47, %v4918_v15  ;;  %v4845_v39 = vld [vmem:[%s8696_s3 + $0x350] sm:$0xff]  ;;  %v4846_v15 = vld [vmem:[%s8696_s3 + $0x358] sm:$0xff] }
 0x431   :  { %v5693_v47 = vpack.c.bf16 %v4846_v15, %v4845_v39  ;;  %v4923_v39 = vld [vmem:[%s8696_s3 + $0x5a0] sm:$0xff]  ;;  %v4924_v15 = vld [vmem:[%s8696_s3 + $0x5a8] sm:$0xff] }
 0x432   :  { %3061 = vmatmul.mubr.f32.vlgmr.msra.gmra.mrb[10].mxu1 %v2985_v48  ;;  %3680 = vmatmul.mubr.f32.vlgmr.msra.gmra.mrb[26].mxu0 %v3604_v58  ;;  %v4920_v48 = vld [vmem:[%s8696_s3 + $0x590] sm:$0xff]  ;;  %v4921_v58 = vld [vmem:[%s8696_s3 + $0x598] sm:$0xff] }
 0x433   :  { %5595 = vmatpush1.bf16.msra.mxu1 %v5594_v36  ;;  %4796 = vmatprep.mubr.msk.f32.mxu1 %vm75_vm0, %v3115_v17  ;;  %v4795_v36 = vld [vmem:[%s8696_s3 + $0x1d8] sm:$0xff]  ;;  %v5801_v22 = vpack.c.bf16 %v4921_v58, %v4920_v48  ;;  %v4797_v17 = vld [vmem:[%s8696_s3 + $0x1e0] sm:$0xff]  ;;  %v4852_v58 = vld [vmem:[%s8696_s3 + $0x388] sm:$0xff] }
 0x434   :  { %5775 = vmatpush1.bf16.msra.mxu0 %v5774_v14  ;;  %4922 = vmatprep.mubr.msk.f32.mxu0 %vm75_vm0, %v3859_v0  ;;  %v8245_v14 = vrot.slane %v3217_v43, %v7922_v57  ;;  %v5621_v45 = vpack.c.bf16 %v4795_v36, %v4794_v19  ;;  %v5624_v0 = vpack.c.bf16 %v4798_v42, %v4797_v17  ;;  %v4848_v43 = vld [vmem:[%s8696_s3 + $0x368] sm:$0xff]  ;;  %v4850_v19 = vld [vmem:[%s8696_s3 + $0x378] sm:$0xff]  ;;  %v4851_v48 = vld [vmem:[%s8696_s3 + $0x380] sm:$0xff] }
 0x435   :  { %5596 = vmatprep.subr.bf16.mxu1 %v6053_v13  ;;  %5776 = vmatprep.subr.bf16.mxu0 %v6053_v13  ;;  %v3689_v17 = vld [vmem:[#allocation2 + $0x27] ss:$8 sm:$0x3] }
 0x436   :  { %v3225_v61 = vcombine.high %v8245_v14, %v8245_v14  ;;  %v3232_v34 = vrot.slane %v8245_v14, %v7922_v57  ;;  %v5702_v14 = vpack.c.bf16 %v4852_v58, %v4851_v48  ;;  %v4927_v48 = vld [vmem:[%s8696_s3 + $0x5c0] sm:$0xff]  ;;  %v4928_v58 = vld [vmem:[%s8696_s3 + $0x5c8] sm:$0xff] }
 0x437   :  { %5598 = vmatpush1.bf16.msra.mxu1 %v5597_v12  ;;  %v4799_v12 = vld [vmem:[%s8696_s3 + $0x1f0] sm:$0xff] }
 0x438   :  { %5778 = vmatpush1.bf16.msra.mxu0 %v5777_v31  ;;  %5599 = vmatprep.subr.bf16.mxu1 %v6053_v13  ;;  %v4800_v31 = vld [vmem:[%s8696_s3 + $0x1f8] sm:$0xff]  ;;  %v3239_v50 = vrot.slane %v3225_v61, %v7922_v57  ;;  %v4855_v61 = vld [vmem:[%s8696_s3 + $0x3a0] sm:$0xff] }
 0x439   :  { %5779 = vmatprep.subr.bf16.mxu0 %v6053_v13  ;;  %v5627_v27 = vpack.c.bf16 %v4800_v31, %v4799_v12  ;;  %v3687_v12 = vld [vmem:[#allocation2 + $0x7] ss:$8 sm:$0x3] }
 0x43a   :  { %v3713_v31 = vcombine.low %v3687_v12, %v3689_v17 }
 0x43b   :  { %5601 = vmatpush1.bf16.msra.mxu1 %v5600_v11  ;;  %v4805_v11 = vld [vmem:[%s8696_s3 + $0x220] sm:$0xff] }
 0x43c   :  { %5781 = vmatpush1.bf16.msra.mxu0 %v5780_v30  ;;  %5602 = vmatprep.subr.bf16.mxu1 %v6053_v13  ;;  %v4806_v30 = vld [vmem:[%s8696_s3 + $0x228] sm:$0xff] }
 0x43d   :  { %5782 = vmatprep.subr.bf16.mxu0 %v6053_v13  ;;  %v5636_v51 = vpack.c.bf16 %v4806_v30, %v4805_v11  ;;  %v3480_v30 = vrot.slane %v8330_v59, %v7922_v57 }
 0x43f   :  { %5604 = vmatpush1.bf16.msra.mxu1 %v5603_v37  ;;  %v4809_v37 = vld [vmem:[%s8696_s3 + $0x240] sm:$0xff] }
 0x440   :  { %5784 = vmatpush1.bf16.msra.mxu0 %v5783_v46  ;;  %5605 = vmatprep.subr.bf16.mxu1 %v6053_v13  ;;  %v4810_v46 = vld [vmem:[%s8696_s3 + $0x248] sm:$0xff] }
 0x441   :  { %5785 = vmatprep.subr.bf16.mxu0 %v6053_v13  ;;  %v5642_v32 = vpack.c.bf16 %v4810_v46, %v4809_v37  ;;  %v4885_v37 = vld [vmem:[%s8696_s3 + $0x480] sm:$0xff]  ;;  %v4886_v46 = vld [vmem:[%s8696_s3 + $0x488] sm:$0xff] }
 0x443   :  { %5607 = vmatpush1.bf16.msra.mxu1 %v5606_v24  ;;  %v5645_v24 = vpack.c.bf16 %v4812_v33, %v4811_v26  ;;  %v4887_v26 = vld [vmem:[%s8696_s3 + $0x490] sm:$0xff]  ;;  %v4888_v33 = vld [vmem:[%s8696_s3 + $0x498] sm:$0xff] }
 0x444   :  { %5787 = vmatpush1.bf16.msra.mxu0 %v5786_v10  ;;  %5608 = vmatprep.subr.bf16.mxu1 %v6053_v13  ;;  %v4813_v10 = vld [vmem:[%s8696_s3 + $0x260] sm:$0xff]  ;;  %v5753_v41 = vpack.c.bf16 %v4888_v33, %v4887_v26 }
 0x445   :  { %5788 = vmatprep.subr.bf16.mxu0 %v6053_v13  ;;  %v5648_v63 = vpack.c.bf16 %v4814_v23, %v4813_v10  ;;  %v4890_v10 = vld [vmem:[%s8696_s3 + $0x4a8] sm:$0xff] }
 0x447   :  { %5610 = vmatpush1.bf16.msra.mxu1 %v5609_v29  ;;  %v4815_v29 = vld [vmem:[%s8696_s3 + $0x270] sm:$0xff] }
 0x448   :  { %5790 = vmatpush1.bf16.msra.mxu0 %v5789_v54  ;;  %5611 = vmatprep.subr.bf16.mxu1 %v6053_v13  ;;  %v4816_v54 = vld [vmem:[%s8696_s3 + $0x278] sm:$0xff] }
 0x449   :  { %5791 = vmatprep.subr.bf16.mxu0 %v6053_v13  ;;  %v5651_v53 = vpack.c.bf16 %v4816_v54, %v4815_v29  ;;  %v4893_v29 = vld [vmem:[%s8696_s3 + $0x4c0] sm:$0xff]  ;;  %v4894_v54 = vld [vmem:[%s8696_s3 + $0x4c8] sm:$0xff] }
 0x44b   :  { %5613 = vmatpush1.bf16.msra.mxu1 %v5612_v1  ;;  %v3473_v1 = vcombine.high %v8330_v59, %v8330_v59  ;;  %v5762_v59 = vpack.c.bf16 %v4894_v54, %v4893_v29  ;;  %v4063_v29 = vld [vmem:[%s8697_s4 + $0x18] sm:$0xff] }
 0x44c   :  { %5793 = vmatpush1.bf16.msra.mxu0 %v5792_v16  ;;  %5614 = vmatprep.subr.bf16.mxu1 %v6053_v13  ;;  %v5684_v16 = vpack.c.bf16 %v4840_v44, %v4839_v49  ;;  %v4896_v49 = vld [vmem:[%s8696_s3 + $0x4d8] sm:$0xff] }
 0x44d   :  { %5794 = vmatprep.subr.bf16.mxu0 %v6053_v13  ;;  %v3487_v56 = vrot.slane %v3473_v1, %v7922_v57  ;;  %v3937_v44 = vld [vmem:[#allocation2 + $0x31] ss:$8 sm:$0x3] }
 0x44f   :  { %5616 = vmatpush1.bf16.msra.mxu1 %v5615_v7  ;;  %v5687_v7 = vpack.c.bf16 %v4842_v3, %v4841_v6  ;;  %v3935_v6 = vld [vmem:[#allocation2 + $0x11] ss:$8 sm:$0x3] }
 0x450   :  { %5796 = vmatpush1.bf16.msra.mxu0 %v5795_v55  ;;  %5617 = vmatprep.subr.bf16.mxu1 %v6053_v13  ;;  %v4844_v55 = vld [vmem:[%s8696_s3 + $0x348] sm:$0xff]  ;;  %v3961_v3 = vcombine.low %v3935_v6, %v3937_v44  ;;  %v4066_v6 = vld [vmem:[%s8697_s4 + $0x30] sm:$0xff] }
 0x451   :  { %5797 = vmatprep.subr.bf16.mxu0 %v6053_v13  ;;  %v5690_v2 = vpack.c.bf16 %v4844_v55, %v4843_v18  ;;  %v4900_v18 = vld [vmem:[%s8696_s3 + $0x4f8] sm:$0xff] }
 0x452   :  { %v8488_v55 = vrot.slane %v3961_v3, %v7922_v57  ;;  %v4067_v3 = vld [vmem:[%s8697_s4 + $0x38] sm:$0xff] }
 0x453   :  { %5619 = vmatpush1.bf16.msra.mxu1 %v5618_v40  ;;  %v5696_v40 = vpack.c.bf16 %v4848_v43, %v4847_v25  ;;  %v5804_v25 = vpack.c.bf16 %v4924_v15, %v4923_v39  ;;  %v4071_v15 = vld [vmem:[%s8697_s4 + $0x58] sm:$0xff] }
 0x454   :  { %5799 = vmatpush1.bf16.msra.mxu0 %v5798_v52  ;;  %5620 = vmatprep.subr.bf16.mxu1 %v6053_v13  ;;  %v4849_v52 = vld [vmem:[%s8696_s3 + $0x370] sm:$0xff]  ;;  %v3976_v26 = vrot.slane %v8488_v55, %v7922_v57 }
 0x455   :  { %5800 = vmatprep.subr.bf16.mxu0 %v6053_v13  ;;  %v5699_v36 = vpack.c.bf16 %v4850_v19, %v4849_v52  ;;  %v4926_v52 = vld [vmem:[%s8696_s3 + $0x5b8] sm:$0xff] }
 0x457   :  { %5622 = vmatpush1.bf16.msra.mxu1 %v5621_v45  ;;  %v4853_v45 = vld [vmem:[%s8696_s3 + $0x390] sm:$0xff] }
 0x458   :  { %5802 = vmatpush1.bf16.msra.mxu0 %v5801_v22  ;;  %5623 = vmatprep.subr.bf16.mxu1 %v6053_v13  ;;  %v4854_v22 = vld [vmem:[%s8696_s3 + $0x398] sm:$0xff] }
 0x459   :  { %5833 = vmatprep.subr.bf16.mxu0 %v6053_v13  ;;  %v5705_v42 = vpack.c.bf16 %v4854_v22, %v4853_v45  ;;  %v4929_v45 = vld [vmem:[%s8696_s3 + $0x5d0] sm:$0xff]  ;;  %v4930_v22 = vld [vmem:[%s8696_s3 + $0x5d8] sm:$0xff] }
 0x45a   :  { %3184 = vmatmul.mubr.f32.vlgmr.msra.gmra.mrb[12].mxu1 %v3108_v35  ;;  %v5630_v35 = vpack.c.bf16 %v4802_v28, %v4801_v5  ;;  %v4858_v5 = vld [vmem:[%s8696_s3 + $0x3b8] sm:$0xff]  ;;  %v8409_v28 = vrot.slane %v3713_v31, %v7922_v57  ;;  %v5813_v17 = vpack.c.bf16 %v4930_v22, %v4929_v45  ;;  %v4151_v45 = vld [vmem:[%s8698_s5 + $0x8] sm:$0xff]  ;;  %v4152_v22 = vld [vmem:[%s8698_s5 + $0x10] sm:$0xff] }
 0x45b   :  { %3928 = vmatmul.mubr.f32.vlgmr.msra.gmra.mrb[28].mxu0 %v3852_v62  ;;  %5625 = vmatpush1.bf16.msra.mxu1 %v5624_v0  ;;  %v4804_v62 = vld [vmem:[%s8696_s3 + $0x218] sm:$0xff]  ;;  %v4856_v0 = vld [vmem:[%s8696_s3 + $0x3a8] sm:$0xff] }
 0x45c   :  { %4817 = vmatprep.mubr.msk.f32.mxu1 %vm75_vm0, %v3239_v50  ;;  %5626 = vmatprep.subr.bf16.mxu1 %v6053_v13  ;;  %v5633_v8 = vpack.c.bf16 %v4804_v62, %v4803_v9  ;;  %v5708_v50 = vpack.c.bf16 %v4856_v0, %v4855_v61  ;;  %v4881_v9 = vld [vmem:[%s8696_s3 + $0x460] sm:$0xff]  ;;  %v4882_v62 = vld [vmem:[%s8696_s3 + $0x468] sm:$0xff]  ;;  %v3728_v43 = vrot.slane %v8409_v28, %v7922_v57 }
 0x45d   :  { %v5744_v11 = vpack.c.bf16 %v4882_v62, %v4881_v9  ;;  %v4932_v61 = vld [vmem:[%s8696_s3 + $0x5e8] sm:$0xff]  ;;  %v4935_v9 = vld [vmem:[%s8696_s3 + $0x600] sm:$0xff] }
 0x45e   :  { %v4936_v62 = vld [vmem:[%s8696_s3 + $0x608] sm:$0xff] }
 0x45f   :  { %5628 = vmatpush1.bf16.msra.mxu1 %v5627_v27  ;;  %v4857_v27 = vld [vmem:[%s8696_s3 + $0x3b0] sm:$0xff] }
 0x460   :  { %5629 = vmatprep.subr.bf16.mxu1 %v6053_v13 }
 0x463   :  { %5631 = vmatpush1.bf16.msra.mxu1 %v5630_v35  ;;  %v5711_v35 = vpack.c.bf16 %v4858_v5, %v4857_v27  ;;  %v4933_v5 = vld [vmem:[%s8696_s3 + $0x5f0] sm:$0xff] }
 0x464   :  { %5632 = vmatprep.subr.bf16.mxu1 %v6053_v13 }
 0x467   :  { %5634 = vmatpush1.bf16.msra.mxu1 %v5633_v8  ;;  %v3721_v8 = vcombine.high %v8409_v28, %v8409_v28  ;;  %v4934_v28 = vld [vmem:[%s8696_s3 + $0x5f8] sm:$0xff] }
 0x468   :  { %5635 = vmatprep.subr.bf16.mxu1 %v6053_v13 }
 0x469   :  { %v3735_v38 = vrot.slane %v3721_v8, %v7922_v57  ;;  %v5822_v8 = vpack.c.bf16 %v4936_v62, %v4935_v9  ;;  %v30_v62 = vld [vmem:[%s8699_s6 + $0x2] ss:$0 sm:$0xff] }
 0x46b   :  { %5637 = vmatpush1.bf16.msra.mxu1 %v5636_v51  ;;  %v4883_v51 = vld [vmem:[%s8696_s3 + $0x470] sm:$0xff] }
 0x46c   :  { %5638 = vmatprep.subr.bf16.mxu1 %v6053_v13 }
 0x46f   :  { %5640 = vmatpush1.bf16.msra.mxu1 %v5639_v20  ;;  %v5747_v20 = vpack.c.bf16 %v4884_v60, %v4883_v51  ;;  %v4939_v60 = vld [vmem:[%s8696_s3 + $0x620] sm:$0xff] }
 0x470   :  { %5641 = vmatprep.subr.bf16.mxu1 %v6053_v13 }
 0x473   :  { %5643 = vmatpush1.bf16.msra.mxu1 %v5642_v32  ;;  %v5750_v32 = vpack.c.bf16 %v4886_v46, %v4885_v37  ;;  %v4941_v37 = vld [vmem:[%s8696_s3 + $0x630] sm:$0xff]  ;;  %v4942_v46 = vld [vmem:[%s8696_s3 + $0x638] sm:$0xff] }
 0x474   :  { %5644 = vmatprep.subr.bf16.mxu1 %v6053_v13 }
 0x477   :  { %5646 = vmatpush1.bf16.msra.mxu1 %v5645_v24  ;;  %v4889_v24 = vld [vmem:[%s8696_s3 + $0x4a0] sm:$0xff] }
 0x478   :  { %5647 = vmatprep.subr.bf16.mxu1 %v6053_v13  ;;  %v5756_v23 = vpack.c.bf16 %v4890_v10, %v4889_v24 }
 0x47b   :  { %5649 = vmatpush1.bf16.msra.mxu1 %v5648_v63  ;;  %v5759_v63 = vpack.c.bf16 %v4892_v21, %v4891_v4  ;;  %v4060_v4 = vld [vmem:[%s8697_s4] sm:$0xff]  ;;  %v4061_v21 = vld [vmem:[%s8697_s4 + $0x8] sm:$0xff] }
 0x47c   :  { %5650 = vmatprep.subr.bf16.mxu1 %v6053_v13 }
 0x47f   :  { %5652 = vmatpush1.bf16.msra.mxu1 %v5651_v53  ;;  %v4895_v53 = vld [vmem:[%s8696_s3 + $0x4d0] sm:$0xff] }
 0x480   :  { %5683 = vmatprep.subr.bf16.mxu1 %v6053_v13  ;;  %v5765_v1 = vpack.c.bf16 %v4896_v49, %v4895_v53  ;;  %v4065_v53 = vld [vmem:[%s8697_s4 + $0x28] sm:$0xff] }
 0x482   :  { %3308 = vmatmul.mubr.f32.vlgmr.msra.gmra.mrb[14].mxu1 %v3232_v34  ;;  %v4898_v34 = vld [vmem:[%s8696_s3 + $0x4e8] sm:$0xff] }
 0x483   :  { %5685 = vmatpush1.bf16.msra.mxu1 %v5684_v16  ;;  %4859 = vmatprep.mubr.msk.f32.mxu1 %vm75_vm0, %v3487_v56  ;;  %v4897_v16 = vld [vmem:[%s8696_s3 + $0x4e0] sm:$0xff] }
 0x484   :  { %5686 = vmatprep.subr.bf16.mxu1 %v6053_v13  ;;  %v5768_v56 = vpack.c.bf16 %v4898_v34, %v4897_v16 }
 0x487   :  { %5688 = vmatpush1.bf16.msra.mxu1 %v5687_v7  ;;  %v4899_v7 = vld [vmem:[%s8696_s3 + $0x4f0] sm:$0xff] }
 0x488   :  { %5689 = vmatprep.subr.bf16.mxu1 %v6053_v13 }
 0x48b   :  { %5691 = vmatpush1.bf16.msra.mxu1 %v5690_v2  ;;  %v5771_v2 = vpack.c.bf16 %v4900_v18, %v4899_v7  ;;  %v5843_v7 = vpack.c.bf16 %v4067_v3, %v4066_v6  ;;  %v4068_v18 = vld [vmem:[%s8697_s4 + $0x40] sm:$0xff] }
 0x48c   :  { %5692 = vmatprep.subr.bf16.mxu1 %v6053_v13 }
 0x48f   :  { %5694 = vmatpush1.bf16.msra.mxu1 %v5693_v47  ;;  %v3969_v47 = vcombine.high %v8488_v55, %v8488_v55  ;;  %v4069_v55 = vld [vmem:[%s8697_s4 + $0x48] sm:$0xff] }
 0x490   :  { %5695 = vmatprep.subr.bf16.mxu1 %v6053_v13  ;;  %v5846_v39 = vpack.c.bf16 %v4069_v55, %v4068_v18 }
 0x491   :  { %v3983_v19 = vrot.slane %v3969_v47, %v7922_v57  ;;  %v4062_v57 = vld [vmem:[%s8697_s4 + $0x10] sm:$0xff]  ;;  %v8765_v47 = vmov 0.0  }
 0x492   :  { %v5837_v54 = vpack.c.bf16 %v4063_v29, %v4062_v57 }
 0x493   :  { %5697 = vmatpush1.bf16.msra.mxu1 %v5696_v40  ;;  %v4925_v40 = vld [vmem:[%s8696_s3 + $0x5b0] sm:$0xff] }
 0x494   :  { %5698 = vmatprep.subr.bf16.mxu1 %v6053_v13 }
 0x497   :  { %5700 = vmatpush1.bf16.msra.mxu1 %v5699_v36  ;;  %v5807_v36 = vpack.c.bf16 %v4926_v52, %v4925_v40 }
 0x498   :  { %5701 = vmatprep.subr.bf16.mxu1 %v6053_v13 }
 0x49b   :  { %5703 = vmatpush1.bf16.msra.mxu1 %v5702_v14  ;;  %v5810_v14 = vpack.c.bf16 %v4928_v58, %v4927_v48 }
 0x49c   :  { %5704 = vmatprep.subr.bf16.mxu1 %v6053_v13 }
 0x49f   :  { %5706 = vmatpush1.bf16.msra.mxu1 %v5705_v42  ;;  %v4931_v42 = vld [vmem:[%s8696_s3 + $0x5e0] sm:$0xff] }
 0x4a0   :  { %5707 = vmatprep.subr.bf16.mxu1 %v6053_v13  ;;  %v5816_v27 = vpack.c.bf16 %v4932_v61, %v4931_v42  ;;  %v4153_v61 = vld [vmem:[%s8698_s5 + $0x18] sm:$0xff] }
 0x4a3   :  { %5709 = vmatpush1.bf16.msra.mxu1 %v5708_v50 }
 0x4a4   :  { %5710 = vmatprep.subr.bf16.mxu1 %v6053_v13 }
 0x4a7   :  { %5712 = vmatpush1.bf16.msra.mxu1 %v5711_v35  ;;  %v5819_v35 = vpack.c.bf16 %v4934_v28, %v4933_v5 }
 0x4a8   :  { %5743 = vmatprep.subr.bf16.mxu1 %v6053_v13 }
 0x4aa   :  { %3556 = vmatmul.mubr.f32.vlgmr.msra.gmra.mrb[16].mxu1 %v3480_v30  ;;  %v4938_v30 = vld [vmem:[%s8696_s3 + $0x618] sm:$0xff] }
 0x4ab   :  { %5745 = vmatpush1.bf16.msra.mxu1 %v5744_v11  ;;  %4901 = vmatprep.mubr.msk.f32.mxu1 %vm75_vm0, %v3735_v38  ;;  %v4937_v11 = vld [vmem:[%s8696_s3 + $0x610] sm:$0xff]  ;;  %v4940_v38 = vld [vmem:[%s8696_s3 + $0x628] sm:$0xff] }
 0x4ac   :  { %5746 = vmatprep.subr.bf16.mxu1 %v6053_v13  ;;  %v5825_v51 = vpack.c.bf16 %v4938_v30, %v4937_v11 }
 0x4af   :  { %5748 = vmatpush1.bf16.msra.mxu1 %v5747_v20  ;;  %v5828_v20 = vpack.c.bf16 %v4940_v38, %v4939_v60  ;;  %v4154_v38 = vld [vmem:[%s8698_s5 + $0x20] sm:$0xff] }
 0x4b0   :  { %5749 = vmatprep.subr.bf16.mxu1 %v6053_v13 }
 0x4b3   :  { %5751 = vmatpush1.bf16.msra.mxu1 %v5750_v32  ;;  %v5831_v32 = vpack.c.bf16 %v4942_v46, %v4941_v37  ;;  %v4156_v37 = vld [vmem:[%s8698_s5 + $0x30] sm:$0xff] }
 0x4b4   :  { %5752 = vmatprep.subr.bf16.mxu1 %v6053_v13 }
 0x4b7   :  { %5754 = vmatpush1.bf16.msra.mxu1 %v5753_v41 }
 0x4b8   :  { %5755 = vmatprep.subr.bf16.mxu1 %v6053_v13 }
 0x4bb   :  { %5757 = vmatpush1.bf16.msra.mxu1 %v5756_v23 }
 0x4bc   :  { %5758 = vmatprep.subr.bf16.mxu1 %v6053_v13 }
 0x4bf   :  { %5760 = vmatpush1.bf16.msra.mxu1 %v5759_v63  ;;  %v5834_v63 = vpack.c.bf16 %v4061_v21, %v4060_v4 }
 0x4c0   :  { %5761 = vmatprep.subr.bf16.mxu1 %v6053_v13 }
 0x4c1   :  { %5835 = vmatpush3.bf16.msra.mxu0 %v5834_v63 }
 0x4c2   :  { %5836 = vmatprep.subr.bf16.mxu0 %v6053_v13 }
 0x4c3   :  { %5763 = vmatpush1.bf16.msra.mxu1 %v5762_v59  ;;  %v4064_v59 = vld [vmem:[%s8697_s4 + $0x20] sm:$0xff] }
 0x4c4   :  { %5764 = vmatprep.subr.bf16.mxu1 %v6053_v13  ;;  %v5840_v44 = vpack.c.bf16 %v4065_v53, %v4064_v59 }
 0x4c5   :  { %5838 = vmatpush3.bf16.msra.mxu0 %v5837_v54 }
 0x4c6   :  { %5839 = vmatprep.subr.bf16.mxu0 %v6053_v13 }
 0x4c7   :  { %5766 = vmatpush1.bf16.msra.mxu1 %v5765_v1 }
 0x4c8   :  { %5767 = vmatprep.subr.bf16.mxu1 %v6053_v13 }
 0x4c9   :  { %5841 = vmatpush3.bf16.msra.mxu0 %v5840_v44 }
 0x4ca   :  { %5842 = vmatprep.subr.bf16.mxu0 %v6053_v13 }
 0x4cb   :  { %5769 = vmatpush1.bf16.msra.mxu1 %v5768_v56 }
 0x4cc   :  { %5770 = vmatprep.subr.bf16.mxu1 %v6053_v13 }
 0x4cd   :  { %5844 = vmatpush3.bf16.msra.mxu0 %v5843_v7 }
 0x4ce   :  { %5845 = vmatprep.subr.bf16.mxu0 %v6053_v13 }
 0x4cf   :  { %5772 = vmatpush1.bf16.msra.mxu1 %v5771_v2  ;;  %v4070_v2 = vld [vmem:[%s8697_s4 + $0x50] sm:$0xff] }
 0x4d0   :  { %5803 = vmatprep.subr.bf16.mxu1 %v6053_v13 }
 0x4d1   :  { %5847 = vmatpush3.bf16.msra.mxu0 %v5846_v39 }
 0x4d2   :  { %3804 = vmatmul.mubr.f32.vlgmr.msra.gmra.mrb[18].mxu1 %v3728_v43  ;;  %v5849_v43 = vpack.c.bf16 %v4071_v15, %v4070_v2  ;;  %5848 = vmatprep.subr.bf16.mxu0 %v6053_v13 }
 0x4d3   :  { %5805 = vmatpush1.bf16.msra.mxu1 %v5804_v25  ;;  %4943 = vmatprep.mubr.msk.f32.mxu1 %vm75_vm0, %v3983_v19  ;;  %vm6055_vm0 = vmmov 0   ;;  %v4072_v19 = vld [vmem:[%s8697_s4 + $0x60] sm:$0xff] }
 0x4d4   :  { %5806 = vmatprep.subr.bf16.mxu1 %v6053_v13  ;;  %5005 = vmatprep.mubr.msk.f32.mxu0 %vm6055_vm0, %v8765_v47 }
 0x4d5   :  { %5850 = vmatpush3.bf16.msra.mxu0 %v5849_v43 }
 0x4d6   :  { %5851 = vmatprep.subr.bf16.mxu0 %v6053_v13 }
 0x4d7   :  { %5808 = vmatpush1.bf16.msra.mxu1 %v5807_v36  ;;  %v4073_v36 = vld [vmem:[%s8697_s4 + $0x68] sm:$0xff] }
 0x4d8   :  { %5809 = vmatprep.subr.bf16.mxu1 %v6053_v13  ;;  %v5852_v58 = vpack.c.bf16 %v4073_v36, %v4072_v19 }
 0x4da   :  { %5853 = vmatpush3.bf16.msra.mxu0 %v5852_v58 }
 0x4db   :  { %5811 = vmatpush1.bf16.msra.mxu1 %v5810_v14  ;;  %v4150_v14 = vld [vmem:[%s8698_s5] sm:$0xff]  ;;  %5003 = vmatprep.subr.mxu0 %v8765_v47 }
 0x4dc   :  { %5812 = vmatprep.subr.bf16.mxu1 %v6053_v13  ;;  %v5855_v42 = vpack.c.bf16 %v4151_v45, %v4150_v14 }
 0x4dd   :  { %v2964_v0 = vpop.f32.mrb[8].mxu1  ;;  %v8531_v12 = vpop.f32.mrb[24].mxu0 }
 0x4de   :  { %v2966_v31 = vpop.f32.mrb[9].mxu1  ;;  %v3435_v50 = vpop.f32.mrb[25].mxu0 }
 0x4df   :  { %5814 = vmatpush1.bf16.msra.mxu1 %v5813_v17  ;;  %v4074_v17 = vld [vmem:[%s8697_s4 + $0x70] sm:$0xff] }
 0x4e0   :  { %5815 = vmatprep.subr.bf16.mxu1 %v6053_v13  ;;  %5004 = vmatpush3.msra.mxu0 %v4074_v17 }
 0x4e3   :  { %5817 = vmatpush1.bf16.msra.mxu1 %v5816_v27 }
 0x4e4   :  { %5818 = vmatprep.subr.bf16.mxu1 %v6053_v13 }
 0x4e7   :  { %5820 = vmatpush1.bf16.msra.mxu1 %v5819_v35 }
 0x4e8   :  { %5821 = vmatprep.subr.bf16.mxu1 %v6053_v13 }
 0x4eb   :  { %5823 = vmatpush1.bf16.msra.mxu1 %v5822_v8 }
 0x4ec   :  { %5824 = vmatprep.subr.bf16.mxu1 %v6053_v13 }
 0x4ef   :  { %5826 = vmatpush1.bf16.msra.mxu1 %v5825_v51 }
 0x4f0   :  { %5827 = vmatprep.subr.bf16.mxu1 %v6053_v13 }
 0x4f3   :  { %5829 = vmatpush1.bf16.msra.mxu1 %v5828_v20  ;;  %v4155_v20 = vld [vmem:[%s8698_s5 + $0x28] sm:$0xff] }
 0x4f4   :  { %5830 = vmatprep.subr.bf16.mxu1 %v6053_v13  ;;  %v5861_v46 = vpack.c.bf16 %v4155_v20, %v4154_v38 }
 0x4f7   :  { %5832 = vmatpush1.bf16.msra.mxu1 %v5831_v32  ;;  %v4157_v32 = vld [vmem:[%s8698_s5 + $0x38] sm:$0xff] }
 0x4f8   :  { %5854 = vmatprep.subr.bf16.mxu1 %v6053_v13 }
 0x4fa   :  { %4052 = vmatmul.mubr.f32.vlgmr.msra.gmra.mrb[20].mxu1 %v3976_v26  ;;  %v5864_v26 = vpack.c.bf16 %v4157_v32, %v4156_v37 }
 0x4fb   :  { %5030 = vmatprep.mubr.msk.f32.mxu1 %vm6055_vm0, %v8765_v47  ;;  %5856 = vmatpush3.bf16.msra.mxu1 %v5855_v42 }
 0x4fc   :  { %5857 = vmatprep.subr.bf16.mxu1 %v6053_v13 }
 0x505   :  { %v3062_v33 = vpop.f32.mrb[10].mxu1  ;;  %v8572_v41 = vpop.f32.mrb[26].mxu0 }
 0x506   :  { %v3063_v24 = vadd.f32 %v3062_v33, %v2964_v0  ;;  %v3064_v10 = vpop.f32.mrb[11].mxu1  ;;  %v3683_v23 = vpop.f32.mrb[27].mxu0  ;;  %v5858_v0 = vpack.c.bf16 %v4153_v61, %v4152_v22  ;;  %v4158_v33 = vld [vmem:[%s8698_s5 + $0x40] sm:$0xff] }
 0x507   :  { %v4160_v10 = vld [vmem:[%s8698_s5 + $0x50] sm:$0xf]  ;;  %v31_v23 = vld [vmem:[%s8699_s6 + $0x3] ss:$0 sm:$0xff] }
 0x508   :  { %5859 = vmatpush3.bf16.msra.mxu1 %v5858_v0 }
 0x509   :  { %5860 = vmatprep.subr.bf16.mxu1 %v6053_v13 }
 0x50c   :  { %5862 = vmatpush3.bf16.msra.mxu1 %v5861_v46 }
 0x50d   :  { %5863 = vmatprep.subr.bf16.mxu1 %v6053_v13 }
 0x510   :  { %5865 = vmatpush3.bf16.msra.mxu1 %v5864_v26 }
 0x511   :  { %5866 = vmatprep.subr.bf16.mxu1 %v6053_v13  ;;  %v32_v13 = vld [vmem:[%s8699_s6 + $0x4] ss:$0 sm:$0xff] }
 0x52d   :  { %v3185_v49 = vpop.f32.mrb[12].mxu1 }
 0x52e   :  { %v3189_v1 = vadd.f32 %v3185_v49, %v3063_v24  ;;  %v3929_v16 = vpop.f32.mrb[28].mxu0  ;;  %v3187_v34 = vpop.f32.mrb[13].mxu1 }
 0x52f   :  { %v3931_v56 = vpop.f32.mrb[29].mxu0 }
 0x555   :  { %v3309_v25 = vpop.f32.mrb[14].mxu1 }
 0x556   :  { %v3313_v40 = vadd.f32 %v3309_v25, %v3189_v1  ;;  %v3311_v52 = vpop.f32.mrb[15].mxu1 }
 0x558   :  { %v3437_v48 = vadd.f32 %v8531_v12, %v3313_v40 }
 0x57d   :  { %v3557_v12 = vpop.f32.mrb[16].mxu1 }
 0x57e   :  { %v3561_v31 = vadd.f32 %v3557_v12, %v3437_v48  ;;  %v3559_v50 = vpop.f32.mrb[17].mxu1 }
 0x580   :  { %v3685_v27 = vadd.f32 %v8572_v41, %v3561_v31  ;;  %v4159_v41 = vld [vmem:[%s8698_s5 + $0x48] sm:$0xff]  ;;  %s6056_s5 = smov [#allocation3]  }
 0x581   :  { %v5867_v24 = vpack.c.bf16 %v4159_v41, %v4158_v33  ;;  %s4257_s29 = sshll.u32 %s6056_s5, 4  ;;  %s4258_s29 = int_to_ptr.vmem [resolvable:$true] %s4257_s29 }
 0x582   :  { %s6027_s6 = scalar_lea.vmem %s4258_s29, 32  ;;  %p6032_p1 = scmp.lt.s32.totalorder %s4258_s29, %s4258_s29 }
 0x583   :  { %5868 = vmatpush3.bf16.msra.mxu1 %v5867_v24  ;;  %p6028_p0 = scmp.ne.s32.totalorder %s4258_s29, %s6027_s6  ;;  %p6033_p2 = scmp.lt.s32.totalorder %s6027_s6, %s6027_s6 }
 0x584   :  { %5028 = vmatprep.subr.mxu1 %v8765_v47 }
 0x585   :  { %p6034_p3 = por %p6033_p2, %p6032_p1 }
 0x587   :  { %5029 = vmatpush3.msk.msra.mxu1 %vm678_vm1, %v4160_v10  ;;  %p6035_p4 = pnand %p6034_p3, %p6028_p0 }
 0x5a5   :  { %v3805_v5 = vpop.f32.mrb[18].mxu1 }
 0x5a6   :  { %v3809_v28 = vadd.f32 %v3805_v5, %v3685_v27  ;;  %v3807_v35 = vpop.f32.mrb[19].mxu1 }
 0x5a8   :  { %v3933_v9 = vadd.f32 %v3929_v16, %v3809_v28 }
 0x5cd   :  { %v4053_v8 = vpop.f32.mrb[20].mxu1 }
 0x5ce   :  { %v4057_v11 = vadd.f32 %v4053_v8, %v3933_v9  ;;  %v4055_v30 = vpop.f32.mrb[21].mxu1 }
 0x5d0   :  { %v4058_v51 = vadd.f32 %v4057_v11, %v30_v62 }
 0x5d2   :  { %6019 = vtanh.f32 %v4058_v51 }
 0x5dc   :  { %v6020_v60 = vpop.eup %6019 }
 0x5dd   :  { %5006 = vmatmul.mubr.msk.f32.vlgmr.msra.gmra.mrb[30].mxu0 %vm4075_vm2, %v6020_v60 }
 0x6b0   :  { %v4145_v4 = vpop.f32.mrb[30].mxu0 }
 0x6b1   :  { %v4146_v21 = vadd.f32 %v4145_v4, %v31_v23  ;;  %v5007_v57 = vpop.f32.mrb[31].mxu0 }
 0x6b3   :  { %6021 = vtanh.f32 %v4146_v21 }
 0x6bd   :  { %v6022_v63 = vpop.eup %6021 }
 0x6be   :  { %5031 = vmatmul.mubr.msk.f32.vlgmr.msra.gmra.mrb[22].mxu1 %vm4161_vm3, %v6022_v63 }
 0x791   :  { %v4234_v29 = vpop.f32.mrb[22].mxu1 }
 0x792   :  { %v4235_v54 = vadd.f32 %v4234_v29, %v32_v13  ;;  %v5032_v59 = vpop.f32.mrb[23].mxu1 }
 0x794   :  { %v4239_v53 = vsel %vm4238_vm4, %v4235_v54, -inf }
 0x795   :  { %4240 = vmax.xlane.f32.xlu0 %v4239_v53 }
 0x822   :  { %v4241_v49 = vpop.xlane.xlu0 %4240 }
 0x823   :  { %v4242_v44 = vsub.f32 %v4235_v54, %v4241_v49 }
 0x825   :  { %v4243_v1 = vmul.f32 1.442695, %v4242_v44 }
 0x827   :  { %6023 = vpow2.f32 %v4243_v1 }
 0x831   :  { %v6024_v16 = vpop.eup %6023 }
 0x832   :  { %v4245_v34 = vsel %vm4238_vm4, %v6024_v16, 0.0 }
 0x833   :  { %4246 = vadd.xlane.f32.xlu0 %v4245_v34 }
 0x8c0   :  { %v4247_v6 = vpop.xlane.xlu0 %4246 }
 0x8c1   :  { %6025 = vrcp.f32 %v4247_v6 }
 0x8cb   :  { %v6026_v3 = vpop.eup %6025 }
 0x8cc   :  { %v4249_v56 = vmul.f32 %v6026_v3, %v6024_v16 }
 0x8ce   :  { %4250 = vst.msk [vmem:[#allocation3] sm:$0x3] %vm4238_vm4, %v4249_v56 }
 0x8cf   :  { %6038 = shalt.err (!%p6035_p4)
}
 0x8d0   :  { %s6039_s9 = scalar_lea.hbm %s8700_s7, 32 }
 0x8d1   :  { %p6040_p5 = scmp.ne.s32.totalorder %s8700_s7, %s6039_s9  ;;  %p6043_p6 = scmp.lt.u32.totalorder %s6039_s9, %s8700_s7 }
 0x8d3   :  { %p6045_p7 = pnand %p6043_p6, %p6040_p5 }
 0x8d5   :  { %6048 = shalt.err (!%p6045_p7)
}
 0x8d6   :  { %4260 = dma.vmem_to_hbm [thread:$0]  %s4258_s29, 32, %s8700_s7, [#allocation4]  }
 0x8d7   :  { %6049 = dma.done.wait [#allocation4], 32  }
 0x8d8   :  { %6050 = vsyncadd [#allocation4], 4294967264 }
 0x8d9   :  { %4264 = vsyncpa [#allocation4], 1 }

</bundles_post_ra>
